<compile_context>
chip_gen: v6e
topology: v6e:2x2x1
jax: 0.10.0
libtpu: 0.0.40
codegen_flags: <defaults>
</compile_context>

<pallas_src>
import functools
import numpy as np
import jax
import jax.numpy as jnp
from jax import lax
from jax.experimental import pallas as pl
from jax.experimental.pallas import tpu as pltpu


_VMEM_BUDGET = 24 * 1024 * 1024     # per-block working-set target (v5e/v6e/v7x safe)
_VMEM_LIMIT = 48 * 1024 * 1024      # scoped VMEM limit handed to Mosaic


# ---------------------------------------------------------------------------
# helpers
# ---------------------------------------------------------------------------

def _rep_spec(shape):
    """Whole-array block, replicated across the grid."""
    nd = len(shape)
    return pl.BlockSpec(tuple(shape), lambda *args: (0,) * nd)


def _pick_block_rows(n, cap, prefer_split=True):
    """Largest multiple-of-8 divisor of n that fits the VMEM-derived cap; prefers a
    value that yields >= 2 grid steps (megacore on v7x). Falls back to the full dim."""
    cap = max(8, min(int(cap), n))
    divs = [d for d in range(8, n + 1, 8) if n % d == 0 and d <= cap]
    if not divs:
        # TODO(synk): at production sizes pad n to a multiple of 8 instead of
        # falling back to one full-size block.
        return n
    if prefer_split:
        split = [d for d in divs if n // d >= 2]
        if split:
            return max(split)
    return max(divs)


def _pick_vocab_tile(v, d, b):
    per_row = 4 * (2 * d + 2 * b)          # dbl-buffered A tile row + output column
    cap = max(128, _VMEM_BUDGET // max(per_row, 1))
    if v <= cap:
        return v
    t = (min(cap, v) // 128) * 128
    while t >= 128:
        if v % t == 0:
            return t
        t -= 128
    return v


def _cparams():
    return pltpu.CompilerParams(dimension_semantics=("parallel",),
                                vmem_limit_bytes=_VMEM_LIMIT)


# ---------------------------------------------------------------------------
# fused 2-layer bidirectional GRU encoder (one pallas_call per encoder pass)
# ---------------------------------------------------------------------------

@functools.lru_cache(maxsize=None)
def _make_encoder_kernel(from_gates, has_h0, L, Dh):
    G = 3 * Dh

    def gru_step(gi, h, whh, bhh):
        # PyTorch gate order: r, z, n ; b_hn stays inside r * (.)
        gh = jnp.dot(h, whh, preferred_element_type=jnp.float32) + bhh
        r = jax.nn.sigmoid(gi[:, 0:Dh] + gh[:, 0:Dh])
        z = jax.nn.sigmoid(gi[:, Dh:2 * Dh] + gh[:, Dh:2 * Dh])
        n = jnp.tanh(gi[:, 2 * Dh:3 * Dh] + r * gh[:, 2 * Dh:3 * Dh])
        return (1.0 - z) * n + z * h

    def kernel(*refs):
        if from_gates:
            g0f_ref, g0b_ref = refs[0], refs[1]
            idx = 2
        else:
            x_ref, wih0_ref, bih0_ref = refs[0], refs[1], refs[2]
            idx = 3
        (whh0f_ref, bhh0f_ref, whh0b_ref, bhh0b_ref,
         wih1_ref, bih1_ref,
         whh1f_ref, bhh1f_ref, whh1b_ref, bhh1b_ref) = refs[idx:idx + 10]
        idx += 10
        if has_h0:
            h0_ref = refs[idx]
            idx += 1
        hfin_ref = refs[idx]
        idx += 1
        if from_gates:
            y0f_ref, y0b_ref, g1f_ref, g1b_ref = refs[idx:idx + 4]
        else:
            y0f_ref, y0b_ref, g1f_ref, g1b_ref, g0f_ref, g0b_ref = refs[idx:idx + 6]

        bn = hfin_ref.shape[0]
        unroll = bool(L <= 32)
        wide = (bn % 8 == 0)          # layout-preserving (L,bn,.) -> (L*bn,.) collapse

        # ---- layer-0 input gates (from-x variant only): one wide MXU matmul -----
        if not from_gates:
            wih0 = wih0_ref[...]
            bih0 = bih0_ref[...]
            Din = x_ref.shape[-1]
            if wide:
                g = (jnp.dot(x_ref[...].reshape(L * bn, Din), wih0,
                             preferred_element_type=jnp.float32) + bih0)
                g0f_ref[...] = g[:, 0:G].reshape(L, bn, G)
                g0b_ref[...] = g[:, G:2 * G].reshape(L, bn, G)
            else:
                def fill0(t, c):
                    g = (jnp.dot(x_ref[t], wih0,
                                 preferred_element_type=jnp.float32) + bih0)
                    g0f_ref[t] = g[:, 0:G]
                    g0b_ref[t] = g[:, G:2 * G]
                    return c
                lax.fori_loop(0, L, fill0, 0, unroll=unroll)

        # ---- initial states: "restacked" layout [l0f | l0b | l1f | l1b] ---------
        if has_h0:
            h0 = h0_ref[...]
            h0f_0, h0b_0 = h0[:, 0:Dh], h0[:, Dh:2 * Dh]
            h1f_0, h1b_0 = h0[:, 2 * Dh:3 * Dh], h0[:, 3 * Dh:4 * Dh]
        else:
            zeros = jnp.zeros((bn, Dh), jnp.float32)
            h0f_0 = h0b_0 = h1f_0 = h1b_0 = zeros

        # ---- layer-0 recurrence: fwd + bwd fused; y kept in VMEM scratch --------
        whh0f, bhh0f = whh0f_ref[...], bhh0f_ref[...]
        whh0b, bhh0b = whh0b_ref[...], bhh0b_ref[...]

        def step0(t, carry):
            h_f, h_b = carry
            tb = L - 1 - t
            h_f = gru_step(g0f_ref[t], h_f, whh0f, bhh0f)
            h_b = gru_step(g0b_ref[tb], h_b, whh0b, bhh0b)
            y0f_ref[t] = h_f
            y0b_ref[tb] = h_b
            return (h_f, h_b)

        hf0, hb0 = lax.fori_loop(0, L, step0, (h0f_0, h0b_0), unroll=unroll)

        # ---- layer-1 input gates: wide MXU matmuls over the whole (L*bn) block --
        wih1 = wih1_ref[...]
        bih1 = bih1_ref[...]
        if wide:
            g1 = (jnp.dot(y0f_ref[...].reshape(L * bn, Dh), wih1[0:Dh, :],
                          preferred_element_type=jnp.float32)
                  + jnp.dot(y0b_ref[...].reshape(L * bn, Dh), wih1[Dh:2 * Dh, :],
                            preferred_element_type=jnp.float32) + bih1)
            g1f_ref[...] = g1[:, 0:G].reshape(L, bn, G)
            g1b_ref[...] = g1[:, G:2 * G].reshape(L, bn, G)
        else:
            def fill1(t, c):
                g = (jnp.dot(y0f_ref[t], wih1[0:Dh, :],
                             preferred_element_type=jnp.float32)
                     + jnp.dot(y0b_ref[t], wih1[Dh:2 * Dh, :],
                               preferred_element_type=jnp.float32) + bih1)
                g1f_ref[t] = g[:, 0:G]
                g1b_ref[t] = g[:, G:2 * G]
                return c
            lax.fori_loop(0, L, fill1, 0, unroll=unroll)

        # ---- layer-1 recurrence ---------------------------------------------------
        whh1f, bhh1f = whh1f_ref[...], bhh1f_ref[...]
        whh1b, bhh1b = whh1b_ref[...], bhh1b_ref[...]

        def step1(t, carry):
            h_f, h_b = carry
            tb = L - 1 - t
            h_f = gru_step(g1f_ref[t], h_f, whh1f, bhh1f)
            h_b = gru_step(g1b_ref[tb], h_b, whh1b, bhh1b)
            return (h_f, h_b)

        hf1, hb1 = lax.fori_loop(0, L, step1, (h1f_0, h1b_0), unroll=unroll)

        # ---- final states written directly in the restacked column layout --------
        hfin_ref[:, 0:Dh] = hf0
        hfin_ref[:, Dh:2 * Dh] = hb0
        hfin_ref[:, 2 * Dh:3 * Dh] = hf1
        hfin_ref[:, 3 * Dh:4 * Dh] = hb1

    return kernel


def bigru2_encode(enc, *, x_tm=None, gates=None, h0=None):
    """Fused 2-layer bidirectional GRU encoder.

    Either x_tm (L, N, Din) time-major OR precomputed layer-0 gates (gf, gb) each
    (L, N, 3*Dh) must be given. Returns the final hidden states in the torch
    'restack' layout (N, 4*Dh) = [l0_fwd | l0_bwd | l1_fwd | l1_bwd]."""
    Dh = enc['Dh']
    G = 3 * Dh
    from_gates = gates is not None
    has_h0 = h0 is not None

    if from_gates:
        g0f, g0b = gates
        L, N, _ = g0f.shape
        per_row = 4 * L * (2 * 2 * G + 2 * Dh + 2 * G)        # dbl-buffered gates + scratch
    else:
        L, N, Din = x_tm.shape
        per_row = 4 * L * (2 * Din + 2 * G + 2 * Dh + 2 * G)  # dbl-buffered x + scratch
    bn = _pick_block_rows(N, _VMEM_BUDGET // max(per_row, 1))
    grid = (N // bn,)

    inputs, in_specs = [], []
    if from_gates:
        inputs += [g0f, g0b]
        in_specs += [pl.BlockSpec((L, bn, G), lambda i: (0, i, 0)),
                     pl.BlockSpec((L, bn, G), lambda i: (0, i, 0))]
    else:
        inputs += [x_tm, enc['l0']['wih_cat'], enc['l0']['bih_cat']]
        in_specs += [pl.BlockSpec((L, bn, Din), lambda i: (0, i, 0)),
                     _rep_spec(enc['l0']['wih_cat'].shape),
                     _rep_spec(enc['l0']['bih_cat'].shape)]
    w_list = [enc['l0']['whh_f'], enc['l0']['bhh_f'],
              enc['l0']['whh_b'], enc['l0']['bhh_b'],
              enc['l1']['wih_cat'], enc['l1']['bih_cat'],
              enc['l1']['whh_f'], enc['l1']['bhh_f'],
              enc['l1']['whh_b'], enc['l1']['bhh_b']]
    inputs += w_list
    in_specs += [_rep_spec(w.shape) for w in w_list]
    if has_h0:
        inputs.append(h0)
        in_specs.append(pl.BlockSpec((bn, 4 * Dh), lambda i: (i, 0)))

    scratch = [pltpu.VMEM((L, bn, Dh), jnp.float32),    # y0 fwd
               pltpu.VMEM((L, bn, Dh), jnp.float32),    # y0 bwd
               pltpu.VMEM((L, bn, G), jnp.float32),     # layer-1 gates fwd
               pltpu.VMEM((L, bn, G), jnp.float32)]     # layer-1 gates bwd
    if not from_gates:
        scratch += [pltpu.VMEM((L, bn, G), jnp.float32),   # layer-0 gates fwd
                    pltpu.VMEM((L, bn, G), jnp.float32)]   # layer-0 gates bwd

    return pl.pallas_call(
        _make_encoder_kernel(from_gates, has_h0, L, Dh),
        grid=grid,
        out_shape=jax.ShapeDtypeStruct((N, 4 * Dh), jnp.float32),
        in_specs=in_specs,
        out_specs=pl.BlockSpec((bn, 4 * Dh), lambda i: (i, 0)),
        scratch_shapes=scratch,
        compiler_params=_cparams(),
    )(*inputs)


# ---------------------------------------------------------------------------
# hop-invariant layer-0 gate projection for srnn AND crnn (one emb_A read)
# ---------------------------------------------------------------------------

def _gates0_kernel(x_ref, w_ref, b_ref, gsf_ref, gsb_ref, gcf_ref, gcb_ref):
    L, bn, Din = x_ref.shape
    G = gsf_ref.shape[-1]
    w = w_ref[...]
    b = b_ref[...]
    if bn % 8 == 0:
        g = (jnp.dot(x_ref[...].reshape(L * bn, Din), w,
                     preferred_element_type=jnp.float32) + b)
        gsf_ref[...] = g[:, 0:G].reshape(L, bn, G)
        gsb_ref[...] = g[:, G:2 * G].reshape(L, bn, G)
        gcf_ref[...] = g[:, 2 * G:3 * G].reshape(L, bn, G)
        gcb_ref[...] = g[:, 3 * G:4 * G].reshape(L, bn, G)
    else:
        def fill(t, c):
            g = jnp.dot(x_ref[t], w, preferred_element_type=jnp.float32) + b
            gsf_ref[t] = g[:, 0:G]
            gsb_ref[t] = g[:, G:2 * G]
            gcf_ref[t] = g[:, 2 * G:3 * G]
            gcb_ref[t] = g[:, 3 * G:4 * G]
            return c
        lax.fori_loop(0, L, fill, 0, unroll=bool(L <= 32))


def story_gates0(x_tm, w0, b0, Dh):
    """x_tm: (L, N, D). w0: (D, 12*Dh) = [s_fwd | s_bwd | c_fwd | c_bwd]."""
    L, N, Din = x_tm.shape
    G = 3 * Dh
    per_row = 4 * L * 2 * (Din + 4 * G)
    bn = _pick_block_rows(N, _VMEM_BUDGET // max(per_row, 1))
    grid = (N // bn,)
    g_shape = jax.ShapeDtypeStruct((L, N, G), jnp.float32)
    g_spec = pl.BlockSpec((L, bn, G), lambda i: (0, i, 0))
    return pl.pallas_call(
        _gates0_kernel,
        grid=grid,
        out_shape=(g_shape, g_shape, g_shape, g_shape),
        in_specs=[pl.BlockSpec((L, bn, Din), lambda i: (0, i, 0)),
                  _rep_spec(w0.shape), _rep_spec(b0.shape)],
        out_specs=(g_spec, g_spec, g_spec, g_spec),
        compiler_params=_cparams(),
    )(x_tm, w0, b0)


# ---------------------------------------------------------------------------
# memory hop: attention (VPU scores + MXU weighted sum) fused with GRUCell
# ---------------------------------------------------------------------------

@functools.lru_cache(maxsize=None)
def _make_hop_kernel(emit_dense):
    def kernel(a_ref, c_ref, u_ref, wih_ref, whh_ref, bih_ref, bhh_ref, *rest):
        if emit_dense:
            dense_ref, u_out_ref, ud_out_ref = rest
        else:
            (u_out_ref,) = rest
        A = a_ref[...]                  # (bb, M, H)
        C = c_ref[...]                  # (bb, M, H)
        u = u_ref[...]                  # (bb, H)
        H = u.shape[-1]

        # attention scores on the VPU (M is small; avoids q=1 MXU GEMVs)
        dotted = jnp.sum(A * u[:, None, :], axis=-1)             # (bb, M)
        m = jnp.max(dotted, axis=-1, keepdims=True)
        e = jnp.exp(dotted - m)
        probs = e / jnp.sum(e, axis=-1, keepdims=True)           # exact softmax
        o = jnp.einsum('bqm,bmh->bqh', probs[:, None, :], C,
                       preferred_element_type=jnp.float32)[:, 0, :]   # (bb, H)

        # GRUCell (PyTorch gate order r, z, n)
        gi = jnp.dot(o, wih_ref[...], preferred_element_type=jnp.float32) + bih_ref[...]
        gh = jnp.dot(u, whh_ref[...], preferred_element_type=jnp.float32) + bhh_ref[...]
        r = jax.nn.sigmoid(gi[:, 0:H] + gh[:, 0:H])
        z = jax.nn.sigmoid(gi[:, H:2 * H] + gh[:, H:2 * H])
        n = jnp.tanh(gi[:, 2 * H:3 * H] + r * gh[:, 2 * H:3 * H])
        u_new = (1.0 - z) * n + z * u
        u_out_ref[...] = u_new
        if emit_dense:
            # hoisted dense projection (done once here, not per vocab tile)
            ud_out_ref[...] = jnp.dot(u_new, dense_ref[...],
                                      preferred_element_type=jnp.float32)
    return kernel


def hop_step(A_r, C_r, u_r, cell, dense_t=None):
    B, M, H = A_r.shape
    emit_dense = dense_t is not None
    per_row = 4 * (2 * 2 * M * H + 4 * H)
    bb = _pick_block_rows(B, _VMEM_BUDGET // max(per_row, 1))
    grid = (B // bb,)

    inputs = [A_r, C_r, u_r, cell['wih_t'], cell['whh_t'], cell['bih'], cell['bhh']]
    in_specs = [pl.BlockSpec((bb, M, H), lambda i: (i, 0, 0)),
                pl.BlockSpec((bb, M, H), lambda i: (i, 0, 0)),
                pl.BlockSpec((bb, H), lambda i: (i, 0)),
                _rep_spec(cell['wih_t'].shape),
                _rep_spec(cell['whh_t'].shape),
                _rep_spec(cell['bih'].shape),
                _rep_spec(cell['bhh'].shape)]
    out_shapes = [jax.ShapeDtypeStruct((B, H), jnp.float32)]
    out_specs = [pl.BlockSpec((bb, H), lambda i: (i, 0))]
    if emit_dense:
        D = dense_t.shape[1]
        inputs.append(dense_t)
        in_specs.append(_rep_spec(dense_t.shape))
        out_shapes.append(jax.ShapeDtypeStruct((B, D), jnp.float32))
        out_specs.append(pl.BlockSpec((bb, D), lambda i: (i, 0)))

    res = pl.pallas_call(
        _make_hop_kernel(emit_dense),
        grid=grid,
        out_shape=tuple(out_shapes),
        in_specs=in_specs,
        out_specs=tuple(out_specs),
        compiler_params=_cparams(),
    )(*inputs)
    return res if emit_dense else res[0]


# ---------------------------------------------------------------------------
# vocabulary projection: u_d @ A.weight^T, tiled over the vocabulary
# ---------------------------------------------------------------------------

def _output_kernel(ud_ref, a_ref, out_ref):
    out_ref[...] = lax.dot_general(ud_ref[...], a_ref[...], (((1,), (1,)), ((), ())),
                                   preferred_element_type=jnp.float32)


def output_proj(u_d, A_emb):
    B, D = u_d.shape
    V, _ = A_emb.shape
    tv = _pick_vocab_tile(V, D, B)
    grid = (V // tv,)
    return pl.pallas_call(
        _output_kernel,
        grid=grid,
        out_shape=jax.ShapeDtypeStruct((B, V), jnp.float32),
        in_specs=[pl.BlockSpec((B, D), lambda j: (0, 0)),
                  pl.BlockSpec((tv, D), lambda j: (j, 0))],
        out_specs=pl.BlockSpec((B, tv), lambda j: (0, j)),
        compiler_params=_cparams(),
    )(u_d, A_emb)


# ---------------------------------------------------------------------------
# forward pass
# ---------------------------------------------------------------------------

def forward(params, stories, queries):
    A_emb = params['A']                       # (V, D)
    penc = params['encoding']                 # (L, D)
    hops = params['hops']
    assert hops >= 1
    B, M, L = stories.shape
    D = A_emb.shape[1]
    Dh = D // 2
    H = 2 * D                                 # gru_hidden_size = 4*Dh
    N = B * M

    # --- query path: embed, position-encode (XLA gather), encode -------------
    q_emb = A_emb[queries] * penc                              # (B, L, D)
    q_tm = jnp.transpose(q_emb, (1, 0, 2))                     # (L, B, D)  once
    u_k = bigru2_encode(params['qrnn'], x_tm=q_tm)             # (B, H) restacked

    # --- story path: embed once, time-major once (hop-invariant) -------------
    emb_A = (A_emb[stories] * penc).reshape(N, L, D)
    x_tm = jnp.transpose(emb_A, (1, 0, 2))                     # (L, N, D)  once

    # hop-invariant layer-0 input gates for srnn AND crnn from ONE emb_A read
    gs_f, gs_b, gc_f, gc_b = story_gates0(x_tm, params['w0_story'],
                                          params['b0_story'], Dh)

    # hop-invariant C encoder (zero initial state), hoisted out of the hop loop
    C_fin = bigru2_encode(params['crnn'], gates=(gc_f, gc_b))  # (N, H)
    C_r = C_fin.reshape(B, M, H)

    A_fin = None
    u_d = None
    for hop in range(hops):
        A_fin = bigru2_encode(params['srnn'], gates=(gs_f, gs_b), h0=A_fin)  # (N, H)
        if hop == hops - 1:
            u_k, u_d = hop_step(A_fin.reshape(B, M, H), C_r, u_k, params['gru'],
                                dense_t=params['dense_t'])
        else:
            u_k = hop_step(A_fin.reshape(B, M, H), C_r, u_k, params['gru'])

    return output_proj(u_d, A_emb)                             # (B, V)


# ---------------------------------------------------------------------------
# deterministic parameter construction
# ---------------------------------------------------------------------------

def position_encoding(sentence_size, embedding_size):
    encoding = np.ones((embedding_size, sentence_size), dtype=np.float32)
    ls = sentence_size + 1
    le = embedding_size + 1
    for i in range(1, le):
        for j in range(1, ls):
            encoding[i - 1, j - 1] = ((i - (embedding_size + 1) / 2)
                                      * (j - (sentence_size + 1) / 2))
    encoding = 1 + 4 * encoding / embedding_size / sentence_size
    encoding[:, -1] = 1.0
    return jnp.asarray(np.transpose(encoding))                 # (L, D)


def make_gru_encoder_params(key, input_size, hidden):
    """2-layer bidirectional GRU, weights pre-transposed, fwd/bwd Wih concatenated."""
    layers = []
    for l in range(2):
        din = input_size if l == 0 else 2 * hidden
        bound = 1.0 / np.sqrt(hidden)
        per = {}
        for d in ('f', 'b'):
            key, k1, k2, k3, k4 = jax.random.split(key, 5)
            wih = jax.random.uniform(k1, (3 * hidden, din), jnp.float32, -bound, bound)
            whh = jax.random.uniform(k2, (3 * hidden, hidden), jnp.float32, -bound, bound)
            bih = jax.random.uniform(k3, (3 * hidden,), jnp.float32, -bound, bound)
            bhh = jax.random.uniform(k4, (3 * hidden,), jnp.float32, -bound, bound)
            per[d] = dict(wih_t=wih.T, whh_t=whh.T,
                          bih=bih.reshape(1, -1), bhh=bhh.reshape(1, -1))
        layers.append(dict(
            wih_cat=jnp.concatenate([per['f']['wih_t'], per['b']['wih_t']], axis=1),
            bih_cat=jnp.concatenate([per['f']['bih'], per['b']['bih']], axis=1),
            whh_f=per['f']['whh_t'], bhh_f=per['f']['bhh'],
            whh_b=per['b']['whh_t'], bhh_b=per['b']['bhh']))
    return dict(Dh=hidden, l0=layers[0], l1=layers[1]), key


def make_params(key, vocab_size, embedding_size, max_sentence_size, hops):
    D = embedding_size
    Dh = D // 2
    H = 2 * D        # gru_hidden_size = embedding_size * num_states // 2 = 2*D

    key, ka = jax.random.split(key)
    A = jax.random.normal(ka, (vocab_size, D), jnp.float32) * 0.5   # reset_parameters: /2
    A = A.at[0].set(0.0)                                            # padding_idx (PAD_ID = 0)

    qrnn, key = make_gru_encoder_params(key, D, Dh)
    srnn, key = make_gru_encoder_params(key, D, Dh)
    crnn, key = make_gru_encoder_params(key, D, Dh)

    bound = 1.0 / np.sqrt(H)
    key, k1, k2, k3, k4, kd = jax.random.split(key, 6)
    gru = dict(
        wih_t=jax.random.uniform(k1, (3 * H, H), jnp.float32, -bound, bound).T,
        whh_t=jax.random.uniform(k2, (3 * H, H), jnp.float32, -bound, bound).T,
        bih=jax.random.uniform(k3, (3 * H,), jnp.float32, -bound, bound).reshape(1, -1),
        bhh=jax.random.uniform(k4, (3 * H,), jnp.float32, -bound, bound).reshape(1, -1))
    dense_w = jax.random.uniform(kd, (D, H), jnp.float32, -bound, bound) * 0.5   # /2

    # shared layer-0 input projection for srnn (all hops) and crnn (one wide matmul)
    w0_story = jnp.concatenate([srnn['l0']['wih_cat'], crnn['l0']['wih_cat']], axis=1)
    b0_story = jnp.concatenate([srnn['l0']['bih_cat'], crnn['l0']['bih_cat']], axis=1)

    return dict(A=A, encoding=position_encoding(max_sentence_size, D),
                qrnn=qrnn, srnn=srnn, crnn=crnn, gru=gru,
                dense_t=dense_w.T, hops=hops,
                w0_story=w0_story, b0_story=b0_story)


# ---------------------------------------------------------------------------

if __name__ == "__main__":
    V, D, L, B, M, HOPS = 32, 16, 8, 2, 4, 2

    key = jax.random.PRNGKey(0)
    key, kp, ks, kq = jax.random.split(key, 4)
    params = make_params(kp, V, D, L, HOPS)

    stories = jax.random.randint(ks, (B, M, L), 0, V, dtype=jnp.int32)
    queries = jax.random.randint(kq, (B, L), 0, V, dtype=jnp.int32)

    logits = forward(params, stories, queries)
    logits = jax.block_until_ready(logits)
    assert logits.shape == (B, V) and logits.dtype == jnp.float32
    assert bool(jnp.all(jnp.isfinite(logits)))
    print("KERNEL_OK")
</pallas_src>

<mosaic_0001>
module attributes {stable_mosaic.version = 11 : i64} {
  func.func @kernel(%arg0: i32, %arg1: memref<8x2x16xf32, #tpu.memory_space<vmem>>, %arg2: memref<16x48xf32, #tpu.memory_space<vmem>>, %arg3: memref<1x48xf32, #tpu.memory_space<vmem>>, %arg4: memref<8x24xf32, #tpu.memory_space<vmem>>, %arg5: memref<1x24xf32, #tpu.memory_space<vmem>>, %arg6: memref<8x24xf32, #tpu.memory_space<vmem>>, %arg7: memref<1x24xf32, #tpu.memory_space<vmem>>, %arg8: memref<16x48xf32, #tpu.memory_space<vmem>>, %arg9: memref<1x48xf32, #tpu.memory_space<vmem>>, %arg10: memref<8x24xf32, #tpu.memory_space<vmem>>, %arg11: memref<1x24xf32, #tpu.memory_space<vmem>>, %arg12: memref<8x24xf32, #tpu.memory_space<vmem>>, %arg13: memref<1x24xf32, #tpu.memory_space<vmem>>, %arg14: memref<2x32xf32, #tpu.memory_space<vmem>>, %arg15: memref<8x2x8xf32, #tpu.memory_space<vmem>>, %arg16: memref<8x2x8xf32, #tpu.memory_space<vmem>>, %arg17: memref<8x2x24xf32, #tpu.memory_space<vmem>>, %arg18: memref<8x2x24xf32, #tpu.memory_space<vmem>>, %arg19: memref<8x2x24xf32, #tpu.memory_space<vmem>>, %arg20: memref<8x2x24xf32, #tpu.memory_space<vmem>>) attributes {dimension_semantics = [#tpu.dimension_semantics<parallel>], iteration_bounds = array<i64: 1>, scalar_prefetch = 0 : i64, scratch_operands = 6 : i64, tpu.core_type = #tpu.core_type<tc>, window_params = [{transform_indices = @transform_0, window_bounds = array<i64: 8, 2, 16>}, {pipeline_mode = #tpu.pipeline_mode<synchronous>, transform_indices = @transform_1, window_bounds = array<i64: 16, 48>}, {pipeline_mode = #tpu.pipeline_mode<synchronous>, transform_indices = @transform_2, window_bounds = array<i64: 1, 48>}, {pipeline_mode = #tpu.pipeline_mode<synchronous>, transform_indices = @transform_3, window_bounds = array<i64: 8, 24>}, {pipeline_mode = #tpu.pipeline_mode<synchronous>, transform_indices = @transform_4, window_bounds = array<i64: 1, 24>}, {pipeline_mode = #tpu.pipeline_mode<synchronous>, transform_indices = @transform_5, window_bounds = array<i64: 8, 24>}, {pipeline_mode = #tpu.pipeline_mode<synchronous>, transform_indices = @transform_6, window_bounds = array<i64: 1, 24>}, {pipeline_mode = #tpu.pipeline_mode<synchronous>, transform_indices = @transform_7, window_bounds = array<i64: 16, 48>}, {pipeline_mode = #tpu.pipeline_mode<synchronous>, transform_indices = @transform_8, window_bounds = array<i64: 1, 48>}, {pipeline_mode = #tpu.pipeline_mode<synchronous>, transform_indices = @transform_9, window_bounds = array<i64: 8, 24>}, {pipeline_mode = #tpu.pipeline_mode<synchronous>, transform_indices = @transform_10, window_bounds = array<i64: 1, 24>}, {pipeline_mode = #tpu.pipeline_mode<synchronous>, transform_indices = @transform_11, window_bounds = array<i64: 8, 24>}, {pipeline_mode = #tpu.pipeline_mode<synchronous>, transform_indices = @transform_12, window_bounds = array<i64: 1, 24>}, {transform_indices = @transform_13, window_bounds = array<i64: 2, 32>}]} {
    %c0 = arith.constant 0 : index
    %c0_0 = arith.constant 0 : index
    %0 = vector.load %arg2[%c0, %c0_0] : memref<16x48xf32, #tpu.memory_space<vmem>>, vector<16x48xf32>
    %c0_1 = arith.constant 0 : index
    %c0_2 = arith.constant 0 : index
    %1 = vector.load %arg3[%c0_1, %c0_2] : memref<1x48xf32, #tpu.memory_space<vmem>>, vector<1x48xf32>
    %c0_i32 = arith.constant 0 : i32
    %2 = arith.index_cast %c0_i32 : i32 to index
    %c0_3 = arith.constant 0 : index
    %c0_4 = arith.constant 0 : index
    %3 = vector.load %arg1[%2, %c0_3, %c0_4] : memref<8x2x16xf32, #tpu.memory_space<vmem>>, vector<1x2x16xf32>
    %4 = vector.shape_cast %3 : vector<1x2x16xf32> to vector<2x16xf32>
    %cst = arith.constant dense<0.000000e+00> : vector<2x48xf32>
    %5 = tpu.matmul %4, %0, %cst {dimension_numbers = #tpu.dot_dimension_numbers<[1], [0], [0], [1], [0, 0, 1, 1], [], []>} : vector<2x16xf32>, vector<16x48xf32>, vector<2x48xf32> -> vector<2x48xf32>
    %6 = vector.broadcast %1 : vector<1x48xf32> to vector<2x48xf32>
    %7 = arith.addf %5, %6 : vector<2x48xf32>
    %8 = vector.extract_strided_slice %7 {offsets = [0, 0], sizes = [2, 24], strides = [1, 1]} : vector<2x48xf32> to vector<2x24xf32>
    %9 = arith.index_cast %c0_i32 : i32 to index
    %c0_5 = arith.constant 0 : index
    %c0_6 = arith.constant 0 : index
    %10 = vector.load %arg19[%9, %c0_5, %c0_6] : memref<8x2x24xf32, #tpu.memory_space<vmem>>, vector<1x2x24xf32>
    %11 = vector.shape_cast %10 : vector<1x2x24xf32> to vector<2x24xf32>
    %12 = vector.shape_cast %8 : vector<2x24xf32> to vector<1x2x24xf32>
    tpu.vector_store %arg19[%9, %c0_5, %c0_6], %12 {strides = array<i32>} : memref<8x2x24xf32, #tpu.memory_space<vmem>>, vector<1x2x24xf32>,
    %13 = vector.extract_strided_slice %7 {offsets = [0, 24], sizes = [2, 24], strides = [1, 1]} : vector<2x48xf32> to vector<2x24xf32>
    %14 = arith.index_cast %c0_i32 : i32 to index
    %c0_7 = arith.constant 0 : index
    %c0_8 = arith.constant 0 : index
    %15 = vector.load %arg20[%14, %c0_7, %c0_8] : memref<8x2x24xf32, #tpu.memory_space<vmem>>, vector<1x2x24xf32>
    %16 = vector.shape_cast %15 : vector<1x2x24xf32> to vector<2x24xf32>
    %17 = vector.shape_cast %13 : vector<2x24xf32> to vector<1x2x24xf32>
    tpu.vector_store %arg20[%14, %c0_7, %c0_8], %17 {strides = array<i32>} : memref<8x2x24xf32, #tpu.memory_space<vmem>>, vector<1x2x24xf32>,
    %c1_i32 = arith.constant 1 : i32
    %18 = arith.index_cast %c1_i32 : i32 to index
    %c0_9 = arith.constant 0 : index
    %c0_10 = arith.constant 0 : index
    %19 = vector.load %arg1[%18, %c0_9, %c0_10] : memref<8x2x16xf32, #tpu.memory_space<vmem>>, vector<1x2x16xf32>
    %20 = vector.shape_cast %19 : vector<1x2x16xf32> to vector<2x16xf32>
    %cst_11 = arith.constant dense<0.000000e+00> : vector<2x48xf32>
    %21 = tpu.matmul %20, %0, %cst_11 {dimension_numbers = #tpu.dot_dimension_numbers<[1], [0], [0], [1], [0, 0, 1, 1], [], []>} : vector<2x16xf32>, vector<16x48xf32>, vector<2x48xf32> -> vector<2x48xf32>
    %22 = vector.broadcast %1 : vector<1x48xf32> to vector<2x48xf32>
    %23 = arith.addf %21, %22 : vector<2x48xf32>
    %24 = vector.extract_strided_slice %23 {offsets = [0, 0], sizes = [2, 24], strides = [1, 1]} : vector<2x48xf32> to vector<2x24xf32>
    %25 = arith.index_cast %c1_i32 : i32 to index
    %c0_12 = arith.constant 0 : index
    %c0_13 = arith.constant 0 : index
    %26 = vector.load %arg19[%25, %c0_12, %c0_13] : memref<8x2x24xf32, #tpu.memory_space<vmem>>, vector<1x2x24xf32>
    %27 = vector.shape_cast %26 : vector<1x2x24xf32> to vector<2x24xf32>
    %28 = vector.shape_cast %24 : vector<2x24xf32> to vector<1x2x24xf32>
    tpu.vector_store %arg19[%25, %c0_12, %c0_13], %28 {strides = array<i32>} : memref<8x2x24xf32, #tpu.memory_space<vmem>>, vector<1x2x24xf32>,
    %29 = vector.extract_strided_slice %23 {offsets = [0, 24], sizes = [2, 24], strides = [1, 1]} : vector<2x48xf32> to vector<2x24xf32>
    %30 = arith.index_cast %c1_i32 : i32 to index
    %c0_14 = arith.constant 0 : index
    %c0_15 = arith.constant 0 : index
    %31 = vector.load %arg20[%30, %c0_14, %c0_15] : memref<8x2x24xf32, #tpu.memory_space<vmem>>, vector<1x2x24xf32>
    %32 = vector.shape_cast %31 : vector<1x2x24xf32> to vector<2x24xf32>
    %33 = vector.shape_cast %29 : vector<2x24xf32> to vector<1x2x24xf32>
    tpu.vector_store %arg20[%30, %c0_14, %c0_15], %33 {strides = array<i32>} : memref<8x2x24xf32, #tpu.memory_space<vmem>>, vector<1x2x24xf32>,
    %c2_i32 = arith.constant 2 : i32
    %34 = arith.index_cast %c2_i32 : i32 to index
    %c0_16 = arith.constant 0 : index
    %c0_17 = arith.constant 0 : index
    %35 = vector.load %arg1[%34, %c0_16, %c0_17] : memref<8x2x16xf32, #tpu.memory_space<vmem>>, vector<1x2x16xf32>
    %36 = vector.shape_cast %35 : vector<1x2x16xf32> to vector<2x16xf32>
    %cst_18 = arith.constant dense<0.000000e+00> : vector<2x48xf32>
    %37 = tpu.matmul %36, %0, %cst_18 {dimension_numbers = #tpu.dot_dimension_numbers<[1], [0], [0], [1], [0, 0, 1, 1], [], []>} : vector<2x16xf32>, vector<16x48xf32>, vector<2x48xf32> -> vector<2x48xf32>
    %38 = vector.broadcast %1 : vector<1x48xf32> to vector<2x48xf32>
    %39 = arith.addf %37, %38 : vector<2x48xf32>
    %40 = vector.extract_strided_slice %39 {offsets = [0, 0], sizes = [2, 24], strides = [1, 1]} : vector<2x48xf32> to vector<2x24xf32>
    %41 = arith.index_cast %c2_i32 : i32 to index
    %c0_19 = arith.constant 0 : index
    %c0_20 = arith.constant 0 : index
    %42 = vector.load %arg19[%41, %c0_19, %c0_20] : memref<8x2x24xf32, #tpu.memory_space<vmem>>, vector<1x2x24xf32>
    %43 = vector.shape_cast %42 : vector<1x2x24xf32> to vector<2x24xf32>
    %44 = vector.shape_cast %40 : vector<2x24xf32> to vector<1x2x24xf32>
    tpu.vector_store %arg19[%41, %c0_19, %c0_20], %44 {strides = array<i32>} : memref<8x2x24xf32, #tpu.memory_space<vmem>>, vector<1x2x24xf32>,
    %45 = vector.extract_strided_slice %39 {offsets = [0, 24], sizes = [2, 24], strides = [1, 1]} : vector<2x48xf32> to vector<2x24xf32>
    %46 = arith.index_cast %c2_i32 : i32 to index
    %c0_21 = arith.constant 0 : index
    %c0_22 = arith.constant 0 : index
    %47 = vector.load %arg20[%46, %c0_21, %c0_22] : memref<8x2x24xf32, #tpu.memory_space<vmem>>, vector<1x2x24xf32>
    %48 = vector.shape_cast %47 : vector<1x2x24xf32> to vector<2x24xf32>
    %49 = vector.shape_cast %45 : vector<2x24xf32> to vector<1x2x24xf32>
    tpu.vector_store %arg20[%46, %c0_21, %c0_22], %49 {strides = array<i32>} : memref<8x2x24xf32, #tpu.memory_space<vmem>>, vector<1x2x24xf32>,
    %c3_i32 = arith.constant 3 : i32
    %50 = arith.index_cast %c3_i32 : i32 to index
    %c0_23 = arith.constant 0 : index
    %c0_24 = arith.constant 0 : index
    %51 = vector.load %arg1[%50, %c0_23, %c0_24] : memref<8x2x16xf32, #tpu.memory_space<vmem>>, vector<1x2x16xf32>
    %52 = vector.shape_cast %51 : vector<1x2x16xf32> to vector<2x16xf32>
    %cst_25 = arith.constant dense<0.000000e+00> : vector<2x48xf32>
    %53 = tpu.matmul %52, %0, %cst_25 {dimension_numbers = #tpu.dot_dimension_numbers<[1], [0], [0], [1], [0, 0, 1, 1], [], []>} : vector<2x16xf32>, vector<16x48xf32>, vector<2x48xf32> -> vector<2x48xf32>
    %54 = vector.broadcast %1 : vector<1x48xf32> to vector<2x48xf32>
    %55 = arith.addf %53, %54 : vector<2x48xf32>
    %56 = vector.extract_strided_slice %55 {offsets = [0, 0], sizes = [2, 24], strides = [1, 1]} : vector<2x48xf32> to vector<2x24xf32>
    %57 = arith.index_cast %c3_i32 : i32 to index
    %c0_26 = arith.constant 0 : index
    %c0_27 = arith.constant 0 : index
    %58 = vector.load %arg19[%57, %c0_26, %c0_27] : memref<8x2x24xf32, #tpu.memory_space<vmem>>, vector<1x2x24xf32>
    %59 = vector.shape_cast %58 : vector<1x2x24xf32> to vector<2x24xf32>
    %60 = vector.shape_cast %56 : vector<2x24xf32> to vector<1x2x24xf32>
    tpu.vector_store %arg19[%57, %c0_26, %c0_27], %60 {strides = array<i32>} : memref<8x2x24xf32, #tpu.memory_space<vmem>>, vector<1x2x24xf32>,
    %61 = vector.extract_strided_slice %55 {offsets = [0, 24], sizes = [2, 24], strides = [1, 1]} : vector<2x48xf32> to vector<2x24xf32>
    %62 = arith.index_cast %c3_i32 : i32 to index
    %c0_28 = arith.constant 0 : index
    %c0_29 = arith.constant 0 : index
    %63 = vector.load %arg20[%62, %c0_28, %c0_29] : memref<8x2x24xf32, #tpu.memory_space<vmem>>, vector<1x2x24xf32>
    %64 = vector.shape_cast %63 : vector<1x2x24xf32> to vector<2x24xf32>
    %65 = vector.shape_cast %61 : vector<2x24xf32> to vector<1x2x24xf32>
    tpu.vector_store %arg20[%62, %c0_28, %c0_29], %65 {strides = array<i32>} : memref<8x2x24xf32, #tpu.memory_space<vmem>>, vector<1x2x24xf32>,
    %c4_i32 = arith.constant 4 : i32
    %66 = arith.index_cast %c4_i32 : i32 to index
    %c0_30 = arith.constant 0 : index
    %c0_31 = arith.constant 0 : index
    %67 = vector.load %arg1[%66, %c0_30, %c0_31] : memref<8x2x16xf32, #tpu.memory_space<vmem>>, vector<1x2x16xf32>
    %68 = vector.shape_cast %67 : vector<1x2x16xf32> to vector<2x16xf32>
    %cst_32 = arith.constant dense<0.000000e+00> : vector<2x48xf32>
    %69 = tpu.matmul %68, %0, %cst_32 {dimension_numbers = #tpu.dot_dimension_numbers<[1], [0], [0], [1], [0, 0, 1, 1], [], []>} : vector<2x16xf32>, vector<16x48xf32>, vector<2x48xf32> -> vector<2x48xf32>
    %70 = vector.broadcast %1 : vector<1x48xf32> to vector<2x48xf32>
    %71 = arith.addf %69, %70 : vector<2x48xf32>
    %72 = vector.extract_strided_slice %71 {offsets = [0, 0], sizes = [2, 24], strides = [1, 1]} : vector<2x48xf32> to vector<2x24xf32>
    %73 = arith.index_cast %c4_i32 : i32 to index
    %c0_33 = arith.constant 0 : index
    %c0_34 = arith.constant 0 : index
    %74 = vector.load %arg19[%73, %c0_33, %c0_34] : memref<8x2x24xf32, #tpu.memory_space<vmem>>, vector<1x2x24xf32>
    %75 = vector.shape_cast %74 : vector<1x2x24xf32> to vector<2x24xf32>
    %76 = vector.shape_cast %72 : vector<2x24xf32> to vector<1x2x24xf32>
    tpu.vector_store %arg19[%73, %c0_33, %c0_34], %76 {strides = array<i32>} : memref<8x2x24xf32, #tpu.memory_space<vmem>>, vector<1x2x24xf32>,
    %77 = vector.extract_strided_slice %71 {offsets = [0, 24], sizes = [2, 24], strides = [1, 1]} : vector<2x48xf32> to vector<2x24xf32>
    %78 = arith.index_cast %c4_i32 : i32 to index
    %c0_35 = arith.constant 0 : index
    %c0_36 = arith.constant 0 : index
    %79 = vector.load %arg20[%78, %c0_35, %c0_36] : memref<8x2x24xf32, #tpu.memory_space<vmem>>, vector<1x2x24xf32>
    %80 = vector.shape_cast %79 : vector<1x2x24xf32> to vector<2x24xf32>
    %81 = vector.shape_cast %77 : vector<2x24xf32> to vector<1x2x24xf32>
    tpu.vector_store %arg20[%78, %c0_35, %c0_36], %81 {strides = array<i32>} : memref<8x2x24xf32, #tpu.memory_space<vmem>>, vector<1x2x24xf32>,
    %c5_i32 = arith.constant 5 : i32
    %82 = arith.index_cast %c5_i32 : i32 to index
    %c0_37 = arith.constant 0 : index
    %c0_38 = arith.constant 0 : index
    %83 = vector.load %arg1[%82, %c0_37, %c0_38] : memref<8x2x16xf32, #tpu.memory_space<vmem>>, vector<1x2x16xf32>
    %84 = vector.shape_cast %83 : vector<1x2x16xf32> to vector<2x16xf32>
    %cst_39 = arith.constant dense<0.000000e+00> : vector<2x48xf32>
    %85 = tpu.matmul %84, %0, %cst_39 {dimension_numbers = #tpu.dot_dimension_numbers<[1], [0], [0], [1], [0, 0, 1, 1], [], []>} : vector<2x16xf32>, vector<16x48xf32>, vector<2x48xf32> -> vector<2x48xf32>
    %86 = vector.broadcast %1 : vector<1x48xf32> to vector<2x48xf32>
    %87 = arith.addf %85, %86 : vector<2x48xf32>
    %88 = vector.extract_strided_slice %87 {offsets = [0, 0], sizes = [2, 24], strides = [1, 1]} : vector<2x48xf32> to vector<2x24xf32>
    %89 = arith.index_cast %c5_i32 : i32 to index
    %c0_40 = arith.constant 0 : index
    %c0_41 = arith.constant 0 : index
    %90 = vector.load %arg19[%89, %c0_40, %c0_41] : memref<8x2x24xf32, #tpu.memory_space<vmem>>, vector<1x2x24xf32>
    %91 = vector.shape_cast %90 : vector<1x2x24xf32> to vector<2x24xf32>
    %92 = vector.shape_cast %88 : vector<2x24xf32> to vector<1x2x24xf32>
    tpu.vector_store %arg19[%89, %c0_40, %c0_41], %92 {strides = array<i32>} : memref<8x2x24xf32, #tpu.memory_space<vmem>>, vector<1x2x24xf32>,
    %93 = vector.extract_strided_slice %87 {offsets = [0, 24], sizes = [2, 24], strides = [1, 1]} : vector<2x48xf32> to vector<2x24xf32>
    %94 = arith.index_cast %c5_i32 : i32 to index
    %c0_42 = arith.constant 0 : index
    %c0_43 = arith.constant 0 : index
    %95 = vector.load %arg20[%94, %c0_42, %c0_43] : memref<8x2x24xf32, #tpu.memory_space<vmem>>, vector<1x2x24xf32>
    %96 = vector.shape_cast %95 : vector<1x2x24xf32> to vector<2x24xf32>
    %97 = vector.shape_cast %93 : vector<2x24xf32> to vector<1x2x24xf32>
    tpu.vector_store %arg20[%94, %c0_42, %c0_43], %97 {strides = array<i32>} : memref<8x2x24xf32, #tpu.memory_space<vmem>>, vector<1x2x24xf32>,
    %c6_i32 = arith.constant 6 : i32
    %98 = arith.index_cast %c6_i32 : i32 to index
    %c0_44 = arith.constant 0 : index
    %c0_45 = arith.constant 0 : index
    %99 = vector.load %arg1[%98, %c0_44, %c0_45] : memref<8x2x16xf32, #tpu.memory_space<vmem>>, vector<1x2x16xf32>
    %100 = vector.shape_cast %99 : vector<1x2x16xf32> to vector<2x16xf32>
    %cst_46 = arith.constant dense<0.000000e+00> : vector<2x48xf32>
    %101 = tpu.matmul %100, %0, %cst_46 {dimension_numbers = #tpu.dot_dimension_numbers<[1], [0], [0], [1], [0, 0, 1, 1], [], []>} : vector<2x16xf32>, vector<16x48xf32>, vector<2x48xf32> -> vector<2x48xf32>
    %102 = vector.broadcast %1 : vector<1x48xf32> to vector<2x48xf32>
    %103 = arith.addf %101, %102 : vector<2x48xf32>
    %104 = vector.extract_strided_slice %103 {offsets = [0, 0], sizes = [2, 24], strides = [1, 1]} : vector<2x48xf32> to vector<2x24xf32>
    %105 = arith.index_cast %c6_i32 : i32 to index
    %c0_47 = arith.constant 0 : index
    %c0_48 = arith.constant 0 : index
    %106 = vector.load %arg19[%105, %c0_47, %c0_48] : memref<8x2x24xf32, #tpu.memory_space<vmem>>, vector<1x2x24xf32>
    %107 = vector.shape_cast %106 : vector<1x2x24xf32> to vector<2x24xf32>
    %108 = vector.shape_cast %104 : vector<2x24xf32> to vector<1x2x24xf32>
    tpu.vector_store %arg19[%105, %c0_47, %c0_48], %108 {strides = array<i32>} : memref<8x2x24xf32, #tpu.memory_space<vmem>>, vector<1x2x24xf32>,
    %109 = vector.extract_strided_slice %103 {offsets = [0, 24], sizes = [2, 24], strides = [1, 1]} : vector<2x48xf32> to vector<2x24xf32>
    %110 = arith.index_cast %c6_i32 : i32 to index
    %c0_49 = arith.constant 0 : index
    %c0_50 = arith.constant 0 : index
    %111 = vector.load %arg20[%110, %c0_49, %c0_50] : memref<8x2x24xf32, #tpu.memory_space<vmem>>, vector<1x2x24xf32>
    %112 = vector.shape_cast %111 : vector<1x2x24xf32> to vector<2x24xf32>
    %113 = vector.shape_cast %109 : vector<2x24xf32> to vector<1x2x24xf32>
    tpu.vector_store %arg20[%110, %c0_49, %c0_50], %113 {strides = array<i32>} : memref<8x2x24xf32, #tpu.memory_space<vmem>>, vector<1x2x24xf32>,
    %c7_i32 = arith.constant 7 : i32
    %114 = arith.index_cast %c7_i32 : i32 to index
    %c0_51 = arith.constant 0 : index
    %c0_52 = arith.constant 0 : index
    %115 = vector.load %arg1[%114, %c0_51, %c0_52] : memref<8x2x16xf32, #tpu.memory_space<vmem>>, vector<1x2x16xf32>
    %116 = vector.shape_cast %115 : vector<1x2x16xf32> to vector<2x16xf32>
    %cst_53 = arith.constant dense<0.000000e+00> : vector<2x48xf32>
    %117 = tpu.matmul %116, %0, %cst_53 {dimension_numbers = #tpu.dot_dimension_numbers<[1], [0], [0], [1], [0, 0, 1, 1], [], []>} : vector<2x16xf32>, vector<16x48xf32>, vector<2x48xf32> -> vector<2x48xf32>
    %118 = vector.broadcast %1 : vector<1x48xf32> to vector<2x48xf32>
    %119 = arith.addf %117, %118 : vector<2x48xf32>
    %120 = vector.extract_strided_slice %119 {offsets = [0, 0], sizes = [2, 24], strides = [1, 1]} : vector<2x48xf32> to vector<2x24xf32>
    %121 = arith.index_cast %c7_i32 : i32 to index
    %c0_54 = arith.constant 0 : index
    %c0_55 = arith.constant 0 : index
    %122 = vector.load %arg19[%121, %c0_54, %c0_55] : memref<8x2x24xf32, #tpu.memory_space<vmem>>, vector<1x2x24xf32>
    %123 = vector.shape_cast %122 : vector<1x2x24xf32> to vector<2x24xf32>
    %124 = vector.shape_cast %120 : vector<2x24xf32> to vector<1x2x24xf32>
    tpu.vector_store %arg19[%121, %c0_54, %c0_55], %124 {strides = array<i32>} : memref<8x2x24xf32, #tpu.memory_space<vmem>>, vector<1x2x24xf32>,
    %125 = vector.extract_strided_slice %119 {offsets = [0, 24], sizes = [2, 24], strides = [1, 1]} : vector<2x48xf32> to vector<2x24xf32>
    %126 = arith.index_cast %c7_i32 : i32 to index
    %c0_56 = arith.constant 0 : index
    %c0_57 = arith.constant 0 : index
    %127 = vector.load %arg20[%126, %c0_56, %c0_57] : memref<8x2x24xf32, #tpu.memory_space<vmem>>, vector<1x2x24xf32>
    %128 = vector.shape_cast %127 : vector<1x2x24xf32> to vector<2x24xf32>
    %129 = vector.shape_cast %125 : vector<2x24xf32> to vector<1x2x24xf32>
    tpu.vector_store %arg20[%126, %c0_56, %c0_57], %129 {strides = array<i32>} : memref<8x2x24xf32, #tpu.memory_space<vmem>>, vector<1x2x24xf32>,
    %c8_i32 = arith.constant 8 : i32
    %cst_58 = arith.constant 0.000000e+00 : f32
    %130 = vector.broadcast %cst_58 : f32 to vector<2x8xf32>
    %c0_59 = arith.constant 0 : index
    %c0_60 = arith.constant 0 : index
    %131 = vector.load %arg4[%c0_59, %c0_60] : memref<8x24xf32, #tpu.memory_space<vmem>>, vector<8x24xf32>
    %c0_61 = arith.constant 0 : index
    %c0_62 = arith.constant 0 : index
    %132 = vector.load %arg5[%c0_61, %c0_62] : memref<1x24xf32, #tpu.memory_space<vmem>>, vector<1x24xf32>
    %c0_63 = arith.constant 0 : index
    %c0_64 = arith.constant 0 : index
    %133 = vector.load %arg6[%c0_63, %c0_64] : memref<8x24xf32, #tpu.memory_space<vmem>>, vector<8x24xf32>
    %c0_65 = arith.constant 0 : index
    %c0_66 = arith.constant 0 : index
    %134 = vector.load %arg7[%c0_65, %c0_66] : memref<1x24xf32, #tpu.memory_space<vmem>>, vector<1x24xf32>
    %c0_i32_67 = arith.constant 0 : i32
    %c7_i32_68 = arith.constant 7 : i32
    %135 = arith.subi %c7_i32_68, %c0_i32_67 : i32
    %136 = arith.index_cast %c0_i32_67 : i32 to index
    %c0_69 = arith.constant 0 : index
    %c0_70 = arith.constant 0 : index
    %137 = vector.load %arg19[%136, %c0_69, %c0_70] : memref<8x2x24xf32, #tpu.memory_space<vmem>>, vector<1x2x24xf32>
    %138 = vector.shape_cast %137 : vector<1x2x24xf32> to vector<2x24xf32>
    %cst_71 = arith.constant dense<0.000000e+00> : vector<2x24xf32>
    %139 = tpu.matmul %130, %131, %cst_71 {dimension_numbers = #tpu.dot_dimension_numbers<[1], [0], [0], [1], [0, 0, 1, 1], [], []>} : vector<2x8xf32>, vector<8x24xf32>, vector<2x24xf32> -> vector<2x24xf32>
    %140 = vector.broadcast %132 : vector<1x24xf32> to vector<2x24xf32>
    %141 = arith.addf %139, %140 : vector<2x24xf32>
    %142 = vector.extract_strided_slice %138 {offsets = [0, 0], sizes = [2, 8], strides = [1, 1]} : vector<2x24xf32> to vector<2x8xf32>
    %143 = vector.extract_strided_slice %141 {offsets = [0, 0], sizes = [2, 8], strides = [1, 1]} : vector<2x24xf32> to vector<2x8xf32>
    %144 = arith.addf %142, %143 : vector<2x8xf32>
    %145 = arith.negf %144 : vector<2x8xf32>
    %146 = math.exp %145 : vector<2x8xf32>
    %cst_72 = arith.constant 1.000000e+00 : f32
    %147 = vector.broadcast %cst_72 : f32 to vector<2x8xf32>
    %148 = arith.addf %147, %146 : vector<2x8xf32>
    %149 = arith.divf %147, %148 : vector<2x8xf32>
    %150 = vector.extract_strided_slice %138 {offsets = [0, 8], sizes = [2, 8], strides = [1, 1]} : vector<2x24xf32> to vector<2x8xf32>
    %151 = vector.extract_strided_slice %141 {offsets = [0, 8], sizes = [2, 8], strides = [1, 1]} : vector<2x24xf32> to vector<2x8xf32>
    %152 = arith.addf %150, %151 : vector<2x8xf32>
    %153 = arith.negf %152 : vector<2x8xf32>
    %154 = math.exp %153 : vector<2x8xf32>
    %cst_73 = arith.constant 1.000000e+00 : f32
    %155 = vector.broadcast %cst_73 : f32 to vector<2x8xf32>
    %156 = arith.addf %155, %154 : vector<2x8xf32>
    %157 = arith.divf %155, %156 : vector<2x8xf32>
    %158 = vector.extract_strided_slice %138 {offsets = [0, 16], sizes = [2, 8], strides = [1, 1]} : vector<2x24xf32> to vector<2x8xf32>
    %159 = vector.extract_strided_slice %141 {offsets = [0, 16], sizes = [2, 8], strides = [1, 1]} : vector<2x24xf32> to vector<2x8xf32>
    %160 = arith.mulf %149, %159 : vector<2x8xf32>
    %161 = arith.addf %158, %160 : vector<2x8xf32>
    %162 = math.tanh %161 : vector<2x8xf32>
    %cst_74 = arith.constant 1.000000e+00 : f32
    %163 = vector.broadcast %cst_74 : f32 to vector<2x8xf32>
    %164 = arith.subf %163, %157 : vector<2x8xf32>
    %165 = arith.mulf %164, %162 : vector<2x8xf32>
    %166 = arith.mulf %157, %130 : vector<2x8xf32>
    %167 = arith.addf %165, %166 : vector<2x8xf32>
    %168 = arith.index_cast %135 : i32 to index
    %c0_75 = arith.constant 0 : index
    %c0_76 = arith.constant 0 : index
    %169 = vector.load %arg20[%168, %c0_75, %c0_76] : memref<8x2x24xf32, #tpu.memory_space<vmem>>, vector<1x2x24xf32>
    %170 = vector.shape_cast %169 : vector<1x2x24xf32> to vector<2x24xf32>
    %cst_77 = arith.constant dense<0.000000e+00> : vector<2x24xf32>
    %171 = tpu.matmul %130, %133, %cst_77 {dimension_numbers = #tpu.dot_dimension_numbers<[1], [0], [0], [1], [0, 0, 1, 1], [], []>} : vector<2x8xf32>, vector<8x24xf32>, vector<2x24xf32> -> vector<2x24xf32>
    %172 = vector.broadcast %134 : vector<1x24xf32> to vector<2x24xf32>
    %173 = arith.addf %171, %172 : vector<2x24xf32>
    %174 = vector.extract_strided_slice %170 {offsets = [0, 0], sizes = [2, 8], strides = [1, 1]} : vector<2x24xf32> to vector<2x8xf32>
    %175 = vector.extract_strided_slice %173 {offsets = [0, 0], sizes = [2, 8], strides = [1, 1]} : vector<2x24xf32> to vector<2x8xf32>
    %176 = arith.addf %174, %175 : vector<2x8xf32>
    %177 = arith.negf %176 : vector<2x8xf32>
    %178 = math.exp %177 : vector<2x8xf32>
    %cst_78 = arith.constant 1.000000e+00 : f32
    %179 = vector.broadcast %cst_78 : f32 to vector<2x8xf32>
    %180 = arith.addf %179, %178 : vector<2x8xf32>
    %181 = arith.divf %179, %180 : vector<2x8xf32>
    %182 = vector.extract_strided_slice %170 {offsets = [0, 8], sizes = [2, 8], strides = [1, 1]} : vector<2x24xf32> to vector<2x8xf32>
    %183 = vector.extract_strided_slice %173 {offsets = [0, 8], sizes = [2, 8], strides = [1, 1]} : vector<2x24xf32> to vector<2x8xf32>
    %184 = arith.addf %182, %183 : vector<2x8xf32>
    %185 = arith.negf %184 : vector<2x8xf32>
    %186 = math.exp %185 : vector<2x8xf32>
    %cst_79 = arith.constant 1.000000e+00 : f32
    %187 = vector.broadcast %cst_79 : f32 to vector<2x8xf32>
    %188 = arith.addf %187, %186 : vector<2x8xf32>
    %189 = arith.divf %187, %188 : vector<2x8xf32>
    %190 = vector.extract_strided_slice %170 {offsets = [0, 16], sizes = [2, 8], strides = [1, 1]} : vector<2x24xf32> to vector<2x8xf32>
    %191 = vector.extract_strided_slice %173 {offsets = [0, 16], sizes = [2, 8], strides = [1, 1]} : vector<2x24xf32> to vector<2x8xf32>
    %192 = arith.mulf %181, %191 : vector<2x8xf32>
    %193 = arith.addf %190, %192 : vector<2x8xf32>
    %194 = math.tanh %193 : vector<2x8xf32>
    %cst_80 = arith.constant 1.000000e+00 : f32
    %195 = vector.broadcast %cst_80 : f32 to vector<2x8xf32>
    %196 = arith.subf %195, %189 : vector<2x8xf32>
    %197 = arith.mulf %196, %194 : vector<2x8xf32>
    %198 = arith.mulf %189, %130 : vector<2x8xf32>
    %199 = arith.addf %197, %198 : vector<2x8xf32>
    %200 = arith.index_cast %c0_i32_67 : i32 to index
    %c0_81 = arith.constant 0 : index
    %c0_82 = arith.constant 0 : index
    %201 = vector.load %arg15[%200, %c0_81, %c0_82] : memref<8x2x8xf32, #tpu.memory_space<vmem>>, vector<1x2x8xf32>
    %202 = vector.shape_cast %201 : vector<1x2x8xf32> to vector<2x8xf32>
    %203 = vector.shape_cast %167 : vector<2x8xf32> to vector<1x2x8xf32>
    tpu.vector_store %arg15[%200, %c0_81, %c0_82], %203 {strides = array<i32>} : memref<8x2x8xf32, #tpu.memory_space<vmem>>, vector<1x2x8xf32>,
    %204 = arith.index_cast %135 : i32 to index
    %c0_83 = arith.constant 0 : index
    %c0_84 = arith.constant 0 : index
    %205 = vector.load %arg16[%204, %c0_83, %c0_84] : memref<8x2x8xf32, #tpu.memory_space<vmem>>, vector<1x2x8xf32>
    %206 = vector.shape_cast %205 : vector<1x2x8xf32> to vector<2x8xf32>
    %207 = vector.shape_cast %199 : vector<2x8xf32> to vector<1x2x8xf32>
    tpu.vector_store %arg16[%204, %c0_83, %c0_84], %207 {strides = array<i32>} : memref<8x2x8xf32, #tpu.memory_space<vmem>>, vector<1x2x8xf32>,
    %c1_i32_85 = arith.constant 1 : i32
    %c7_i32_86 = arith.constant 7 : i32
    %208 = arith.subi %c7_i32_86, %c1_i32_85 : i32
    %209 = arith.index_cast %c1_i32_85 : i32 to index
    %c0_87 = arith.constant 0 : index
    %c0_88 = arith.constant 0 : index
    %210 = vector.load %arg19[%209, %c0_87, %c0_88] : memref<8x2x24xf32, #tpu.memory_space<vmem>>, vector<1x2x24xf32>
    %211 = vector.shape_cast %210 : vector<1x2x24xf32> to vector<2x24xf32>
    %cst_89 = arith.constant dense<0.000000e+00> : vector<2x24xf32>
    %212 = tpu.matmul %167, %131, %cst_89 {dimension_numbers = #tpu.dot_dimension_numbers<[1], [0], [0], [1], [0, 0, 1, 1], [], []>} : vector<2x8xf32>, vector<8x24xf32>, vector<2x24xf32> -> vector<2x24xf32>
    %213 = vector.broadcast %132 : vector<1x24xf32> to vector<2x24xf32>
    %214 = arith.addf %212, %213 : vector<2x24xf32>
    %215 = vector.extract_strided_slice %211 {offsets = [0, 0], sizes = [2, 8], strides = [1, 1]} : vector<2x24xf32> to vector<2x8xf32>
    %216 = vector.extract_strided_slice %214 {offsets = [0, 0], sizes = [2, 8], strides = [1, 1]} : vector<2x24xf32> to vector<2x8xf32>
    %217 = arith.addf %215, %216 : vector<2x8xf32>
    %218 = arith.negf %217 : vector<2x8xf32>
    %219 = math.exp %218 : vector<2x8xf32>
    %cst_90 = arith.constant 1.000000e+00 : f32
    %220 = vector.broadcast %cst_90 : f32 to vector<2x8xf32>
    %221 = arith.addf %220, %219 : vector<2x8xf32>
    %222 = arith.divf %220, %221 : vector<2x8xf32>
    %223 = vector.extract_strided_slice %211 {offsets = [0, 8], sizes = [2, 8], strides = [1, 1]} : vector<2x24xf32> to vector<2x8xf32>
    %224 = vector.extract_strided_slice %214 {offsets = [0, 8], sizes = [2, 8], strides = [1, 1]} : vector<2x24xf32> to vector<2x8xf32>
    %225 = arith.addf %223, %224 : vector<2x8xf32>
    %226 = arith.negf %225 : vector<2x8xf32>
    %227 = math.exp %226 : vector<2x8xf32>
    %cst_91 = arith.constant 1.000000e+00 : f32
    %228 = vector.broadcast %cst_91 : f32 to vector<2x8xf32>
    %229 = arith.addf %228, %227 : vector<2x8xf32>
    %230 = arith.divf %228, %229 : vector<2x8xf32>
    %231 = vector.extract_strided_slice %211 {offsets = [0, 16], sizes = [2, 8], strides = [1, 1]} : vector<2x24xf32> to vector<2x8xf32>
    %232 = vector.extract_strided_slice %214 {offsets = [0, 16], sizes = [2, 8], strides = [1, 1]} : vector<2x24xf32> to vector<2x8xf32>
    %233 = arith.mulf %222, %232 : vector<2x8xf32>
    %234 = arith.addf %231, %233 : vector<2x8xf32>
    %235 = math.tanh %234 : vector<2x8xf32>
    %cst_92 = arith.constant 1.000000e+00 : f32
    %236 = vector.broadcast %cst_92 : f32 to vector<2x8xf32>
    %237 = arith.subf %236, %230 : vector<2x8xf32>
    %238 = arith.mulf %237, %235 : vector<2x8xf32>
    %239 = arith.mulf %230, %167 : vector<2x8xf32>
    %240 = arith.addf %238, %239 : vector<2x8xf32>
    %241 = arith.index_cast %208 : i32 to index
    %c0_93 = arith.constant 0 : index
    %c0_94 = arith.constant 0 : index
    %242 = vector.load %arg20[%241, %c0_93, %c0_94] : memref<8x2x24xf32, #tpu.memory_space<vmem>>, vector<1x2x24xf32>
    %243 = vector.shape_cast %242 : vector<1x2x24xf32> to vector<2x24xf32>
    %cst_95 = arith.constant dense<0.000000e+00> : vector<2x24xf32>
    %244 = tpu.matmul %199, %133, %cst_95 {dimension_numbers = #tpu.dot_dimension_numbers<[1], [0], [0], [1], [0, 0, 1, 1], [], []>} : vector<2x8xf32>, vector<8x24xf32>, vector<2x24xf32> -> vector<2x24xf32>
    %245 = vector.broadcast %134 : vector<1x24xf32> to vector<2x24xf32>
    %246 = arith.addf %244, %245 : vector<2x24xf32>
    %247 = vector.extract_strided_slice %243 {offsets = [0, 0], sizes = [2, 8], strides = [1, 1]} : vector<2x24xf32> to vector<2x8xf32>
    %248 = vector.extract_strided_slice %246 {offsets = [0, 0], sizes = [2, 8], strides = [1, 1]} : vector<2x24xf32> to vector<2x8xf32>
    %249 = arith.addf %247, %248 : vector<2x8xf32>
    %250 = arith.negf %249 : vector<2x8xf32>
    %251 = math.exp %250 : vector<2x8xf32>
    %cst_96 = arith.constant 1.000000e+00 : f32
    %252 = vector.broadcast %cst_96 : f32 to vector<2x8xf32>
    %253 = arith.addf %252, %251 : vector<2x8xf32>
    %254 = arith.divf %252, %253 : vector<2x8xf32>
    %255 = vector.extract_strided_slice %243 {offsets = [0, 8], sizes = [2, 8], strides = [1, 1]} : vector<2x24xf32> to vector<2x8xf32>
    %256 = vector.extract_strided_slice %246 {offsets = [0, 8], sizes = [2, 8], strides = [1, 1]} : vector<2x24xf32> to vector<2x8xf32>
    %257 = arith.addf %255, %256 : vector<2x8xf32>
    %258 = arith.negf %257 : vector<2x8xf32>
    %259 = math.exp %258 : vector<2x8xf32>
    %cst_97 = arith.constant 1.000000e+00 : f32
    %260 = vector.broadcast %cst_97 : f32 to vector<2x8xf32>
    %261 = arith.addf %260, %259 : vector<2x8xf32>
    %262 = arith.divf %260, %261 : vector<2x8xf32>
    %263 = vector.extract_strided_slice %243 {offsets = [0, 16], sizes = [2, 8], strides = [1, 1]} : vector<2x24xf32> to vector<2x8xf32>
    %264 = vector.extract_strided_slice %246 {offsets = [0, 16], sizes = [2, 8], strides = [1, 1]} : vector<2x24xf32> to vector<2x8xf32>
    %265 = arith.mulf %254, %264 : vector<2x8xf32>
    %266 = arith.addf %263, %265 : vector<2x8xf32>
    %267 = math.tanh %266 : vector<2x8xf32>
    %cst_98 = arith.constant 1.000000e+00 : f32
    %268 = vector.broadcast %cst_98 : f32 to vector<2x8xf32>
    %269 = arith.subf %268, %262 : vector<2x8xf32>
    %270 = arith.mulf %269, %267 : vector<2x8xf32>
    %271 = arith.mulf %262, %199 : vector<2x8xf32>
    %272 = arith.addf %270, %271 : vector<2x8xf32>
    %273 = arith.index_cast %c1_i32_85 : i32 to index
    %c0_99 = arith.constant 0 : index
    %c0_100 = arith.constant 0 : index
    %274 = vector.load %arg15[%273, %c0_99, %c0_100] : memref<8x2x8xf32, #tpu.memory_space<vmem>>, vector<1x2x8xf32>
    %275 = vector.shape_cast %274 : vector<1x2x8xf32> to vector<2x8xf32>
    %276 = vector.shape_cast %240 : vector<2x8xf32> to vector<1x2x8xf32>
    tpu.vector_store %arg15[%273, %c0_99, %c0_100], %276 {strides = array<i32>} : memref<8x2x8xf32, #tpu.memory_space<vmem>>, vector<1x2x8xf32>,
    %277 = arith.index_cast %208 : i32 to index
    %c0_101 = arith.constant 0 : index
    %c0_102 = arith.constant 0 : index
    %278 = vector.load %arg16[%277, %c0_101, %c0_102] : memref<8x2x8xf32, #tpu.memory_space<vmem>>, vector<1x2x8xf32>
    %279 = vector.shape_cast %278 : vector<1x2x8xf32> to vector<2x8xf32>
    %280 = vector.shape_cast %272 : vector<2x8xf32> to vector<1x2x8xf32>
    tpu.vector_store %arg16[%277, %c0_101, %c0_102], %280 {strides = array<i32>} : memref<8x2x8xf32, #tpu.memory_space<vmem>>, vector<1x2x8xf32>,
    %c2_i32_103 = arith.constant 2 : i32
    %c7_i32_104 = arith.constant 7 : i32
    %281 = arith.subi %c7_i32_104, %c2_i32_103 : i32
    %282 = arith.index_cast %c2_i32_103 : i32 to index
    %c0_105 = arith.constant 0 : index
    %c0_106 = arith.constant 0 : index
    %283 = vector.load %arg19[%282, %c0_105, %c0_106] : memref<8x2x24xf32, #tpu.memory_space<vmem>>, vector<1x2x24xf32>
    %284 = vector.shape_cast %283 : vector<1x2x24xf32> to vector<2x24xf32>
    %cst_107 = arith.constant dense<0.000000e+00> : vector<2x24xf32>
    %285 = tpu.matmul %240, %131, %cst_107 {dimension_numbers = #tpu.dot_dimension_numbers<[1], [0], [0], [1], [0, 0, 1, 1], [], []>} : vector<2x8xf32>, vector<8x24xf32>, vector<2x24xf32> -> vector<2x24xf32>
    %286 = vector.broadcast %132 : vector<1x24xf32> to vector<2x24xf32>
    %287 = arith.addf %285, %286 : vector<2x24xf32>
    %288 = vector.extract_strided_slice %284 {offsets = [0, 0], sizes = [2, 8], strides = [1, 1]} : vector<2x24xf32> to vector<2x8xf32>
    %289 = vector.extract_strided_slice %287 {offsets = [0, 0], sizes = [2, 8], strides = [1, 1]} : vector<2x24xf32> to vector<2x8xf32>
    %290 = arith.addf %288, %289 : vector<2x8xf32>
    %291 = arith.negf %290 : vector<2x8xf32>
    %292 = math.exp %291 : vector<2x8xf32>
    %cst_108 = arith.constant 1.000000e+00 : f32
    %293 = vector.broadcast %cst_108 : f32 to vector<2x8xf32>
    %294 = arith.addf %293, %292 : vector<2x8xf32>
    %295 = arith.divf %293, %294 : vector<2x8xf32>
    %296 = vector.extract_strided_slice %284 {offsets = [0, 8], sizes = [2, 8], strides = [1, 1]} : vector<2x24xf32> to vector<2x8xf32>
    %297 = vector.extract_strided_slice %287 {offsets = [0, 8], sizes = [2, 8], strides = [1, 1]} : vector<2x24xf32> to vector<2x8xf32>
    %298 = arith.addf %296, %297 : vector<2x8xf32>
    %299 = arith.negf %298 : vector<2x8xf32>
    %300 = math.exp %299 : vector<2x8xf32>
    %cst_109 = arith.constant 1.000000e+00 : f32
    %301 = vector.broadcast %cst_109 : f32 to vector<2x8xf32>
    %302 = arith.addf %301, %300 : vector<2x8xf32>
    %303 = arith.divf %301, %302 : vector<2x8xf32>
    %304 = vector.extract_strided_slice %284 {offsets = [0, 16], sizes = [2, 8], strides = [1, 1]} : vector<2x24xf32> to vector<2x8xf32>
    %305 = vector.extract_strided_slice %287 {offsets = [0, 16], sizes = [2, 8], strides = [1, 1]} : vector<2x24xf32> to vector<2x8xf32>
    %306 = arith.mulf %295, %305 : vector<2x8xf32>
    %307 = arith.addf %304, %306 : vector<2x8xf32>
    %308 = math.tanh %307 : vector<2x8xf32>
    %cst_110 = arith.constant 1.000000e+00 : f32
    %309 = vector.broadcast %cst_110 : f32 to vector<2x8xf32>
    %310 = arith.subf %309, %303 : vector<2x8xf32>
    %311 = arith.mulf %310, %308 : vector<2x8xf32>
    %312 = arith.mulf %303, %240 : vector<2x8xf32>
    %313 = arith.addf %311, %312 : vector<2x8xf32>
    %314 = arith.index_cast %281 : i32 to index
    %c0_111 = arith.constant 0 : index
    %c0_112 = arith.constant 0 : index
    %315 = vector.load %arg20[%314, %c0_111, %c0_112] : memref<8x2x24xf32, #tpu.memory_space<vmem>>, vector<1x2x24xf32>
    %316 = vector.shape_cast %315 : vector<1x2x24xf32> to vector<2x24xf32>
    %cst_113 = arith.constant dense<0.000000e+00> : vector<2x24xf32>
    %317 = tpu.matmul %272, %133, %cst_113 {dimension_numbers = #tpu.dot_dimension_numbers<[1], [0], [0], [1], [0, 0, 1, 1], [], []>} : vector<2x8xf32>, vector<8x24xf32>, vector<2x24xf32> -> vector<2x24xf32>
    %318 = vector.broadcast %134 : vector<1x24xf32> to vector<2x24xf32>
    %319 = arith.addf %317, %318 : vector<2x24xf32>
    %320 = vector.extract_strided_slice %316 {offsets = [0, 0], sizes = [2, 8], strides = [1, 1]} : vector<2x24xf32> to vector<2x8xf32>
    %321 = vector.extract_strided_slice %319 {offsets = [0, 0], sizes = [2, 8], strides = [1, 1]} : vector<2x24xf32> to vector<2x8xf32>
    %322 = arith.addf %320, %321 : vector<2x8xf32>
    %323 = arith.negf %322 : vector<2x8xf32>
    %324 = math.exp %323 : vector<2x8xf32>
    %cst_114 = arith.constant 1.000000e+00 : f32
    %325 = vector.broadcast %cst_114 : f32 to vector<2x8xf32>
    %326 = arith.addf %325, %324 : vector<2x8xf32>
    %327 = arith.divf %325, %326 : vector<2x8xf32>
    %328 = vector.extract_strided_slice %316 {offsets = [0, 8], sizes = [2, 8], strides = [1, 1]} : vector<2x24xf32> to vector<2x8xf32>
    %329 = vector.extract_strided_slice %319 {offsets = [0, 8], sizes = [2, 8], strides = [1, 1]} : vector<2x24xf32> to vector<2x8xf32>
    %330 = arith.addf %328, %329 : vector<2x8xf32>
    %331 = arith.negf %330 : vector<2x8xf32>
    %332 = math.exp %331 : vector<2x8xf32>
    %cst_115 = arith.constant 1.000000e+00 : f32
    %333 = vector.broadcast %cst_115 : f32 to vector<2x8xf32>
    %334 = arith.addf %333, %332 : vector<2x8xf32>
    %335 = arith.divf %333, %334 : vector<2x8xf32>
    %336 = vector.extract_strided_slice %316 {offsets = [0, 16], sizes = [2, 8], strides = [1, 1]} : vector<2x24xf32> to vector<2x8xf32>
    %337 = vector.extract_strided_slice %319 {offsets = [0, 16], sizes = [2, 8], strides = [1, 1]} : vector<2x24xf32> to vector<2x8xf32>
    %338 = arith.mulf %327, %337 : vector<2x8xf32>
    %339 = arith.addf %336, %338 : vector<2x8xf32>
    %340 = math.tanh %339 : vector<2x8xf32>
    %cst_116 = arith.constant 1.000000e+00 : f32
    %341 = vector.broadcast %cst_116 : f32 to vector<2x8xf32>
    %342 = arith.subf %341, %335 : vector<2x8xf32>
    %343 = arith.mulf %342, %340 : vector<2x8xf32>
    %344 = arith.mulf %335, %272 : vector<2x8xf32>
    %345 = arith.addf %343, %344 : vector<2x8xf32>
    %346 = arith.index_cast %c2_i32_103 : i32 to index
    %c0_117 = arith.constant 0 : index
    %c0_118 = arith.constant 0 : index
    %347 = vector.load %arg15[%346, %c0_117, %c0_118] : memref<8x2x8xf32, #tpu.memory_space<vmem>>, vector<1x2x8xf32>
    %348 = vector.shape_cast %347 : vector<1x2x8xf32> to vector<2x8xf32>
    %349 = vector.shape_cast %313 : vector<2x8xf32> to vector<1x2x8xf32>
    tpu.vector_store %arg15[%346, %c0_117, %c0_118], %349 {strides = array<i32>} : memref<8x2x8xf32, #tpu.memory_space<vmem>>, vector<1x2x8xf32>,
    %350 = arith.index_cast %281 : i32 to index
    %c0_119 = arith.constant 0 : index
    %c0_120 = arith.constant 0 : index
    %351 = vector.load %arg16[%350, %c0_119, %c0_120] : memref<8x2x8xf32, #tpu.memory_space<vmem>>, vector<1x2x8xf32>
    %352 = vector.shape_cast %351 : vector<1x2x8xf32> to vector<2x8xf32>
    %353 = vector.shape_cast %345 : vector<2x8xf32> to vector<1x2x8xf32>
    tpu.vector_store %arg16[%350, %c0_119, %c0_120], %353 {strides = array<i32>} : memref<8x2x8xf32, #tpu.memory_space<vmem>>, vector<1x2x8xf32>,
    %c3_i32_121 = arith.constant 3 : i32
    %c7_i32_122 = arith.constant 7 : i32
    %354 = arith.subi %c7_i32_122, %c3_i32_121 : i32
    %355 = arith.index_cast %c3_i32_121 : i32 to index
    %c0_123 = arith.constant 0 : index
    %c0_124 = arith.constant 0 : index
    %356 = vector.load %arg19[%355, %c0_123, %c0_124] : memref<8x2x24xf32, #tpu.memory_space<vmem>>, vector<1x2x24xf32>
    %357 = vector.shape_cast %356 : vector<1x2x24xf32> to vector<2x24xf32>
    %cst_125 = arith.constant dense<0.000000e+00> : vector<2x24xf32>
    %358 = tpu.matmul %313, %131, %cst_125 {dimension_numbers = #tpu.dot_dimension_numbers<[1], [0], [0], [1], [0, 0, 1, 1], [], []>} : vector<2x8xf32>, vector<8x24xf32>, vector<2x24xf32> -> vector<2x24xf32>
    %359 = vector.broadcast %132 : vector<1x24xf32> to vector<2x24xf32>
    %360 = arith.addf %358, %359 : vector<2x24xf32>
    %361 = vector.extract_strided_slice %357 {offsets = [0, 0], sizes = [2, 8], strides = [1, 1]} : vector<2x24xf32> to vector<2x8xf32>
    %362 = vector.extract_strided_slice %360 {offsets = [0, 0], sizes = [2, 8], strides = [1, 1]} : vector<2x24xf32> to vector<2x8xf32>
    %363 = arith.addf %361, %362 : vector<2x8xf32>
    %364 = arith.negf %363 : vector<2x8xf32>
    %365 = math.exp %364 : vector<2x8xf32>
    %cst_126 = arith.constant 1.000000e+00 : f32
    %366 = vector.broadcast %cst_126 : f32 to vector<2x8xf32>
    %367 = arith.addf %366, %365 : vector<2x8xf32>
    %368 = arith.divf %366, %367 : vector<2x8xf32>
    %369 = vector.extract_strided_slice %357 {offsets = [0, 8], sizes = [2, 8], strides = [1, 1]} : vector<2x24xf32> to vector<2x8xf32>
    %370 = vector.extract_strided_slice %360 {offsets = [0, 8], sizes = [2, 8], strides = [1, 1]} : vector<2x24xf32> to vector<2x8xf32>
    %371 = arith.addf %369, %370 : vector<2x8xf32>
    %372 = arith.negf %371 : vector<2x8xf32>
    %373 = math.exp %372 : vector<2x8xf32>
    %cst_127 = arith.constant 1.000000e+00 : f32
    %374 = vector.broadcast %cst_127 : f32 to vector<2x8xf32>
    %375 = arith.addf %374, %373 : vector<2x8xf32>
    %376 = arith.divf %374, %375 : vector<2x8xf32>
    %377 = vector.extract_strided_slice %357 {offsets = [0, 16], sizes = [2, 8], strides = [1, 1]} : vector<2x24xf32> to vector<2x8xf32>
    %378 = vector.extract_strided_slice %360 {offsets = [0, 16], sizes = [2, 8], strides = [1, 1]} : vector<2x24xf32> to vector<2x8xf32>
    %379 = arith.mulf %368, %378 : vector<2x8xf32>
    %380 = arith.addf %377, %379 : vector<2x8xf32>
    %381 = math.tanh %380 : vector<2x8xf32>
    %cst_128 = arith.constant 1.000000e+00 : f32
    %382 = vector.broadcast %cst_128 : f32 to vector<2x8xf32>
    %383 = arith.subf %382, %376 : vector<2x8xf32>
    %384 = arith.mulf %383, %381 : vector<2x8xf32>
    %385 = arith.mulf %376, %313 : vector<2x8xf32>
    %386 = arith.addf %384, %385 : vector<2x8xf32>
    %387 = arith.index_cast %354 : i32 to index
    %c0_129 = arith.constant 0 : index
    %c0_130 = arith.constant 0 : index
    %388 = vector.load %arg20[%387, %c0_129, %c0_130] : memref<8x2x24xf32, #tpu.memory_space<vmem>>, vector<1x2x24xf32>
    %389 = vector.shape_cast %388 : vector<1x2x24xf32> to vector<2x24xf32>
    %cst_131 = arith.constant dense<0.000000e+00> : vector<2x24xf32>
    %390 = tpu.matmul %345, %133, %cst_131 {dimension_numbers = #tpu.dot_dimension_numbers<[1], [0], [0], [1], [0, 0, 1, 1], [], []>} : vector<2x8xf32>, vector<8x24xf32>, vector<2x24xf32> -> vector<2x24xf32>
    %391 = vector.broadcast %134 : vector<1x24xf32> to vector<2x24xf32>
    %392 = arith.addf %390, %391 : vector<2x24xf32>
    %393 = vector.extract_strided_slice %389 {offsets = [0, 0], sizes = [2, 8], strides = [1, 1]} : vector<2x24xf32> to vector<2x8xf32>
    %394 = vector.extract_strided_slice %392 {offsets = [0, 0], sizes = [2, 8], strides = [1, 1]} : vector<2x24xf32> to vector<2x8xf32>
    %395 = arith.addf %393, %394 : vector<2x8xf32>
    %396 = arith.negf %395 : vector<2x8xf32>
    %397 = math.exp %396 : vector<2x8xf32>
    %cst_132 = arith.constant 1.000000e+00 : f32
    %398 = vector.broadcast %cst_132 : f32 to vector<2x8xf32>
    %399 = arith.addf %398, %397 : vector<2x8xf32>
    %400 = arith.divf %398, %399 : vector<2x8xf32>
    %401 = vector.extract_strided_slice %389 {offsets = [0, 8], sizes = [2, 8], strides = [1, 1]} : vector<2x24xf32> to vector<2x8xf32>
    %402 = vector.extract_strided_slice %392 {offsets = [0, 8], sizes = [2, 8], strides = [1, 1]} : vector<2x24xf32> to vector<2x8xf32>
    %403 = arith.addf %401, %402 : vector<2x8xf32>
    %404 = arith.negf %403 : vector<2x8xf32>
    %405 = math.exp %404 : vector<2x8xf32>
    %cst_133 = arith.constant 1.000000e+00 : f32
    %406 = vector.broadcast %cst_133 : f32 to vector<2x8xf32>
    %407 = arith.addf %406, %405 : vector<2x8xf32>
    %408 = arith.divf %406, %407 : vector<2x8xf32>
    %409 = vector.extract_strided_slice %389 {offsets = [0, 16], sizes = [2, 8], strides = [1, 1]} : vector<2x24xf32> to vector<2x8xf32>
    %410 = vector.extract_strided_slice %392 {offsets = [0, 16], sizes = [2, 8], strides = [1, 1]} : vector<2x24xf32> to vector<2x8xf32>
    %411 = arith.mulf %400, %410 : vector<2x8xf32>
    %412 = arith.addf %409, %411 : vector<2x8xf32>
    %413 = math.tanh %412 : vector<2x8xf32>
    %cst_134 = arith.constant 1.000000e+00 : f32
    %414 = vector.broadcast %cst_134 : f32 to vector<2x8xf32>
    %415 = arith.subf %414, %408 : vector<2x8xf32>
    %416 = arith.mulf %415, %413 : vector<2x8xf32>
    %417 = arith.mulf %408, %345 : vector<2x8xf32>
    %418 = arith.addf %416, %417 : vector<2x8xf32>
    %419 = arith.index_cast %c3_i32_121 : i32 to index
    %c0_135 = arith.constant 0 : index
    %c0_136 = arith.constant 0 : index
    %420 = vector.load %arg15[%419, %c0_135, %c0_136] : memref<8x2x8xf32, #tpu.memory_space<vmem>>, vector<1x2x8xf32>
    %421 = vector.shape_cast %420 : vector<1x2x8xf32> to vector<2x8xf32>
    %422 = vector.shape_cast %386 : vector<2x8xf32> to vector<1x2x8xf32>
    tpu.vector_store %arg15[%419, %c0_135, %c0_136], %422 {strides = array<i32>} : memref<8x2x8xf32, #tpu.memory_space<vmem>>, vector<1x2x8xf32>,
    %423 = arith.index_cast %354 : i32 to index
    %c0_137 = arith.constant 0 : index
    %c0_138 = arith.constant 0 : index
    %424 = vector.load %arg16[%423, %c0_137, %c0_138] : memref<8x2x8xf32, #tpu.memory_space<vmem>>, vector<1x2x8xf32>
    %425 = vector.shape_cast %424 : vector<1x2x8xf32> to vector<2x8xf32>
    %426 = vector.shape_cast %418 : vector<2x8xf32> to vector<1x2x8xf32>
    tpu.vector_store %arg16[%423, %c0_137, %c0_138], %426 {strides = array<i32>} : memref<8x2x8xf32, #tpu.memory_space<vmem>>, vector<1x2x8xf32>,
    %c4_i32_139 = arith.constant 4 : i32
    %c7_i32_140 = arith.constant 7 : i32
    %427 = arith.subi %c7_i32_140, %c4_i32_139 : i32
    %428 = arith.index_cast %c4_i32_139 : i32 to index
    %c0_141 = arith.constant 0 : index
    %c0_142 = arith.constant 0 : index
    %429 = vector.load %arg19[%428, %c0_141, %c0_142] : memref<8x2x24xf32, #tpu.memory_space<vmem>>, vector<1x2x24xf32>
    %430 = vector.shape_cast %429 : vector<1x2x24xf32> to vector<2x24xf32>
    %cst_143 = arith.constant dense<0.000000e+00> : vector<2x24xf32>
    %431 = tpu.matmul %386, %131, %cst_143 {dimension_numbers = #tpu.dot_dimension_numbers<[1], [0], [0], [1], [0, 0, 1, 1], [], []>} : vector<2x8xf32>, vector<8x24xf32>, vector<2x24xf32> -> vector<2x24xf32>
    %432 = vector.broadcast %132 : vector<1x24xf32> to vector<2x24xf32>
    %433 = arith.addf %431, %432 : vector<2x24xf32>
    %434 = vector.extract_strided_slice %430 {offsets = [0, 0], sizes = [2, 8], strides = [1, 1]} : vector<2x24xf32> to vector<2x8xf32>
    %435 = vector.extract_strided_slice %433 {offsets = [0, 0], sizes = [2, 8], strides = [1, 1]} : vector<2x24xf32> to vector<2x8xf32>
    %436 = arith.addf %434, %435 : vector<2x8xf32>
    %437 = arith.negf %436 : vector<2x8xf32>
    %438 = math.exp %437 : vector<2x8xf32>
    %cst_144 = arith.constant 1.000000e+00 : f32
    %439 = vector.broadcast %cst_144 : f32 to vector<2x8xf32>
    %440 = arith.addf %439, %438 : vector<2x8xf32>
    %441 = arith.divf %439, %440 : vector<2x8xf32>
    %442 = vector.extract_strided_slice %430 {offsets = [0, 8], sizes = [2, 8], strides = [1, 1]} : vector<2x24xf32> to vector<2x8xf32>
    %443 = vector.extract_strided_slice %433 {offsets = [0, 8], sizes = [2, 8], strides = [1, 1]} : vector<2x24xf32> to vector<2x8xf32>
    %444 = arith.addf %442, %443 : vector<2x8xf32>
    %445 = arith.negf %444 : vector<2x8xf32>
    %446 = math.exp %445 : vector<2x8xf32>
    %cst_145 = arith.constant 1.000000e+00 : f32
    %447 = vector.broadcast %cst_145 : f32 to vector<2x8xf32>
    %448 = arith.addf %447, %446 : vector<2x8xf32>
    %449 = arith.divf %447, %448 : vector<2x8xf32>
    %450 = vector.extract_strided_slice %430 {offsets = [0, 16], sizes = [2, 8], strides = [1, 1]} : vector<2x24xf32> to vector<2x8xf32>
    %451 = vector.extract_strided_slice %433 {offsets = [0, 16], sizes = [2, 8], strides = [1, 1]} : vector<2x24xf32> to vector<2x8xf32>
    %452 = arith.mulf %441, %451 : vector<2x8xf32>
    %453 = arith.addf %450, %452 : vector<2x8xf32>
    %454 = math.tanh %453 : vector<2x8xf32>
    %cst_146 = arith.constant 1.000000e+00 : f32
    %455 = vector.broadcast %cst_146 : f32 to vector<2x8xf32>
    %456 = arith.subf %455, %449 : vector<2x8xf32>
    %457 = arith.mulf %456, %454 : vector<2x8xf32>
    %458 = arith.mulf %449, %386 : vector<2x8xf32>
    %459 = arith.addf %457, %458 : vector<2x8xf32>
    %460 = arith.index_cast %427 : i32 to index
    %c0_147 = arith.constant 0 : index
    %c0_148 = arith.constant 0 : index
    %461 = vector.load %arg20[%460, %c0_147, %c0_148] : memref<8x2x24xf32, #tpu.memory_space<vmem>>, vector<1x2x24xf32>
    %462 = vector.shape_cast %461 : vector<1x2x24xf32> to vector<2x24xf32>
    %cst_149 = arith.constant dense<0.000000e+00> : vector<2x24xf32>
    %463 = tpu.matmul %418, %133, %cst_149 {dimension_numbers = #tpu.dot_dimension_numbers<[1], [0], [0], [1], [0, 0, 1, 1], [], []>} : vector<2x8xf32>, vector<8x24xf32>, vector<2x24xf32> -> vector<2x24xf32>
    %464 = vector.broadcast %134 : vector<1x24xf32> to vector<2x24xf32>
    %465 = arith.addf %463, %464 : vector<2x24xf32>
    %466 = vector.extract_strided_slice %462 {offsets = [0, 0], sizes = [2, 8], strides = [1, 1]} : vector<2x24xf32> to vector<2x8xf32>
    %467 = vector.extract_strided_slice %465 {offsets = [0, 0], sizes = [2, 8], strides = [1, 1]} : vector<2x24xf32> to vector<2x8xf32>
    %468 = arith.addf %466, %467 : vector<2x8xf32>
    %469 = arith.negf %468 : vector<2x8xf32>
    %470 = math.exp %469 : vector<2x8xf32>
    %cst_150 = arith.constant 1.000000e+00 : f32
    %471 = vector.broadcast %cst_150 : f32 to vector<2x8xf32>
    %472 = arith.addf %471, %470 : vector<2x8xf32>
    %473 = arith.divf %471, %472 : vector<2x8xf32>
    %474 = vector.extract_strided_slice %462 {offsets = [0, 8], sizes = [2, 8], strides = [1, 1]} : vector<2x24xf32> to vector<2x8xf32>
    %475 = vector.extract_strided_slice %465 {offsets = [0, 8], sizes = [2, 8], strides = [1, 1]} : vector<2x24xf32> to vector<2x8xf32>
    %476 = arith.addf %474, %475 : vector<2x8xf32>
    %477 = arith.negf %476 : vector<2x8xf32>
    %478 = math.exp %477 : vector<2x8xf32>
    %cst_151 = arith.constant 1.000000e+00 : f32
    %479 = vector.broadcast %cst_151 : f32 to vector<2x8xf32>
    %480 = arith.addf %479, %478 : vector<2x8xf32>
    %481 = arith.divf %479, %480 : vector<2x8xf32>
    %482 = vector.extract_strided_slice %462 {offsets = [0, 16], sizes = [2, 8], strides = [1, 1]} : vector<2x24xf32> to vector<2x8xf32>
    %483 = vector.extract_strided_slice %465 {offsets = [0, 16], sizes = [2, 8], strides = [1, 1]} : vector<2x24xf32> to vector<2x8xf32>
    %484 = arith.mulf %473, %483 : vector<2x8xf32>
    %485 = arith.addf %482, %484 : vector<2x8xf32>
    %486 = math.tanh %485 : vector<2x8xf32>
    %cst_152 = arith.constant 1.000000e+00 : f32
    %487 = vector.broadcast %cst_152 : f32 to vector<2x8xf32>
    %488 = arith.subf %487, %481 : vector<2x8xf32>
    %489 = arith.mulf %488, %486 : vector<2x8xf32>
    %490 = arith.mulf %481, %418 : vector<2x8xf32>
    %491 = arith.addf %489, %490 : vector<2x8xf32>
    %492 = arith.index_cast %c4_i32_139 : i32 to index
    %c0_153 = arith.constant 0 : index
    %c0_154 = arith.constant 0 : index
    %493 = vector.load %arg15[%492, %c0_153, %c0_154] : memref<8x2x8xf32, #tpu.memory_space<vmem>>, vector<1x2x8xf32>
    %494 = vector.shape_cast %493 : vector<1x2x8xf32> to vector<2x8xf32>
    %495 = vector.shape_cast %459 : vector<2x8xf32> to vector<1x2x8xf32>
    tpu.vector_store %arg15[%492, %c0_153, %c0_154], %495 {strides = array<i32>} : memref<8x2x8xf32, #tpu.memory_space<vmem>>, vector<1x2x8xf32>,
    %496 = arith.index_cast %427 : i32 to index
    %c0_155 = arith.constant 0 : index
    %c0_156 = arith.constant 0 : index
    %497 = vector.load %arg16[%496, %c0_155, %c0_156] : memref<8x2x8xf32, #tpu.memory_space<vmem>>, vector<1x2x8xf32>
    %498 = vector.shape_cast %497 : vector<1x2x8xf32> to vector<2x8xf32>
    %499 = vector.shape_cast %491 : vector<2x8xf32> to vector<1x2x8xf32>
    tpu.vector_store %arg16[%496, %c0_155, %c0_156], %499 {strides = array<i32>} : memref<8x2x8xf32, #tpu.memory_space<vmem>>, vector<1x2x8xf32>,
    %c5_i32_157 = arith.constant 5 : i32
    %c7_i32_158 = arith.constant 7 : i32
    %500 = arith.subi %c7_i32_158, %c5_i32_157 : i32
    %501 = arith.index_cast %c5_i32_157 : i32 to index
    %c0_159 = arith.constant 0 : index
    %c0_160 = arith.constant 0 : index
    %502 = vector.load %arg19[%501, %c0_159, %c0_160] : memref<8x2x24xf32, #tpu.memory_space<vmem>>, vector<1x2x24xf32>
    %503 = vector.shape_cast %502 : vector<1x2x24xf32> to vector<2x24xf32>
    %cst_161 = arith.constant dense<0.000000e+00> : vector<2x24xf32>
    %504 = tpu.matmul %459, %131, %cst_161 {dimension_numbers = #tpu.dot_dimension_numbers<[1], [0], [0], [1], [0, 0, 1, 1], [], []>} : vector<2x8xf32>, vector<8x24xf32>, vector<2x24xf32> -> vector<2x24xf32>
    %505 = vector.broadcast %132 : vector<1x24xf32> to vector<2x24xf32>
    %506 = arith.addf %504, %505 : vector<2x24xf32>
    %507 = vector.extract_strided_slice %503 {offsets = [0, 0], sizes = [2, 8], strides = [1, 1]} : vector<2x24xf32> to vector<2x8xf32>
    %508 = vector.extract_strided_slice %506 {offsets = [0, 0], sizes = [2, 8], strides = [1, 1]} : vector<2x24xf32> to vector<2x8xf32>
    %509 = arith.addf %507, %508 : vector<2x8xf32>
    %510 = arith.negf %509 : vector<2x8xf32>
    %511 = math.exp %510 : vector<2x8xf32>
    %cst_162 = arith.constant 1.000000e+00 : f32
    %512 = vector.broadcast %cst_162 : f32 to vector<2x8xf32>
    %513 = arith.addf %512, %511 : vector<2x8xf32>
    %514 = arith.divf %512, %513 : vector<2x8xf32>
    %515 = vector.extract_strided_slice %503 {offsets = [0, 8], sizes = [2, 8], strides = [1, 1]} : vector<2x24xf32> to vector<2x8xf32>
    %516 = vector.extract_strided_slice %506 {offsets = [0, 8], sizes = [2, 8], strides = [1, 1]} : vector<2x24xf32> to vector<2x8xf32>
    %517 = arith.addf %515, %516 : vector<2x8xf32>
    %518 = arith.negf %517 : vector<2x8xf32>
    %519 = math.exp %518 : vector<2x8xf32>
    %cst_163 = arith.constant 1.000000e+00 : f32
    %520 = vector.broadcast %cst_163 : f32 to vector<2x8xf32>
    %521 = arith.addf %520, %519 : vector<2x8xf32>
    %522 = arith.divf %520, %521 : vector<2x8xf32>
    %523 = vector.extract_strided_slice %503 {offsets = [0, 16], sizes = [2, 8], strides = [1, 1]} : vector<2x24xf32> to vector<2x8xf32>
    %524 = vector.extract_strided_slice %506 {offsets = [0, 16], sizes = [2, 8], strides = [1, 1]} : vector<2x24xf32> to vector<2x8xf32>
    %525 = arith.mulf %514, %524 : vector<2x8xf32>
    %526 = arith.addf %523, %525 : vector<2x8xf32>
    %527 = math.tanh %526 : vector<2x8xf32>
    %cst_164 = arith.constant 1.000000e+00 : f32
    %528 = vector.broadcast %cst_164 : f32 to vector<2x8xf32>
    %529 = arith.subf %528, %522 : vector<2x8xf32>
    %530 = arith.mulf %529, %527 : vector<2x8xf32>
    %531 = arith.mulf %522, %459 : vector<2x8xf32>
    %532 = arith.addf %530, %531 : vector<2x8xf32>
    %533 = arith.index_cast %500 : i32 to index
    %c0_165 = arith.constant 0 : index
    %c0_166 = arith.constant 0 : index
    %534 = vector.load %arg20[%533, %c0_165, %c0_166] : memref<8x2x24xf32, #tpu.memory_space<vmem>>, vector<1x2x24xf32>
    %535 = vector.shape_cast %534 : vector<1x2x24xf32> to vector<2x24xf32>
    %cst_167 = arith.constant dense<0.000000e+00> : vector<2x24xf32>
    %536 = tpu.matmul %491, %133, %cst_167 {dimension_numbers = #tpu.dot_dimension_numbers<[1], [0], [0], [1], [0, 0, 1, 1], [], []>} : vector<2x8xf32>, vector<8x24xf32>, vector<2x24xf32> -> vector<2x24xf32>
    %537 = vector.broadcast %134 : vector<1x24xf32> to vector<2x24xf32>
    %538 = arith.addf %536, %537 : vector<2x24xf32>
    %539 = vector.extract_strided_slice %535 {offsets = [0, 0], sizes = [2, 8], strides = [1, 1]} : vector<2x24xf32> to vector<2x8xf32>
    %540 = vector.extract_strided_slice %538 {offsets = [0, 0], sizes = [2, 8], strides = [1, 1]} : vector<2x24xf32> to vector<2x8xf32>
    %541 = arith.addf %539, %540 : vector<2x8xf32>
    %542 = arith.negf %541 : vector<2x8xf32>
    %543 = math.exp %542 : vector<2x8xf32>
    %cst_168 = arith.constant 1.000000e+00 : f32
    %544 = vector.broadcast %cst_168 : f32 to vector<2x8xf32>
    %545 = arith.addf %544, %543 : vector<2x8xf32>
    %546 = arith.divf %544, %545 : vector<2x8xf32>
    %547 = vector.extract_strided_slice %535 {offsets = [0, 8], sizes = [2, 8], strides = [1, 1]} : vector<2x24xf32> to vector<2x8xf32>
    %548 = vector.extract_strided_slice %538 {offsets = [0, 8], sizes = [2, 8], strides = [1, 1]} : vector<2x24xf32> to vector<2x8xf32>
    %549 = arith.addf %547, %548 : vector<2x8xf32>
    %550 = arith.negf %549 : vector<2x8xf32>
    %551 = math.exp %550 : vector<2x8xf32>
    %cst_169 = arith.constant 1.000000e+00 : f32
    %552 = vector.broadcast %cst_169 : f32 to vector<2x8xf32>
    %553 = arith.addf %552, %551 : vector<2x8xf32>
    %554 = arith.divf %552, %553 : vector<2x8xf32>
    %555 = vector.extract_strided_slice %535 {offsets = [0, 16], sizes = [2, 8], strides = [1, 1]} : vector<2x24xf32> to vector<2x8xf32>
    %556 = vector.extract_strided_slice %538 {offsets = [0, 16], sizes = [2, 8], strides = [1, 1]} : vector<2x24xf32> to vector<2x8xf32>
    %557 = arith.mulf %546, %556 : vector<2x8xf32>
    %558 = arith.addf %555, %557 : vector<2x8xf32>
    %559 = math.tanh %558 : vector<2x8xf32>
    %cst_170 = arith.constant 1.000000e+00 : f32
    %560 = vector.broadcast %cst_170 : f32 to vector<2x8xf32>
    %561 = arith.subf %560, %554 : vector<2x8xf32>
    %562 = arith.mulf %561, %559 : vector<2x8xf32>
    %563 = arith.mulf %554, %491 : vector<2x8xf32>
    %564 = arith.addf %562, %563 : vector<2x8xf32>
    %565 = arith.index_cast %c5_i32_157 : i32 to index
    %c0_171 = arith.constant 0 : index
    %c0_172 = arith.constant 0 : index
    %566 = vector.load %arg15[%565, %c0_171, %c0_172] : memref<8x2x8xf32, #tpu.memory_space<vmem>>, vector<1x2x8xf32>
    %567 = vector.shape_cast %566 : vector<1x2x8xf32> to vector<2x8xf32>
    %568 = vector.shape_cast %532 : vector<2x8xf32> to vector<1x2x8xf32>
    tpu.vector_store %arg15[%565, %c0_171, %c0_172], %568 {strides = array<i32>} : memref<8x2x8xf32, #tpu.memory_space<vmem>>, vector<1x2x8xf32>,
    %569 = arith.index_cast %500 : i32 to index
    %c0_173 = arith.constant 0 : index
    %c0_174 = arith.constant 0 : index
    %570 = vector.load %arg16[%569, %c0_173, %c0_174] : memref<8x2x8xf32, #tpu.memory_space<vmem>>, vector<1x2x8xf32>
    %571 = vector.shape_cast %570 : vector<1x2x8xf32> to vector<2x8xf32>
    %572 = vector.shape_cast %564 : vector<2x8xf32> to vector<1x2x8xf32>
    tpu.vector_store %arg16[%569, %c0_173, %c0_174], %572 {strides = array<i32>} : memref<8x2x8xf32, #tpu.memory_space<vmem>>, vector<1x2x8xf32>,
    %c6_i32_175 = arith.constant 6 : i32
    %c7_i32_176 = arith.constant 7 : i32
    %573 = arith.subi %c7_i32_176, %c6_i32_175 : i32
    %574 = arith.index_cast %c6_i32_175 : i32 to index
    %c0_177 = arith.constant 0 : index
    %c0_178 = arith.constant 0 : index
    %575 = vector.load %arg19[%574, %c0_177, %c0_178] : memref<8x2x24xf32, #tpu.memory_space<vmem>>, vector<1x2x24xf32>
    %576 = vector.shape_cast %575 : vector<1x2x24xf32> to vector<2x24xf32>
    %cst_179 = arith.constant dense<0.000000e+00> : vector<2x24xf32>
    %577 = tpu.matmul %532, %131, %cst_179 {dimension_numbers = #tpu.dot_dimension_numbers<[1], [0], [0], [1], [0, 0, 1, 1], [], []>} : vector<2x8xf32>, vector<8x24xf32>, vector<2x24xf32> -> vector<2x24xf32>
    %578 = vector.broadcast %132 : vector<1x24xf32> to vector<2x24xf32>
    %579 = arith.addf %577, %578 : vector<2x24xf32>
    %580 = vector.extract_strided_slice %576 {offsets = [0, 0], sizes = [2, 8], strides = [1, 1]} : vector<2x24xf32> to vector<2x8xf32>
    %581 = vector.extract_strided_slice %579 {offsets = [0, 0], sizes = [2, 8], strides = [1, 1]} : vector<2x24xf32> to vector<2x8xf32>
    %582 = arith.addf %580, %581 : vector<2x8xf32>
    %583 = arith.negf %582 : vector<2x8xf32>
    %584 = math.exp %583 : vector<2x8xf32>
    %cst_180 = arith.constant 1.000000e+00 : f32
    %585 = vector.broadcast %cst_180 : f32 to vector<2x8xf32>
    %586 = arith.addf %585, %584 : vector<2x8xf32>
    %587 = arith.divf %585, %586 : vector<2x8xf32>
    %588 = vector.extract_strided_slice %576 {offsets = [0, 8], sizes = [2, 8], strides = [1, 1]} : vector<2x24xf32> to vector<2x8xf32>
    %589 = vector.extract_strided_slice %579 {offsets = [0, 8], sizes = [2, 8], strides = [1, 1]} : vector<2x24xf32> to vector<2x8xf32>
    %590 = arith.addf %588, %589 : vector<2x8xf32>
    %591 = arith.negf %590 : vector<2x8xf32>
    %592 = math.exp %591 : vector<2x8xf32>
    %cst_181 = arith.constant 1.000000e+00 : f32
    %593 = vector.broadcast %cst_181 : f32 to vector<2x8xf32>
    %594 = arith.addf %593, %592 : vector<2x8xf32>
    %595 = arith.divf %593, %594 : vector<2x8xf32>
    %596 = vector.extract_strided_slice %576 {offsets = [0, 16], sizes = [2, 8], strides = [1, 1]} : vector<2x24xf32> to vector<2x8xf32>
    %597 = vector.extract_strided_slice %579 {offsets = [0, 16], sizes = [2, 8], strides = [1, 1]} : vector<2x24xf32> to vector<2x8xf32>
    %598 = arith.mulf %587, %597 : vector<2x8xf32>
    %599 = arith.addf %596, %598 : vector<2x8xf32>
    %600 = math.tanh %599 : vector<2x8xf32>
    %cst_182 = arith.constant 1.000000e+00 : f32
    %601 = vector.broadcast %cst_182 : f32 to vector<2x8xf32>
    %602 = arith.subf %601, %595 : vector<2x8xf32>
    %603 = arith.mulf %602, %600 : vector<2x8xf32>
    %604 = arith.mulf %595, %532 : vector<2x8xf32>
    %605 = arith.addf %603, %604 : vector<2x8xf32>
    %606 = arith.index_cast %573 : i32 to index
    %c0_183 = arith.constant 0 : index
    %c0_184 = arith.constant 0 : index
    %607 = vector.load %arg20[%606, %c0_183, %c0_184] : memref<8x2x24xf32, #tpu.memory_space<vmem>>, vector<1x2x24xf32>
    %608 = vector.shape_cast %607 : vector<1x2x24xf32> to vector<2x24xf32>
    %cst_185 = arith.constant dense<0.000000e+00> : vector<2x24xf32>
    %609 = tpu.matmul %564, %133, %cst_185 {dimension_numbers = #tpu.dot_dimension_numbers<[1], [0], [0], [1], [0, 0, 1, 1], [], []>} : vector<2x8xf32>, vector<8x24xf32>, vector<2x24xf32> -> vector<2x24xf32>
    %610 = vector.broadcast %134 : vector<1x24xf32> to vector<2x24xf32>
    %611 = arith.addf %609, %610 : vector<2x24xf32>
    %612 = vector.extract_strided_slice %608 {offsets = [0, 0], sizes = [2, 8], strides = [1, 1]} : vector<2x24xf32> to vector<2x8xf32>
    %613 = vector.extract_strided_slice %611 {offsets = [0, 0], sizes = [2, 8], strides = [1, 1]} : vector<2x24xf32> to vector<2x8xf32>
    %614 = arith.addf %612, %613 : vector<2x8xf32>
    %615 = arith.negf %614 : vector<2x8xf32>
    %616 = math.exp %615 : vector<2x8xf32>
    %cst_186 = arith.constant 1.000000e+00 : f32
    %617 = vector.broadcast %cst_186 : f32 to vector<2x8xf32>
    %618 = arith.addf %617, %616 : vector<2x8xf32>
    %619 = arith.divf %617, %618 : vector<2x8xf32>
    %620 = vector.extract_strided_slice %608 {offsets = [0, 8], sizes = [2, 8], strides = [1, 1]} : vector<2x24xf32> to vector<2x8xf32>
    %621 = vector.extract_strided_slice %611 {offsets = [0, 8], sizes = [2, 8], strides = [1, 1]} : vector<2x24xf32> to vector<2x8xf32>
    %622 = arith.addf %620, %621 : vector<2x8xf32>
    %623 = arith.negf %622 : vector<2x8xf32>
    %624 = math.exp %623 : vector<2x8xf32>
    %cst_187 = arith.constant 1.000000e+00 : f32
    %625 = vector.broadcast %cst_187 : f32 to vector<2x8xf32>
    %626 = arith.addf %625, %624 : vector<2x8xf32>
    %627 = arith.divf %625, %626 : vector<2x8xf32>
    %628 = vector.extract_strided_slice %608 {offsets = [0, 16], sizes = [2, 8], strides = [1, 1]} : vector<2x24xf32> to vector<2x8xf32>
    %629 = vector.extract_strided_slice %611 {offsets = [0, 16], sizes = [2, 8], strides = [1, 1]} : vector<2x24xf32> to vector<2x8xf32>
    %630 = arith.mulf %619, %629 : vector<2x8xf32>
    %631 = arith.addf %628, %630 : vector<2x8xf32>
    %632 = math.tanh %631 : vector<2x8xf32>
    %cst_188 = arith.constant 1.000000e+00 : f32
    %633 = vector.broadcast %cst_188 : f32 to vector<2x8xf32>
    %634 = arith.subf %633, %627 : vector<2x8xf32>
    %635 = arith.mulf %634, %632 : vector<2x8xf32>
    %636 = arith.mulf %627, %564 : vector<2x8xf32>
    %637 = arith.addf %635, %636 : vector<2x8xf32>
    %638 = arith.index_cast %c6_i32_175 : i32 to index
    %c0_189 = arith.constant 0 : index
    %c0_190 = arith.constant 0 : index
    %639 = vector.load %arg15[%638, %c0_189, %c0_190] : memref<8x2x8xf32, #tpu.memory_space<vmem>>, vector<1x2x8xf32>
    %640 = vector.shape_cast %639 : vector<1x2x8xf32> to vector<2x8xf32>
    %641 = vector.shape_cast %605 : vector<2x8xf32> to vector<1x2x8xf32>
    tpu.vector_store %arg15[%638, %c0_189, %c0_190], %641 {strides = array<i32>} : memref<8x2x8xf32, #tpu.memory_space<vmem>>, vector<1x2x8xf32>,
    %642 = arith.index_cast %573 : i32 to index
    %c0_191 = arith.constant 0 : index
    %c0_192 = arith.constant 0 : index
    %643 = vector.load %arg16[%642, %c0_191, %c0_192] : memref<8x2x8xf32, #tpu.memory_space<vmem>>, vector<1x2x8xf32>
    %644 = vector.shape_cast %643 : vector<1x2x8xf32> to vector<2x8xf32>
    %645 = vector.shape_cast %637 : vector<2x8xf32> to vector<1x2x8xf32>
    tpu.vector_store %arg16[%642, %c0_191, %c0_192], %645 {strides = array<i32>} : memref<8x2x8xf32, #tpu.memory_space<vmem>>, vector<1x2x8xf32>,
    %c7_i32_193 = arith.constant 7 : i32
    %c7_i32_194 = arith.constant 7 : i32
    %646 = arith.subi %c7_i32_194, %c7_i32_193 : i32
    %647 = arith.index_cast %c7_i32_193 : i32 to index
    %c0_195 = arith.constant 0 : index
    %c0_196 = arith.constant 0 : index
    %648 = vector.load %arg19[%647, %c0_195, %c0_196] : memref<8x2x24xf32, #tpu.memory_space<vmem>>, vector<1x2x24xf32>
    %649 = vector.shape_cast %648 : vector<1x2x24xf32> to vector<2x24xf32>
    %cst_197 = arith.constant dense<0.000000e+00> : vector<2x24xf32>
    %650 = tpu.matmul %605, %131, %cst_197 {dimension_numbers = #tpu.dot_dimension_numbers<[1], [0], [0], [1], [0, 0, 1, 1], [], []>} : vector<2x8xf32>, vector<8x24xf32>, vector<2x24xf32> -> vector<2x24xf32>
    %651 = vector.broadcast %132 : vector<1x24xf32> to vector<2x24xf32>
    %652 = arith.addf %650, %651 : vector<2x24xf32>
    %653 = vector.extract_strided_slice %649 {offsets = [0, 0], sizes = [2, 8], strides = [1, 1]} : vector<2x24xf32> to vector<2x8xf32>
    %654 = vector.extract_strided_slice %652 {offsets = [0, 0], sizes = [2, 8], strides = [1, 1]} : vector<2x24xf32> to vector<2x8xf32>
    %655 = arith.addf %653, %654 : vector<2x8xf32>
    %656 = arith.negf %655 : vector<2x8xf32>
    %657 = math.exp %656 : vector<2x8xf32>
    %cst_198 = arith.constant 1.000000e+00 : f32
    %658 = vector.broadcast %cst_198 : f32 to vector<2x8xf32>
    %659 = arith.addf %658, %657 : vector<2x8xf32>
    %660 = arith.divf %658, %659 : vector<2x8xf32>
    %661 = vector.extract_strided_slice %649 {offsets = [0, 8], sizes = [2, 8], strides = [1, 1]} : vector<2x24xf32> to vector<2x8xf32>
    %662 = vector.extract_strided_slice %652 {offsets = [0, 8], sizes = [2, 8], strides = [1, 1]} : vector<2x24xf32> to vector<2x8xf32>
    %663 = arith.addf %661, %662 : vector<2x8xf32>
    %664 = arith.negf %663 : vector<2x8xf32>
    %665 = math.exp %664 : vector<2x8xf32>
    %cst_199 = arith.constant 1.000000e+00 : f32
    %666 = vector.broadcast %cst_199 : f32 to vector<2x8xf32>
    %667 = arith.addf %666, %665 : vector<2x8xf32>
    %668 = arith.divf %666, %667 : vector<2x8xf32>
    %669 = vector.extract_strided_slice %649 {offsets = [0, 16], sizes = [2, 8], strides = [1, 1]} : vector<2x24xf32> to vector<2x8xf32>
    %670 = vector.extract_strided_slice %652 {offsets = [0, 16], sizes = [2, 8], strides = [1, 1]} : vector<2x24xf32> to vector<2x8xf32>
    %671 = arith.mulf %660, %670 : vector<2x8xf32>
    %672 = arith.addf %669, %671 : vector<2x8xf32>
    %673 = math.tanh %672 : vector<2x8xf32>
    %cst_200 = arith.constant 1.000000e+00 : f32
    %674 = vector.broadcast %cst_200 : f32 to vector<2x8xf32>
    %675 = arith.subf %674, %668 : vector<2x8xf32>
    %676 = arith.mulf %675, %673 : vector<2x8xf32>
    %677 = arith.mulf %668, %605 : vector<2x8xf32>
    %678 = arith.addf %676, %677 : vector<2x8xf32>
    %679 = arith.index_cast %646 : i32 to index
    %c0_201 = arith.constant 0 : index
    %c0_202 = arith.constant 0 : index
    %680 = vector.load %arg20[%679, %c0_201, %c0_202] : memref<8x2x24xf32, #tpu.memory_space<vmem>>, vector<1x2x24xf32>
    %681 = vector.shape_cast %680 : vector<1x2x24xf32> to vector<2x24xf32>
    %cst_203 = arith.constant dense<0.000000e+00> : vector<2x24xf32>
    %682 = tpu.matmul %637, %133, %cst_203 {dimension_numbers = #tpu.dot_dimension_numbers<[1], [0], [0], [1], [0, 0, 1, 1], [], []>} : vector<2x8xf32>, vector<8x24xf32>, vector<2x24xf32> -> vector<2x24xf32>
    %683 = vector.broadcast %134 : vector<1x24xf32> to vector<2x24xf32>
    %684 = arith.addf %682, %683 : vector<2x24xf32>
    %685 = vector.extract_strided_slice %681 {offsets = [0, 0], sizes = [2, 8], strides = [1, 1]} : vector<2x24xf32> to vector<2x8xf32>
    %686 = vector.extract_strided_slice %684 {offsets = [0, 0], sizes = [2, 8], strides = [1, 1]} : vector<2x24xf32> to vector<2x8xf32>
    %687 = arith.addf %685, %686 : vector<2x8xf32>
    %688 = arith.negf %687 : vector<2x8xf32>
    %689 = math.exp %688 : vector<2x8xf32>
    %cst_204 = arith.constant 1.000000e+00 : f32
    %690 = vector.broadcast %cst_204 : f32 to vector<2x8xf32>
    %691 = arith.addf %690, %689 : vector<2x8xf32>
    %692 = arith.divf %690, %691 : vector<2x8xf32>
    %693 = vector.extract_strided_slice %681 {offsets = [0, 8], sizes = [2, 8], strides = [1, 1]} : vector<2x24xf32> to vector<2x8xf32>
    %694 = vector.extract_strided_slice %684 {offsets = [0, 8], sizes = [2, 8], strides = [1, 1]} : vector<2x24xf32> to vector<2x8xf32>
    %695 = arith.addf %693, %694 : vector<2x8xf32>
    %696 = arith.negf %695 : vector<2x8xf32>
    %697 = math.exp %696 : vector<2x8xf32>
    %cst_205 = arith.constant 1.000000e+00 : f32
    %698 = vector.broadcast %cst_205 : f32 to vector<2x8xf32>
    %699 = arith.addf %698, %697 : vector<2x8xf32>
    %700 = arith.divf %698, %699 : vector<2x8xf32>
    %701 = vector.extract_strided_slice %681 {offsets = [0, 16], sizes = [2, 8], strides = [1, 1]} : vector<2x24xf32> to vector<2x8xf32>
    %702 = vector.extract_strided_slice %684 {offsets = [0, 16], sizes = [2, 8], strides = [1, 1]} : vector<2x24xf32> to vector<2x8xf32>
    %703 = arith.mulf %692, %702 : vector<2x8xf32>
    %704 = arith.addf %701, %703 : vector<2x8xf32>
    %705 = math.tanh %704 : vector<2x8xf32>
    %cst_206 = arith.constant 1.000000e+00 : f32
    %706 = vector.broadcast %cst_206 : f32 to vector<2x8xf32>
    %707 = arith.subf %706, %700 : vector<2x8xf32>
    %708 = arith.mulf %707, %705 : vector<2x8xf32>
    %709 = arith.mulf %700, %637 : vector<2x8xf32>
    %710 = arith.addf %708, %709 : vector<2x8xf32>
    %711 = arith.index_cast %c7_i32_193 : i32 to index
    %c0_207 = arith.constant 0 : index
    %c0_208 = arith.constant 0 : index
    %712 = vector.load %arg15[%711, %c0_207, %c0_208] : memref<8x2x8xf32, #tpu.memory_space<vmem>>, vector<1x2x8xf32>
    %713 = vector.shape_cast %712 : vector<1x2x8xf32> to vector<2x8xf32>
    %714 = vector.shape_cast %678 : vector<2x8xf32> to vector<1x2x8xf32>
    tpu.vector_store %arg15[%711, %c0_207, %c0_208], %714 {strides = array<i32>} : memref<8x2x8xf32, #tpu.memory_space<vmem>>, vector<1x2x8xf32>,
    %715 = arith.index_cast %646 : i32 to index
    %c0_209 = arith.constant 0 : index
    %c0_210 = arith.constant 0 : index
    %716 = vector.load %arg16[%715, %c0_209, %c0_210] : memref<8x2x8xf32, #tpu.memory_space<vmem>>, vector<1x2x8xf32>
    %717 = vector.shape_cast %716 : vector<1x2x8xf32> to vector<2x8xf32>
    %718 = vector.shape_cast %710 : vector<2x8xf32> to vector<1x2x8xf32>
    tpu.vector_store %arg16[%715, %c0_209, %c0_210], %718 {strides = array<i32>} : memref<8x2x8xf32, #tpu.memory_space<vmem>>, vector<1x2x8xf32>,
    %c8_i32_211 = arith.constant 8 : i32
    %c0_212 = arith.constant 0 : index
    %c0_213 = arith.constant 0 : index
    %719 = vector.load %arg8[%c0_212, %c0_213] : memref<16x48xf32, #tpu.memory_space<vmem>>, vector<16x48xf32>
    %c0_214 = arith.constant 0 : index
    %c0_215 = arith.constant 0 : index
    %720 = vector.load %arg9[%c0_214, %c0_215] : memref<1x48xf32, #tpu.memory_space<vmem>>, vector<1x48xf32>
    %c0_i32_216 = arith.constant 0 : i32
    %721 = arith.index_cast %c0_i32_216 : i32 to index
    %c0_217 = arith.constant 0 : index
    %c0_218 = arith.constant 0 : index
    %722 = vector.load %arg15[%721, %c0_217, %c0_218] : memref<8x2x8xf32, #tpu.memory_space<vmem>>, vector<1x2x8xf32>
    %723 = vector.shape_cast %722 : vector<1x2x8xf32> to vector<2x8xf32>
    %724 = vector.extract_strided_slice %719 {offsets = [0, 0], sizes = [8, 48], strides = [1, 1]} : vector<16x48xf32> to vector<8x48xf32>
    %cst_219 = arith.constant dense<0.000000e+00> : vector<2x48xf32>
    %725 = tpu.matmul %723, %724, %cst_219 {dimension_numbers = #tpu.dot_dimension_numbers<[1], [0], [0], [1], [0, 0, 1, 1], [], []>} : vector<2x8xf32>, vector<8x48xf32>, vector<2x48xf32> -> vector<2x48xf32>
    %726 = arith.index_cast %c0_i32_216 : i32 to index
    %c0_220 = arith.constant 0 : index
    %c0_221 = arith.constant 0 : index
    %727 = vector.load %arg16[%726, %c0_220, %c0_221] : memref<8x2x8xf32, #tpu.memory_space<vmem>>, vector<1x2x8xf32>
    %728 = vector.shape_cast %727 : vector<1x2x8xf32> to vector<2x8xf32>
    %729 = vector.extract_strided_slice %719 {offsets = [8, 0], sizes = [8, 48], strides = [1, 1]} : vector<16x48xf32> to vector<8x48xf32>
    %cst_222 = arith.constant dense<0.000000e+00> : vector<2x48xf32>
    %730 = tpu.matmul %728, %729, %cst_222 {dimension_numbers = #tpu.dot_dimension_numbers<[1], [0], [0], [1], [0, 0, 1, 1], [], []>} : vector<2x8xf32>, vector<8x48xf32>, vector<2x48xf32> -> vector<2x48xf32>
    %731 = arith.addf %725, %730 : vector<2x48xf32>
    %732 = vector.broadcast %720 : vector<1x48xf32> to vector<2x48xf32>
    %733 = arith.addf %731, %732 : vector<2x48xf32>
    %734 = vector.extract_strided_slice %733 {offsets = [0, 0], sizes = [2, 24], strides = [1, 1]} : vector<2x48xf32> to vector<2x24xf32>
    %735 = arith.index_cast %c0_i32_216 : i32 to index
    %c0_223 = arith.constant 0 : index
    %c0_224 = arith.constant 0 : index
    %736 = vector.load %arg17[%735, %c0_223, %c0_224] : memref<8x2x24xf32, #tpu.memory_space<vmem>>, vector<1x2x24xf32>
    %737 = vector.shape_cast %736 : vector<1x2x24xf32> to vector<2x24xf32>
    %738 = vector.shape_cast %734 : vector<2x24xf32> to vector<1x2x24xf32>
    tpu.vector_store %arg17[%735, %c0_223, %c0_224], %738 {strides = array<i32>} : memref<8x2x24xf32, #tpu.memory_space<vmem>>, vector<1x2x24xf32>,
    %739 = vector.extract_strided_slice %733 {offsets = [0, 24], sizes = [2, 24], strides = [1, 1]} : vector<2x48xf32> to vector<2x24xf32>
    %740 = arith.index_cast %c0_i32_216 : i32 to index
    %c0_225 = arith.constant 0 : index
    %c0_226 = arith.constant 0 : index
    %741 = vector.load %arg18[%740, %c0_225, %c0_226] : memref<8x2x24xf32, #tpu.memory_space<vmem>>, vector<1x2x24xf32>
    %742 = vector.shape_cast %741 : vector<1x2x24xf32> to vector<2x24xf32>
    %743 = vector.shape_cast %739 : vector<2x24xf32> to vector<1x2x24xf32>
    tpu.vector_store %arg18[%740, %c0_225, %c0_226], %743 {strides = array<i32>} : memref<8x2x24xf32, #tpu.memory_space<vmem>>, vector<1x2x24xf32>,
    %c1_i32_227 = arith.constant 1 : i32
    %744 = arith.index_cast %c1_i32_227 : i32 to index
    %c0_228 = arith.constant 0 : index
    %c0_229 = arith.constant 0 : index
    %745 = vector.load %arg15[%744, %c0_228, %c0_229] : memref<8x2x8xf32, #tpu.memory_space<vmem>>, vector<1x2x8xf32>
    %746 = vector.shape_cast %745 : vector<1x2x8xf32> to vector<2x8xf32>
    %747 = vector.extract_strided_slice %719 {offsets = [0, 0], sizes = [8, 48], strides = [1, 1]} : vector<16x48xf32> to vector<8x48xf32>
    %cst_230 = arith.constant dense<0.000000e+00> : vector<2x48xf32>
    %748 = tpu.matmul %746, %747, %cst_230 {dimension_numbers = #tpu.dot_dimension_numbers<[1], [0], [0], [1], [0, 0, 1, 1], [], []>} : vector<2x8xf32>, vector<8x48xf32>, vector<2x48xf32> -> vector<2x48xf32>
    %749 = arith.index_cast %c1_i32_227 : i32 to index
    %c0_231 = arith.constant 0 : index
    %c0_232 = arith.constant 0 : index
    %750 = vector.load %arg16[%749, %c0_231, %c0_232] : memref<8x2x8xf32, #tpu.memory_space<vmem>>, vector<1x2x8xf32>
    %751 = vector.shape_cast %750 : vector<1x2x8xf32> to vector<2x8xf32>
    %752 = vector.extract_strided_slice %719 {offsets = [8, 0], sizes = [8, 48], strides = [1, 1]} : vector<16x48xf32> to vector<8x48xf32>
    %cst_233 = arith.constant dense<0.000000e+00> : vector<2x48xf32>
    %753 = tpu.matmul %751, %752, %cst_233 {dimension_numbers = #tpu.dot_dimension_numbers<[1], [0], [0], [1], [0, 0, 1, 1], [], []>} : vector<2x8xf32>, vector<8x48xf32>, vector<2x48xf32> -> vector<2x48xf32>
    %754 = arith.addf %748, %753 : vector<2x48xf32>
    %755 = vector.broadcast %720 : vector<1x48xf32> to vector<2x48xf32>
    %756 = arith.addf %754, %755 : vector<2x48xf32>
    %757 = vector.extract_strided_slice %756 {offsets = [0, 0], sizes = [2, 24], strides = [1, 1]} : vector<2x48xf32> to vector<2x24xf32>
    %758 = arith.index_cast %c1_i32_227 : i32 to index
    %c0_234 = arith.constant 0 : index
    %c0_235 = arith.constant 0 : index
    %759 = vector.load %arg17[%758, %c0_234, %c0_235] : memref<8x2x24xf32, #tpu.memory_space<vmem>>, vector<1x2x24xf32>
    %760 = vector.shape_cast %759 : vector<1x2x24xf32> to vector<2x24xf32>
    %761 = vector.shape_cast %757 : vector<2x24xf32> to vector<1x2x24xf32>
    tpu.vector_store %arg17[%758, %c0_234, %c0_235], %761 {strides = array<i32>} : memref<8x2x24xf32, #tpu.memory_space<vmem>>, vector<1x2x24xf32>,
    %762 = vector.extract_strided_slice %756 {offsets = [0, 24], sizes = [2, 24], strides = [1, 1]} : vector<2x48xf32> to vector<2x24xf32>
    %763 = arith.index_cast %c1_i32_227 : i32 to index
    %c0_236 = arith.constant 0 : index
    %c0_237 = arith.constant 0 : index
    %764 = vector.load %arg18[%763, %c0_236, %c0_237] : memref<8x2x24xf32, #tpu.memory_space<vmem>>, vector<1x2x24xf32>
    %765 = vector.shape_cast %764 : vector<1x2x24xf32> to vector<2x24xf32>
    %766 = vector.shape_cast %762 : vector<2x24xf32> to vector<1x2x24xf32>
    tpu.vector_store %arg18[%763, %c0_236, %c0_237], %766 {strides = array<i32>} : memref<8x2x24xf32, #tpu.memory_space<vmem>>, vector<1x2x24xf32>,
    %c2_i32_238 = arith.constant 2 : i32
    %767 = arith.index_cast %c2_i32_238 : i32 to index
    %c0_239 = arith.constant 0 : index
    %c0_240 = arith.constant 0 : index
    %768 = vector.load %arg15[%767, %c0_239, %c0_240] : memref<8x2x8xf32, #tpu.memory_space<vmem>>, vector<1x2x8xf32>
    %769 = vector.shape_cast %768 : vector<1x2x8xf32> to vector<2x8xf32>
    %770 = vector.extract_strided_slice %719 {offsets = [0, 0], sizes = [8, 48], strides = [1, 1]} : vector<16x48xf32> to vector<8x48xf32>
    %cst_241 = arith.constant dense<0.000000e+00> : vector<2x48xf32>
    %771 = tpu.matmul %769, %770, %cst_241 {dimension_numbers = #tpu.dot_dimension_numbers<[1], [0], [0], [1], [0, 0, 1, 1], [], []>} : vector<2x8xf32>, vector<8x48xf32>, vector<2x48xf32> -> vector<2x48xf32>
    %772 = arith.index_cast %c2_i32_238 : i32 to index
    %c0_242 = arith.constant 0 : index
    %c0_243 = arith.constant 0 : index
    %773 = vector.load %arg16[%772, %c0_242, %c0_243] : memref<8x2x8xf32, #tpu.memory_space<vmem>>, vector<1x2x8xf32>
    %774 = vector.shape_cast %773 : vector<1x2x8xf32> to vector<2x8xf32>
    %775 = vector.extract_strided_slice %719 {offsets = [8, 0], sizes = [8, 48], strides = [1, 1]} : vector<16x48xf32> to vector<8x48xf32>
    %cst_244 = arith.constant dense<0.000000e+00> : vector<2x48xf32>
    %776 = tpu.matmul %774, %775, %cst_244 {dimension_numbers = #tpu.dot_dimension_numbers<[1], [0], [0], [1], [0, 0, 1, 1], [], []>} : vector<2x8xf32>, vector<8x48xf32>, vector<2x48xf32> -> vector<2x48xf32>
    %777 = arith.addf %771, %776 : vector<2x48xf32>
    %778 = vector.broadcast %720 : vector<1x48xf32> to vector<2x48xf32>
    %779 = arith.addf %777, %778 : vector<2x48xf32>
    %780 = vector.extract_strided_slice %779 {offsets = [0, 0], sizes = [2, 24], strides = [1, 1]} : vector<2x48xf32> to vector<2x24xf32>
    %781 = arith.index_cast %c2_i32_238 : i32 to index
    %c0_245 = arith.constant 0 : index
    %c0_246 = arith.constant 0 : index
    %782 = vector.load %arg17[%781, %c0_245, %c0_246] : memref<8x2x24xf32, #tpu.memory_space<vmem>>, vector<1x2x24xf32>
    %783 = vector.shape_cast %782 : vector<1x2x24xf32> to vector<2x24xf32>
    %784 = vector.shape_cast %780 : vector<2x24xf32> to vector<1x2x24xf32>
    tpu.vector_store %arg17[%781, %c0_245, %c0_246], %784 {strides = array<i32>} : memref<8x2x24xf32, #tpu.memory_space<vmem>>, vector<1x2x24xf32>,
    %785 = vector.extract_strided_slice %779 {offsets = [0, 24], sizes = [2, 24], strides = [1, 1]} : vector<2x48xf32> to vector<2x24xf32>
    %786 = arith.index_cast %c2_i32_238 : i32 to index
    %c0_247 = arith.constant 0 : index
    %c0_248 = arith.constant 0 : index
    %787 = vector.load %arg18[%786, %c0_247, %c0_248] : memref<8x2x24xf32, #tpu.memory_space<vmem>>, vector<1x2x24xf32>
    %788 = vector.shape_cast %787 : vector<1x2x24xf32> to vector<2x24xf32>
    %789 = vector.shape_cast %785 : vector<2x24xf32> to vector<1x2x24xf32>
    tpu.vector_store %arg18[%786, %c0_247, %c0_248], %789 {strides = array<i32>} : memref<8x2x24xf32, #tpu.memory_space<vmem>>, vector<1x2x24xf32>,
    %c3_i32_249 = arith.constant 3 : i32
    %790 = arith.index_cast %c3_i32_249 : i32 to index
    %c0_250 = arith.constant 0 : index
    %c0_251 = arith.constant 0 : index
    %791 = vector.load %arg15[%790, %c0_250, %c0_251] : memref<8x2x8xf32, #tpu.memory_space<vmem>>, vector<1x2x8xf32>
    %792 = vector.shape_cast %791 : vector<1x2x8xf32> to vector<2x8xf32>
    %793 = vector.extract_strided_slice %719 {offsets = [0, 0], sizes = [8, 48], strides = [1, 1]} : vector<16x48xf32> to vector<8x48xf32>
    %cst_252 = arith.constant dense<0.000000e+00> : vector<2x48xf32>
    %794 = tpu.matmul %792, %793, %cst_252 {dimension_numbers = #tpu.dot_dimension_numbers<[1], [0], [0], [1], [0, 0, 1, 1], [], []>} : vector<2x8xf32>, vector<8x48xf32>, vector<2x48xf32> -> vector<2x48xf32>
    %795 = arith.index_cast %c3_i32_249 : i32 to index
    %c0_253 = arith.constant 0 : index
    %c0_254 = arith.constant 0 : index
    %796 = vector.load %arg16[%795, %c0_253, %c0_254] : memref<8x2x8xf32, #tpu.memory_space<vmem>>, vector<1x2x8xf32>
    %797 = vector.shape_cast %796 : vector<1x2x8xf32> to vector<2x8xf32>
    %798 = vector.extract_strided_slice %719 {offsets = [8, 0], sizes = [8, 48], strides = [1, 1]} : vector<16x48xf32> to vector<8x48xf32>
    %cst_255 = arith.constant dense<0.000000e+00> : vector<2x48xf32>
    %799 = tpu.matmul %797, %798, %cst_255 {dimension_numbers = #tpu.dot_dimension_numbers<[1], [0], [0], [1], [0, 0, 1, 1], [], []>} : vector<2x8xf32>, vector<8x48xf32>, vector<2x48xf32> -> vector<2x48xf32>
    %800 = arith.addf %794, %799 : vector<2x48xf32>
    %801 = vector.broadcast %720 : vector<1x48xf32> to vector<2x48xf32>
    %802 = arith.addf %800, %801 : vector<2x48xf32>
    %803 = vector.extract_strided_slice %802 {offsets = [0, 0], sizes = [2, 24], strides = [1, 1]} : vector<2x48xf32> to vector<2x24xf32>
    %804 = arith.index_cast %c3_i32_249 : i32 to index
    %c0_256 = arith.constant 0 : index
    %c0_257 = arith.constant 0 : index
    %805 = vector.load %arg17[%804, %c0_256, %c0_257] : memref<8x2x24xf32, #tpu.memory_space<vmem>>, vector<1x2x24xf32>
    %806 = vector.shape_cast %805 : vector<1x2x24xf32> to vector<2x24xf32>
    %807 = vector.shape_cast %803 : vector<2x24xf32> to vector<1x2x24xf32>
    tpu.vector_store %arg17[%804, %c0_256, %c0_257], %807 {strides = array<i32>} : memref<8x2x24xf32, #tpu.memory_space<vmem>>, vector<1x2x24xf32>,
    %808 = vector.extract_strided_slice %802 {offsets = [0, 24], sizes = [2, 24], strides = [1, 1]} : vector<2x48xf32> to vector<2x24xf32>
    %809 = arith.index_cast %c3_i32_249 : i32 to index
    %c0_258 = arith.constant 0 : index
    %c0_259 = arith.constant 0 : index
    %810 = vector.load %arg18[%809, %c0_258, %c0_259] : memref<8x2x24xf32, #tpu.memory_space<vmem>>, vector<1x2x24xf32>
    %811 = vector.shape_cast %810 : vector<1x2x24xf32> to vector<2x24xf32>
    %812 = vector.shape_cast %808 : vector<2x24xf32> to vector<1x2x24xf32>
    tpu.vector_store %arg18[%809, %c0_258, %c0_259], %812 {strides = array<i32>} : memref<8x2x24xf32, #tpu.memory_space<vmem>>, vector<1x2x24xf32>,
    %c4_i32_260 = arith.constant 4 : i32
    %813 = arith.index_cast %c4_i32_260 : i32 to index
    %c0_261 = arith.constant 0 : index
    %c0_262 = arith.constant 0 : index
    %814 = vector.load %arg15[%813, %c0_261, %c0_262] : memref<8x2x8xf32, #tpu.memory_space<vmem>>, vector<1x2x8xf32>
    %815 = vector.shape_cast %814 : vector<1x2x8xf32> to vector<2x8xf32>
    %816 = vector.extract_strided_slice %719 {offsets = [0, 0], sizes = [8, 48], strides = [1, 1]} : vector<16x48xf32> to vector<8x48xf32>
    %cst_263 = arith.constant dense<0.000000e+00> : vector<2x48xf32>
    %817 = tpu.matmul %815, %816, %cst_263 {dimension_numbers = #tpu.dot_dimension_numbers<[1], [0], [0], [1], [0, 0, 1, 1], [], []>} : vector<2x8xf32>, vector<8x48xf32>, vector<2x48xf32> -> vector<2x48xf32>
    %818 = arith.index_cast %c4_i32_260 : i32 to index
    %c0_264 = arith.constant 0 : index
    %c0_265 = arith.constant 0 : index
    %819 = vector.load %arg16[%818, %c0_264, %c0_265] : memref<8x2x8xf32, #tpu.memory_space<vmem>>, vector<1x2x8xf32>
    %820 = vector.shape_cast %819 : vector<1x2x8xf32> to vector<2x8xf32>
    %821 = vector.extract_strided_slice %719 {offsets = [8, 0], sizes = [8, 48], strides = [1, 1]} : vector<16x48xf32> to vector<8x48xf32>
    %cst_266 = arith.constant dense<0.000000e+00> : vector<2x48xf32>
    %822 = tpu.matmul %820, %821, %cst_266 {dimension_numbers = #tpu.dot_dimension_numbers<[1], [0], [0], [1], [0, 0, 1, 1], [], []>} : vector<2x8xf32>, vector<8x48xf32>, vector<2x48xf32> -> vector<2x48xf32>
    %823 = arith.addf %817, %822 : vector<2x48xf32>
    %824 = vector.broadcast %720 : vector<1x48xf32> to vector<2x48xf32>
    %825 = arith.addf %823, %824 : vector<2x48xf32>
    %826 = vector.extract_strided_slice %825 {offsets = [0, 0], sizes = [2, 24], strides = [1, 1]} : vector<2x48xf32> to vector<2x24xf32>
    %827 = arith.index_cast %c4_i32_260 : i32 to index
    %c0_267 = arith.constant 0 : index
    %c0_268 = arith.constant 0 : index
    %828 = vector.load %arg17[%827, %c0_267, %c0_268] : memref<8x2x24xf32, #tpu.memory_space<vmem>>, vector<1x2x24xf32>
    %829 = vector.shape_cast %828 : vector<1x2x24xf32> to vector<2x24xf32>
    %830 = vector.shape_cast %826 : vector<2x24xf32> to vector<1x2x24xf32>
    tpu.vector_store %arg17[%827, %c0_267, %c0_268], %830 {strides = array<i32>} : memref<8x2x24xf32, #tpu.memory_space<vmem>>, vector<1x2x24xf32>,
    %831 = vector.extract_strided_slice %825 {offsets = [0, 24], sizes = [2, 24], strides = [1, 1]} : vector<2x48xf32> to vector<2x24xf32>
    %832 = arith.index_cast %c4_i32_260 : i32 to index
    %c0_269 = arith.constant 0 : index
    %c0_270 = arith.constant 0 : index
    %833 = vector.load %arg18[%832, %c0_269, %c0_270] : memref<8x2x24xf32, #tpu.memory_space<vmem>>, vector<1x2x24xf32>
    %834 = vector.shape_cast %833 : vector<1x2x24xf32> to vector<2x24xf32>
    %835 = vector.shape_cast %831 : vector<2x24xf32> to vector<1x2x24xf32>
    tpu.vector_store %arg18[%832, %c0_269, %c0_270], %835 {strides = array<i32>} : memref<8x2x24xf32, #tpu.memory_space<vmem>>, vector<1x2x24xf32>,
    %c5_i32_271 = arith.constant 5 : i32
    %836 = arith.index_cast %c5_i32_271 : i32 to index
    %c0_272 = arith.constant 0 : index
    %c0_273 = arith.constant 0 : index
    %837 = vector.load %arg15[%836, %c0_272, %c0_273] : memref<8x2x8xf32, #tpu.memory_space<vmem>>, vector<1x2x8xf32>
    %838 = vector.shape_cast %837 : vector<1x2x8xf32> to vector<2x8xf32>
    %839 = vector.extract_strided_slice %719 {offsets = [0, 0], sizes = [8, 48], strides = [1, 1]} : vector<16x48xf32> to vector<8x48xf32>
    %cst_274 = arith.constant dense<0.000000e+00> : vector<2x48xf32>
    %840 = tpu.matmul %838, %839, %cst_274 {dimension_numbers = #tpu.dot_dimension_numbers<[1], [0], [0], [1], [0, 0, 1, 1], [], []>} : vector<2x8xf32>, vector<8x48xf32>, vector<2x48xf32> -> vector<2x48xf32>
    %841 = arith.index_cast %c5_i32_271 : i32 to index
    %c0_275 = arith.constant 0 : index
    %c0_276 = arith.constant 0 : index
    %842 = vector.load %arg16[%841, %c0_275, %c0_276] : memref<8x2x8xf32, #tpu.memory_space<vmem>>, vector<1x2x8xf32>
    %843 = vector.shape_cast %842 : vector<1x2x8xf32> to vector<2x8xf32>
    %844 = vector.extract_strided_slice %719 {offsets = [8, 0], sizes = [8, 48], strides = [1, 1]} : vector<16x48xf32> to vector<8x48xf32>
    %cst_277 = arith.constant dense<0.000000e+00> : vector<2x48xf32>
    %845 = tpu.matmul %843, %844, %cst_277 {dimension_numbers = #tpu.dot_dimension_numbers<[1], [0], [0], [1], [0, 0, 1, 1], [], []>} : vector<2x8xf32>, vector<8x48xf32>, vector<2x48xf32> -> vector<2x48xf32>
    %846 = arith.addf %840, %845 : vector<2x48xf32>
    %847 = vector.broadcast %720 : vector<1x48xf32> to vector<2x48xf32>
    %848 = arith.addf %846, %847 : vector<2x48xf32>
    %849 = vector.extract_strided_slice %848 {offsets = [0, 0], sizes = [2, 24], strides = [1, 1]} : vector<2x48xf32> to vector<2x24xf32>
    %850 = arith.index_cast %c5_i32_271 : i32 to index
    %c0_278 = arith.constant 0 : index
    %c0_279 = arith.constant 0 : index
    %851 = vector.load %arg17[%850, %c0_278, %c0_279] : memref<8x2x24xf32, #tpu.memory_space<vmem>>, vector<1x2x24xf32>
    %852 = vector.shape_cast %851 : vector<1x2x24xf32> to vector<2x24xf32>
    %853 = vector.shape_cast %849 : vector<2x24xf32> to vector<1x2x24xf32>
    tpu.vector_store %arg17[%850, %c0_278, %c0_279], %853 {strides = array<i32>} : memref<8x2x24xf32, #tpu.memory_space<vmem>>, vector<1x2x24xf32>,
    %854 = vector.extract_strided_slice %848 {offsets = [0, 24], sizes = [2, 24], strides = [1, 1]} : vector<2x48xf32> to vector<2x24xf32>
    %855 = arith.index_cast %c5_i32_271 : i32 to index
    %c0_280 = arith.constant 0 : index
    %c0_281 = arith.constant 0 : index
    %856 = vector.load %arg18[%855, %c0_280, %c0_281] : memref<8x2x24xf32, #tpu.memory_space<vmem>>, vector<1x2x24xf32>
    %857 = vector.shape_cast %856 : vector<1x2x24xf32> to vector<2x24xf32>
    %858 = vector.shape_cast %854 : vector<2x24xf32> to vector<1x2x24xf32>
    tpu.vector_store %arg18[%855, %c0_280, %c0_281], %858 {strides = array<i32>} : memref<8x2x24xf32, #tpu.memory_space<vmem>>, vector<1x2x24xf32>,
    %c6_i32_282 = arith.constant 6 : i32
    %859 = arith.index_cast %c6_i32_282 : i32 to index
    %c0_283 = arith.constant 0 : index
    %c0_284 = arith.constant 0 : index
    %860 = vector.load %arg15[%859, %c0_283, %c0_284] : memref<8x2x8xf32, #tpu.memory_space<vmem>>, vector<1x2x8xf32>
    %861 = vector.shape_cast %860 : vector<1x2x8xf32> to vector<2x8xf32>
    %862 = vector.extract_strided_slice %719 {offsets = [0, 0], sizes = [8, 48], strides = [1, 1]} : vector<16x48xf32> to vector<8x48xf32>
    %cst_285 = arith.constant dense<0.000000e+00> : vector<2x48xf32>
    %863 = tpu.matmul %861, %862, %cst_285 {dimension_numbers = #tpu.dot_dimension_numbers<[1], [0], [0], [1], [0, 0, 1, 1], [], []>} : vector<2x8xf32>, vector<8x48xf32>, vector<2x48xf32> -> vector<2x48xf32>
    %864 = arith.index_cast %c6_i32_282 : i32 to index
    %c0_286 = arith.constant 0 : index
    %c0_287 = arith.constant 0 : index
    %865 = vector.load %arg16[%864, %c0_286, %c0_287] : memref<8x2x8xf32, #tpu.memory_space<vmem>>, vector<1x2x8xf32>
    %866 = vector.shape_cast %865 : vector<1x2x8xf32> to vector<2x8xf32>
    %867 = vector.extract_strided_slice %719 {offsets = [8, 0], sizes = [8, 48], strides = [1, 1]} : vector<16x48xf32> to vector<8x48xf32>
    %cst_288 = arith.constant dense<0.000000e+00> : vector<2x48xf32>
    %868 = tpu.matmul %866, %867, %cst_288 {dimension_numbers = #tpu.dot_dimension_numbers<[1], [0], [0], [1], [0, 0, 1, 1], [], []>} : vector<2x8xf32>, vector<8x48xf32>, vector<2x48xf32> -> vector<2x48xf32>
    %869 = arith.addf %863, %868 : vector<2x48xf32>
    %870 = vector.broadcast %720 : vector<1x48xf32> to vector<2x48xf32>
    %871 = arith.addf %869, %870 : vector<2x48xf32>
    %872 = vector.extract_strided_slice %871 {offsets = [0, 0], sizes = [2, 24], strides = [1, 1]} : vector<2x48xf32> to vector<2x24xf32>
    %873 = arith.index_cast %c6_i32_282 : i32 to index
    %c0_289 = arith.constant 0 : index
    %c0_290 = arith.constant 0 : index
    %874 = vector.load %arg17[%873, %c0_289, %c0_290] : memref<8x2x24xf32, #tpu.memory_space<vmem>>, vector<1x2x24xf32>
    %875 = vector.shape_cast %874 : vector<1x2x24xf32> to vector<2x24xf32>
    %876 = vector.shape_cast %872 : vector<2x24xf32> to vector<1x2x24xf32>
    tpu.vector_store %arg17[%873, %c0_289, %c0_290], %876 {strides = array<i32>} : memref<8x2x24xf32, #tpu.memory_space<vmem>>, vector<1x2x24xf32>,
    %877 = vector.extract_strided_slice %871 {offsets = [0, 24], sizes = [2, 24], strides = [1, 1]} : vector<2x48xf32> to vector<2x24xf32>
    %878 = arith.index_cast %c6_i32_282 : i32 to index
    %c0_291 = arith.constant 0 : index
    %c0_292 = arith.constant 0 : index
    %879 = vector.load %arg18[%878, %c0_291, %c0_292] : memref<8x2x24xf32, #tpu.memory_space<vmem>>, vector<1x2x24xf32>
    %880 = vector.shape_cast %879 : vector<1x2x24xf32> to vector<2x24xf32>
    %881 = vector.shape_cast %877 : vector<2x24xf32> to vector<1x2x24xf32>
    tpu.vector_store %arg18[%878, %c0_291, %c0_292], %881 {strides = array<i32>} : memref<8x2x24xf32, #tpu.memory_space<vmem>>, vector<1x2x24xf32>,
    %c7_i32_293 = arith.constant 7 : i32
    %882 = arith.index_cast %c7_i32_293 : i32 to index
    %c0_294 = arith.constant 0 : index
    %c0_295 = arith.constant 0 : index
    %883 = vector.load %arg15[%882, %c0_294, %c0_295] : memref<8x2x8xf32, #tpu.memory_space<vmem>>, vector<1x2x8xf32>
    %884 = vector.shape_cast %883 : vector<1x2x8xf32> to vector<2x8xf32>
    %885 = vector.extract_strided_slice %719 {offsets = [0, 0], sizes = [8, 48], strides = [1, 1]} : vector<16x48xf32> to vector<8x48xf32>
    %cst_296 = arith.constant dense<0.000000e+00> : vector<2x48xf32>
    %886 = tpu.matmul %884, %885, %cst_296 {dimension_numbers = #tpu.dot_dimension_numbers<[1], [0], [0], [1], [0, 0, 1, 1], [], []>} : vector<2x8xf32>, vector<8x48xf32>, vector<2x48xf32> -> vector<2x48xf32>
    %887 = arith.index_cast %c7_i32_293 : i32 to index
    %c0_297 = arith.constant 0 : index
    %c0_298 = arith.constant 0 : index
    %888 = vector.load %arg16[%887, %c0_297, %c0_298] : memref<8x2x8xf32, #tpu.memory_space<vmem>>, vector<1x2x8xf32>
    %889 = vector.shape_cast %888 : vector<1x2x8xf32> to vector<2x8xf32>
    %890 = vector.extract_strided_slice %719 {offsets = [8, 0], sizes = [8, 48], strides = [1, 1]} : vector<16x48xf32> to vector<8x48xf32>
    %cst_299 = arith.constant dense<0.000000e+00> : vector<2x48xf32>
    %891 = tpu.matmul %889, %890, %cst_299 {dimension_numbers = #tpu.dot_dimension_numbers<[1], [0], [0], [1], [0, 0, 1, 1], [], []>} : vector<2x8xf32>, vector<8x48xf32>, vector<2x48xf32> -> vector<2x48xf32>
    %892 = arith.addf %886, %891 : vector<2x48xf32>
    %893 = vector.broadcast %720 : vector<1x48xf32> to vector<2x48xf32>
    %894 = arith.addf %892, %893 : vector<2x48xf32>
    %895 = vector.extract_strided_slice %894 {offsets = [0, 0], sizes = [2, 24], strides = [1, 1]} : vector<2x48xf32> to vector<2x24xf32>
    %896 = arith.index_cast %c7_i32_293 : i32 to index
    %c0_300 = arith.constant 0 : index
    %c0_301 = arith.constant 0 : index
    %897 = vector.load %arg17[%896, %c0_300, %c0_301] : memref<8x2x24xf32, #tpu.memory_space<vmem>>, vector<1x2x24xf32>
    %898 = vector.shape_cast %897 : vector<1x2x24xf32> to vector<2x24xf32>
    %899 = vector.shape_cast %895 : vector<2x24xf32> to vector<1x2x24xf32>
    tpu.vector_store %arg17[%896, %c0_300, %c0_301], %899 {strides = array<i32>} : memref<8x2x24xf32, #tpu.memory_space<vmem>>, vector<1x2x24xf32>,
    %900 = vector.extract_strided_slice %894 {offsets = [0, 24], sizes = [2, 24], strides = [1, 1]} : vector<2x48xf32> to vector<2x24xf32>
    %901 = arith.index_cast %c7_i32_293 : i32 to index
    %c0_302 = arith.constant 0 : index
    %c0_303 = arith.constant 0 : index
    %902 = vector.load %arg18[%901, %c0_302, %c0_303] : memref<8x2x24xf32, #tpu.memory_space<vmem>>, vector<1x2x24xf32>
    %903 = vector.shape_cast %902 : vector<1x2x24xf32> to vector<2x24xf32>
    %904 = vector.shape_cast %900 : vector<2x24xf32> to vector<1x2x24xf32>
    tpu.vector_store %arg18[%901, %c0_302, %c0_303], %904 {strides = array<i32>} : memref<8x2x24xf32, #tpu.memory_space<vmem>>, vector<1x2x24xf32>,
    %c8_i32_304 = arith.constant 8 : i32
    %c0_305 = arith.constant 0 : index
    %c0_306 = arith.constant 0 : index
    %905 = vector.load %arg10[%c0_305, %c0_306] : memref<8x24xf32, #tpu.memory_space<vmem>>, vector<8x24xf32>
    %c0_307 = arith.constant 0 : index
    %c0_308 = arith.constant 0 : index
    %906 = vector.load %arg11[%c0_307, %c0_308] : memref<1x24xf32, #tpu.memory_space<vmem>>, vector<1x24xf32>
    %c0_309 = arith.constant 0 : index
    %c0_310 = arith.constant 0 : index
    %907 = vector.load %arg12[%c0_309, %c0_310] : memref<8x24xf32, #tpu.memory_space<vmem>>, vector<8x24xf32>
    %c0_311 = arith.constant 0 : index
    %c0_312 = arith.constant 0 : index
    %908 = vector.load %arg13[%c0_311, %c0_312] : memref<1x24xf32, #tpu.memory_space<vmem>>, vector<1x24xf32>
    %c0_i32_313 = arith.constant 0 : i32
    %c7_i32_314 = arith.constant 7 : i32
    %909 = arith.subi %c7_i32_314, %c0_i32_313 : i32
    %910 = arith.index_cast %c0_i32_313 : i32 to index
    %c0_315 = arith.constant 0 : index
    %c0_316 = arith.constant 0 : index
    %911 = vector.load %arg17[%910, %c0_315, %c0_316] : memref<8x2x24xf32, #tpu.memory_space<vmem>>, vector<1x2x24xf32>
    %912 = vector.shape_cast %911 : vector<1x2x24xf32> to vector<2x24xf32>
    %cst_317 = arith.constant dense<0.000000e+00> : vector<2x24xf32>
    %913 = tpu.matmul %130, %905, %cst_317 {dimension_numbers = #tpu.dot_dimension_numbers<[1], [0], [0], [1], [0, 0, 1, 1], [], []>} : vector<2x8xf32>, vector<8x24xf32>, vector<2x24xf32> -> vector<2x24xf32>
    %914 = vector.broadcast %906 : vector<1x24xf32> to vector<2x24xf32>
    %915 = arith.addf %913, %914 : vector<2x24xf32>
    %916 = vector.extract_strided_slice %912 {offsets = [0, 0], sizes = [2, 8], strides = [1, 1]} : vector<2x24xf32> to vector<2x8xf32>
    %917 = vector.extract_strided_slice %915 {offsets = [0, 0], sizes = [2, 8], strides = [1, 1]} : vector<2x24xf32> to vector<2x8xf32>
    %918 = arith.addf %916, %917 : vector<2x8xf32>
    %919 = arith.negf %918 : vector<2x8xf32>
    %920 = math.exp %919 : vector<2x8xf32>
    %cst_318 = arith.constant 1.000000e+00 : f32
    %921 = vector.broadcast %cst_318 : f32 to vector<2x8xf32>
    %922 = arith.addf %921, %920 : vector<2x8xf32>
    %923 = arith.divf %921, %922 : vector<2x8xf32>
    %924 = vector.extract_strided_slice %912 {offsets = [0, 8], sizes = [2, 8], strides = [1, 1]} : vector<2x24xf32> to vector<2x8xf32>
    %925 = vector.extract_strided_slice %915 {offsets = [0, 8], sizes = [2, 8], strides = [1, 1]} : vector<2x24xf32> to vector<2x8xf32>
    %926 = arith.addf %924, %925 : vector<2x8xf32>
    %927 = arith.negf %926 : vector<2x8xf32>
    %928 = math.exp %927 : vector<2x8xf32>
    %cst_319 = arith.constant 1.000000e+00 : f32
    %929 = vector.broadcast %cst_319 : f32 to vector<2x8xf32>
    %930 = arith.addf %929, %928 : vector<2x8xf32>
    %931 = arith.divf %929, %930 : vector<2x8xf32>
    %932 = vector.extract_strided_slice %912 {offsets = [0, 16], sizes = [2, 8], strides = [1, 1]} : vector<2x24xf32> to vector<2x8xf32>
    %933 = vector.extract_strided_slice %915 {offsets = [0, 16], sizes = [2, 8], strides = [1, 1]} : vector<2x24xf32> to vector<2x8xf32>
    %934 = arith.mulf %923, %933 : vector<2x8xf32>
    %935 = arith.addf %932, %934 : vector<2x8xf32>
    %936 = math.tanh %935 : vector<2x8xf32>
    %cst_320 = arith.constant 1.000000e+00 : f32
    %937 = vector.broadcast %cst_320 : f32 to vector<2x8xf32>
    %938 = arith.subf %937, %931 : vector<2x8xf32>
    %939 = arith.mulf %938, %936 : vector<2x8xf32>
    %940 = arith.mulf %931, %130 : vector<2x8xf32>
    %941 = arith.addf %939, %940 : vector<2x8xf32>
    %942 = arith.index_cast %909 : i32 to index
    %c0_321 = arith.constant 0 : index
    %c0_322 = arith.constant 0 : index
    %943 = vector.load %arg18[%942, %c0_321, %c0_322] : memref<8x2x24xf32, #tpu.memory_space<vmem>>, vector<1x2x24xf32>
    %944 = vector.shape_cast %943 : vector<1x2x24xf32> to vector<2x24xf32>
    %cst_323 = arith.constant dense<0.000000e+00> : vector<2x24xf32>
    %945 = tpu.matmul %130, %907, %cst_323 {dimension_numbers = #tpu.dot_dimension_numbers<[1], [0], [0], [1], [0, 0, 1, 1], [], []>} : vector<2x8xf32>, vector<8x24xf32>, vector<2x24xf32> -> vector<2x24xf32>
    %946 = vector.broadcast %908 : vector<1x24xf32> to vector<2x24xf32>
    %947 = arith.addf %945, %946 : vector<2x24xf32>
    %948 = vector.extract_strided_slice %944 {offsets = [0, 0], sizes = [2, 8], strides = [1, 1]} : vector<2x24xf32> to vector<2x8xf32>
    %949 = vector.extract_strided_slice %947 {offsets = [0, 0], sizes = [2, 8], strides = [1, 1]} : vector<2x24xf32> to vector<2x8xf32>
    %950 = arith.addf %948, %949 : vector<2x8xf32>
    %951 = arith.negf %950 : vector<2x8xf32>
    %952 = math.exp %951 : vector<2x8xf32>
    %cst_324 = arith.constant 1.000000e+00 : f32
    %953 = vector.broadcast %cst_324 : f32 to vector<2x8xf32>
    %954 = arith.addf %953, %952 : vector<2x8xf32>
    %955 = arith.divf %953, %954 : vector<2x8xf32>
    %956 = vector.extract_strided_slice %944 {offsets = [0, 8], sizes = [2, 8], strides = [1, 1]} : vector<2x24xf32> to vector<2x8xf32>
    %957 = vector.extract_strided_slice %947 {offsets = [0, 8], sizes = [2, 8], strides = [1, 1]} : vector<2x24xf32> to vector<2x8xf32>
    %958 = arith.addf %956, %957 : vector<2x8xf32>
    %959 = arith.negf %958 : vector<2x8xf32>
    %960 = math.exp %959 : vector<2x8xf32>
    %cst_325 = arith.constant 1.000000e+00 : f32
    %961 = vector.broadcast %cst_325 : f32 to vector<2x8xf32>
    %962 = arith.addf %961, %960 : vector<2x8xf32>
    %963 = arith.divf %961, %962 : vector<2x8xf32>
    %964 = vector.extract_strided_slice %944 {offsets = [0, 16], sizes = [2, 8], strides = [1, 1]} : vector<2x24xf32> to vector<2x8xf32>
    %965 = vector.extract_strided_slice %947 {offsets = [0, 16], sizes = [2, 8], strides = [1, 1]} : vector<2x24xf32> to vector<2x8xf32>
    %966 = arith.mulf %955, %965 : vector<2x8xf32>
    %967 = arith.addf %964, %966 : vector<2x8xf32>
    %968 = math.tanh %967 : vector<2x8xf32>
    %cst_326 = arith.constant 1.000000e+00 : f32
    %969 = vector.broadcast %cst_326 : f32 to vector<2x8xf32>
    %970 = arith.subf %969, %963 : vector<2x8xf32>
    %971 = arith.mulf %970, %968 : vector<2x8xf32>
    %972 = arith.mulf %963, %130 : vector<2x8xf32>
    %973 = arith.addf %971, %972 : vector<2x8xf32>
    %c1_i32_327 = arith.constant 1 : i32
    %c7_i32_328 = arith.constant 7 : i32
    %974 = arith.subi %c7_i32_328, %c1_i32_327 : i32
    %975 = arith.index_cast %c1_i32_327 : i32 to index
    %c0_329 = arith.constant 0 : index
    %c0_330 = arith.constant 0 : index
    %976 = vector.load %arg17[%975, %c0_329, %c0_330] : memref<8x2x24xf32, #tpu.memory_space<vmem>>, vector<1x2x24xf32>
    %977 = vector.shape_cast %976 : vector<1x2x24xf32> to vector<2x24xf32>
    %cst_331 = arith.constant dense<0.000000e+00> : vector<2x24xf32>
    %978 = tpu.matmul %941, %905, %cst_331 {dimension_numbers = #tpu.dot_dimension_numbers<[1], [0], [0], [1], [0, 0, 1, 1], [], []>} : vector<2x8xf32>, vector<8x24xf32>, vector<2x24xf32> -> vector<2x24xf32>
    %979 = vector.broadcast %906 : vector<1x24xf32> to vector<2x24xf32>
    %980 = arith.addf %978, %979 : vector<2x24xf32>
    %981 = vector.extract_strided_slice %977 {offsets = [0, 0], sizes = [2, 8], strides = [1, 1]} : vector<2x24xf32> to vector<2x8xf32>
    %982 = vector.extract_strided_slice %980 {offsets = [0, 0], sizes = [2, 8], strides = [1, 1]} : vector<2x24xf32> to vector<2x8xf32>
    %983 = arith.addf %981, %982 : vector<2x8xf32>
    %984 = arith.negf %983 : vector<2x8xf32>
    %985 = math.exp %984 : vector<2x8xf32>
    %cst_332 = arith.constant 1.000000e+00 : f32
    %986 = vector.broadcast %cst_332 : f32 to vector<2x8xf32>
    %987 = arith.addf %986, %985 : vector<2x8xf32>
    %988 = arith.divf %986, %987 : vector<2x8xf32>
    %989 = vector.extract_strided_slice %977 {offsets = [0, 8], sizes = [2, 8], strides = [1, 1]} : vector<2x24xf32> to vector<2x8xf32>
    %990 = vector.extract_strided_slice %980 {offsets = [0, 8], sizes = [2, 8], strides = [1, 1]} : vector<2x24xf32> to vector<2x8xf32>
    %991 = arith.addf %989, %990 : vector<2x8xf32>
    %992 = arith.negf %991 : vector<2x8xf32>
    %993 = math.exp %992 : vector<2x8xf32>
    %cst_333 = arith.constant 1.000000e+00 : f32
    %994 = vector.broadcast %cst_333 : f32 to vector<2x8xf32>
    %995 = arith.addf %994, %993 : vector<2x8xf32>
    %996 = arith.divf %994, %995 : vector<2x8xf32>
    %997 = vector.extract_strided_slice %977 {offsets = [0, 16], sizes = [2, 8], strides = [1, 1]} : vector<2x24xf32> to vector<2x8xf32>
    %998 = vector.extract_strided_slice %980 {offsets = [0, 16], sizes = [2, 8], strides = [1, 1]} : vector<2x24xf32> to vector<2x8xf32>
    %999 = arith.mulf %988, %998 : vector<2x8xf32>
    %1000 = arith.addf %997, %999 : vector<2x8xf32>
    %1001 = math.tanh %1000 : vector<2x8xf32>
    %cst_334 = arith.constant 1.000000e+00 : f32
    %1002 = vector.broadcast %cst_334 : f32 to vector<2x8xf32>
    %1003 = arith.subf %1002, %996 : vector<2x8xf32>
    %1004 = arith.mulf %1003, %1001 : vector<2x8xf32>
    %1005 = arith.mulf %996, %941 : vector<2x8xf32>
    %1006 = arith.addf %1004, %1005 : vector<2x8xf32>
    %1007 = arith.index_cast %974 : i32 to index
    %c0_335 = arith.constant 0 : index
    %c0_336 = arith.constant 0 : index
    %1008 = vector.load %arg18[%1007, %c0_335, %c0_336] : memref<8x2x24xf32, #tpu.memory_space<vmem>>, vector<1x2x24xf32>
    %1009 = vector.shape_cast %1008 : vector<1x2x24xf32> to vector<2x24xf32>
    %cst_337 = arith.constant dense<0.000000e+00> : vector<2x24xf32>
    %1010 = tpu.matmul %973, %907, %cst_337 {dimension_numbers = #tpu.dot_dimension_numbers<[1], [0], [0], [1], [0, 0, 1, 1], [], []>} : vector<2x8xf32>, vector<8x24xf32>, vector<2x24xf32> -> vector<2x24xf32>
    %1011 = vector.broadcast %908 : vector<1x24xf32> to vector<2x24xf32>
    %1012 = arith.addf %1010, %1011 : vector<2x24xf32>
    %1013 = vector.extract_strided_slice %1009 {offsets = [0, 0], sizes = [2, 8], strides = [1, 1]} : vector<2x24xf32> to vector<2x8xf32>
    %1014 = vector.extract_strided_slice %1012 {offsets = [0, 0], sizes = [2, 8], strides = [1, 1]} : vector<2x24xf32> to vector<2x8xf32>
    %1015 = arith.addf %1013, %1014 : vector<2x8xf32>
    %1016 = arith.negf %1015 : vector<2x8xf32>
    %1017 = math.exp %1016 : vector<2x8xf32>
    %cst_338 = arith.constant 1.000000e+00 : f32
    %1018 = vector.broadcast %cst_338 : f32 to vector<2x8xf32>
    %1019 = arith.addf %1018, %1017 : vector<2x8xf32>
    %1020 = arith.divf %1018, %1019 : vector<2x8xf32>
    %1021 = vector.extract_strided_slice %1009 {offsets = [0, 8], sizes = [2, 8], strides = [1, 1]} : vector<2x24xf32> to vector<2x8xf32>
    %1022 = vector.extract_strided_slice %1012 {offsets = [0, 8], sizes = [2, 8], strides = [1, 1]} : vector<2x24xf32> to vector<2x8xf32>
    %1023 = arith.addf %1021, %1022 : vector<2x8xf32>
    %1024 = arith.negf %1023 : vector<2x8xf32>
    %1025 = math.exp %1024 : vector<2x8xf32>
    %cst_339 = arith.constant 1.000000e+00 : f32
    %1026 = vector.broadcast %cst_339 : f32 to vector<2x8xf32>
    %1027 = arith.addf %1026, %1025 : vector<2x8xf32>
    %1028 = arith.divf %1026, %1027 : vector<2x8xf32>
    %1029 = vector.extract_strided_slice %1009 {offsets = [0, 16], sizes = [2, 8], strides = [1, 1]} : vector<2x24xf32> to vector<2x8xf32>
    %1030 = vector.extract_strided_slice %1012 {offsets = [0, 16], sizes = [2, 8], strides = [1, 1]} : vector<2x24xf32> to vector<2x8xf32>
    %1031 = arith.mulf %1020, %1030 : vector<2x8xf32>
    %1032 = arith.addf %1029, %1031 : vector<2x8xf32>
    %1033 = math.tanh %1032 : vector<2x8xf32>
    %cst_340 = arith.constant 1.000000e+00 : f32
    %1034 = vector.broadcast %cst_340 : f32 to vector<2x8xf32>
    %1035 = arith.subf %1034, %1028 : vector<2x8xf32>
    %1036 = arith.mulf %1035, %1033 : vector<2x8xf32>
    %1037 = arith.mulf %1028, %973 : vector<2x8xf32>
    %1038 = arith.addf %1036, %1037 : vector<2x8xf32>
    %c2_i32_341 = arith.constant 2 : i32
    %c7_i32_342 = arith.constant 7 : i32
    %1039 = arith.subi %c7_i32_342, %c2_i32_341 : i32
    %1040 = arith.index_cast %c2_i32_341 : i32 to index
    %c0_343 = arith.constant 0 : index
    %c0_344 = arith.constant 0 : index
    %1041 = vector.load %arg17[%1040, %c0_343, %c0_344] : memref<8x2x24xf32, #tpu.memory_space<vmem>>, vector<1x2x24xf32>
    %1042 = vector.shape_cast %1041 : vector<1x2x24xf32> to vector<2x24xf32>
    %cst_345 = arith.constant dense<0.000000e+00> : vector<2x24xf32>
    %1043 = tpu.matmul %1006, %905, %cst_345 {dimension_numbers = #tpu.dot_dimension_numbers<[1], [0], [0], [1], [0, 0, 1, 1], [], []>} : vector<2x8xf32>, vector<8x24xf32>, vector<2x24xf32> -> vector<2x24xf32>
    %1044 = vector.broadcast %906 : vector<1x24xf32> to vector<2x24xf32>
    %1045 = arith.addf %1043, %1044 : vector<2x24xf32>
    %1046 = vector.extract_strided_slice %1042 {offsets = [0, 0], sizes = [2, 8], strides = [1, 1]} : vector<2x24xf32> to vector<2x8xf32>
    %1047 = vector.extract_strided_slice %1045 {offsets = [0, 0], sizes = [2, 8], strides = [1, 1]} : vector<2x24xf32> to vector<2x8xf32>
    %1048 = arith.addf %1046, %1047 : vector<2x8xf32>
    %1049 = arith.negf %1048 : vector<2x8xf32>
    %1050 = math.exp %1049 : vector<2x8xf32>
    %cst_346 = arith.constant 1.000000e+00 : f32
    %1051 = vector.broadcast %cst_346 : f32 to vector<2x8xf32>
    %1052 = arith.addf %1051, %1050 : vector<2x8xf32>
    %1053 = arith.divf %1051, %1052 : vector<2x8xf32>
    %1054 = vector.extract_strided_slice %1042 {offsets = [0, 8], sizes = [2, 8], strides = [1, 1]} : vector<2x24xf32> to vector<2x8xf32>
    %1055 = vector.extract_strided_slice %1045 {offsets = [0, 8], sizes = [2, 8], strides = [1, 1]} : vector<2x24xf32> to vector<2x8xf32>
    %1056 = arith.addf %1054, %1055 : vector<2x8xf32>
    %1057 = arith.negf %1056 : vector<2x8xf32>
    %1058 = math.exp %1057 : vector<2x8xf32>
    %cst_347 = arith.constant 1.000000e+00 : f32
    %1059 = vector.broadcast %cst_347 : f32 to vector<2x8xf32>
    %1060 = arith.addf %1059, %1058 : vector<2x8xf32>
    %1061 = arith.divf %1059, %1060 : vector<2x8xf32>
    %1062 = vector.extract_strided_slice %1042 {offsets = [0, 16], sizes = [2, 8], strides = [1, 1]} : vector<2x24xf32> to vector<2x8xf32>
    %1063 = vector.extract_strided_slice %1045 {offsets = [0, 16], sizes = [2, 8], strides = [1, 1]} : vector<2x24xf32> to vector<2x8xf32>
    %1064 = arith.mulf %1053, %1063 : vector<2x8xf32>
    %1065 = arith.addf %1062, %1064 : vector<2x8xf32>
    %1066 = math.tanh %1065 : vector<2x8xf32>
    %cst_348 = arith.constant 1.000000e+00 : f32
    %1067 = vector.broadcast %cst_348 : f32 to vector<2x8xf32>
    %1068 = arith.subf %1067, %1061 : vector<2x8xf32>
    %1069 = arith.mulf %1068, %1066 : vector<2x8xf32>
    %1070 = arith.mulf %1061, %1006 : vector<2x8xf32>
    %1071 = arith.addf %1069, %1070 : vector<2x8xf32>
    %1072 = arith.index_cast %1039 : i32 to index
    %c0_349 = arith.constant 0 : index
    %c0_350 = arith.constant 0 : index
    %1073 = vector.load %arg18[%1072, %c0_349, %c0_350] : memref<8x2x24xf32, #tpu.memory_space<vmem>>, vector<1x2x24xf32>
    %1074 = vector.shape_cast %1073 : vector<1x2x24xf32> to vector<2x24xf32>
    %cst_351 = arith.constant dense<0.000000e+00> : vector<2x24xf32>
    %1075 = tpu.matmul %1038, %907, %cst_351 {dimension_numbers = #tpu.dot_dimension_numbers<[1], [0], [0], [1], [0, 0, 1, 1], [], []>} : vector<2x8xf32>, vector<8x24xf32>, vector<2x24xf32> -> vector<2x24xf32>
    %1076 = vector.broadcast %908 : vector<1x24xf32> to vector<2x24xf32>
    %1077 = arith.addf %1075, %1076 : vector<2x24xf32>
    %1078 = vector.extract_strided_slice %1074 {offsets = [0, 0], sizes = [2, 8], strides = [1, 1]} : vector<2x24xf32> to vector<2x8xf32>
    %1079 = vector.extract_strided_slice %1077 {offsets = [0, 0], sizes = [2, 8], strides = [1, 1]} : vector<2x24xf32> to vector<2x8xf32>
    %1080 = arith.addf %1078, %1079 : vector<2x8xf32>
    %1081 = arith.negf %1080 : vector<2x8xf32>
    %1082 = math.exp %1081 : vector<2x8xf32>
    %cst_352 = arith.constant 1.000000e+00 : f32
    %1083 = vector.broadcast %cst_352 : f32 to vector<2x8xf32>
    %1084 = arith.addf %1083, %1082 : vector<2x8xf32>
    %1085 = arith.divf %1083, %1084 : vector<2x8xf32>
    %1086 = vector.extract_strided_slice %1074 {offsets = [0, 8], sizes = [2, 8], strides = [1, 1]} : vector<2x24xf32> to vector<2x8xf32>
    %1087 = vector.extract_strided_slice %1077 {offsets = [0, 8], sizes = [2, 8], strides = [1, 1]} : vector<2x24xf32> to vector<2x8xf32>
    %1088 = arith.addf %1086, %1087 : vector<2x8xf32>
    %1089 = arith.negf %1088 : vector<2x8xf32>
    %1090 = math.exp %1089 : vector<2x8xf32>
    %cst_353 = arith.constant 1.000000e+00 : f32
    %1091 = vector.broadcast %cst_353 : f32 to vector<2x8xf32>
    %1092 = arith.addf %1091, %1090 : vector<2x8xf32>
    %1093 = arith.divf %1091, %1092 : vector<2x8xf32>
    %1094 = vector.extract_strided_slice %1074 {offsets = [0, 16], sizes = [2, 8], strides = [1, 1]} : vector<2x24xf32> to vector<2x8xf32>
    %1095 = vector.extract_strided_slice %1077 {offsets = [0, 16], sizes = [2, 8], strides = [1, 1]} : vector<2x24xf32> to vector<2x8xf32>
    %1096 = arith.mulf %1085, %1095 : vector<2x8xf32>
    %1097 = arith.addf %1094, %1096 : vector<2x8xf32>
    %1098 = math.tanh %1097 : vector<2x8xf32>
    %cst_354 = arith.constant 1.000000e+00 : f32
    %1099 = vector.broadcast %cst_354 : f32 to vector<2x8xf32>
    %1100 = arith.subf %1099, %1093 : vector<2x8xf32>
    %1101 = arith.mulf %1100, %1098 : vector<2x8xf32>
    %1102 = arith.mulf %1093, %1038 : vector<2x8xf32>
    %1103 = arith.addf %1101, %1102 : vector<2x8xf32>
    %c3_i32_355 = arith.constant 3 : i32
    %c7_i32_356 = arith.constant 7 : i32
    %1104 = arith.subi %c7_i32_356, %c3_i32_355 : i32
    %1105 = arith.index_cast %c3_i32_355 : i32 to index
    %c0_357 = arith.constant 0 : index
    %c0_358 = arith.constant 0 : index
    %1106 = vector.load %arg17[%1105, %c0_357, %c0_358] : memref<8x2x24xf32, #tpu.memory_space<vmem>>, vector<1x2x24xf32>
    %1107 = vector.shape_cast %1106 : vector<1x2x24xf32> to vector<2x24xf32>
    %cst_359 = arith.constant dense<0.000000e+00> : vector<2x24xf32>
    %1108 = tpu.matmul %1071, %905, %cst_359 {dimension_numbers = #tpu.dot_dimension_numbers<[1], [0], [0], [1], [0, 0, 1, 1], [], []>} : vector<2x8xf32>, vector<8x24xf32>, vector<2x24xf32> -> vector<2x24xf32>
    %1109 = vector.broadcast %906 : vector<1x24xf32> to vector<2x24xf32>
    %1110 = arith.addf %1108, %1109 : vector<2x24xf32>
    %1111 = vector.extract_strided_slice %1107 {offsets = [0, 0], sizes = [2, 8], strides = [1, 1]} : vector<2x24xf32> to vector<2x8xf32>
    %1112 = vector.extract_strided_slice %1110 {offsets = [0, 0], sizes = [2, 8], strides = [1, 1]} : vector<2x24xf32> to vector<2x8xf32>
    %1113 = arith.addf %1111, %1112 : vector<2x8xf32>
    %1114 = arith.negf %1113 : vector<2x8xf32>
    %1115 = math.exp %1114 : vector<2x8xf32>
    %cst_360 = arith.constant 1.000000e+00 : f32
    %1116 = vector.broadcast %cst_360 : f32 to vector<2x8xf32>
    %1117 = arith.addf %1116, %1115 : vector<2x8xf32>
    %1118 = arith.divf %1116, %1117 : vector<2x8xf32>
    %1119 = vector.extract_strided_slice %1107 {offsets = [0, 8], sizes = [2, 8], strides = [1, 1]} : vector<2x24xf32> to vector<2x8xf32>
    %1120 = vector.extract_strided_slice %1110 {offsets = [0, 8], sizes = [2, 8], strides = [1, 1]} : vector<2x24xf32> to vector<2x8xf32>
    %1121 = arith.addf %1119, %1120 : vector<2x8xf32>
    %1122 = arith.negf %1121 : vector<2x8xf32>
    %1123 = math.exp %1122 : vector<2x8xf32>
    %cst_361 = arith.constant 1.000000e+00 : f32
    %1124 = vector.broadcast %cst_361 : f32 to vector<2x8xf32>
    %1125 = arith.addf %1124, %1123 : vector<2x8xf32>
    %1126 = arith.divf %1124, %1125 : vector<2x8xf32>
    %1127 = vector.extract_strided_slice %1107 {offsets = [0, 16], sizes = [2, 8], strides = [1, 1]} : vector<2x24xf32> to vector<2x8xf32>
    %1128 = vector.extract_strided_slice %1110 {offsets = [0, 16], sizes = [2, 8], strides = [1, 1]} : vector<2x24xf32> to vector<2x8xf32>
    %1129 = arith.mulf %1118, %1128 : vector<2x8xf32>
    %1130 = arith.addf %1127, %1129 : vector<2x8xf32>
    %1131 = math.tanh %1130 : vector<2x8xf32>
    %cst_362 = arith.constant 1.000000e+00 : f32
    %1132 = vector.broadcast %cst_362 : f32 to vector<2x8xf32>
    %1133 = arith.subf %1132, %1126 : vector<2x8xf32>
    %1134 = arith.mulf %1133, %1131 : vector<2x8xf32>
    %1135 = arith.mulf %1126, %1071 : vector<2x8xf32>
    %1136 = arith.addf %1134, %1135 : vector<2x8xf32>
    %1137 = arith.index_cast %1104 : i32 to index
    %c0_363 = arith.constant 0 : index
    %c0_364 = arith.constant 0 : index
    %1138 = vector.load %arg18[%1137, %c0_363, %c0_364] : memref<8x2x24xf32, #tpu.memory_space<vmem>>, vector<1x2x24xf32>
    %1139 = vector.shape_cast %1138 : vector<1x2x24xf32> to vector<2x24xf32>
    %cst_365 = arith.constant dense<0.000000e+00> : vector<2x24xf32>
    %1140 = tpu.matmul %1103, %907, %cst_365 {dimension_numbers = #tpu.dot_dimension_numbers<[1], [0], [0], [1], [0, 0, 1, 1], [], []>} : vector<2x8xf32>, vector<8x24xf32>, vector<2x24xf32> -> vector<2x24xf32>
    %1141 = vector.broadcast %908 : vector<1x24xf32> to vector<2x24xf32>
    %1142 = arith.addf %1140, %1141 : vector<2x24xf32>
    %1143 = vector.extract_strided_slice %1139 {offsets = [0, 0], sizes = [2, 8], strides = [1, 1]} : vector<2x24xf32> to vector<2x8xf32>
    %1144 = vector.extract_strided_slice %1142 {offsets = [0, 0], sizes = [2, 8], strides = [1, 1]} : vector<2x24xf32> to vector<2x8xf32>
    %1145 = arith.addf %1143, %1144 : vector<2x8xf32>
    %1146 = arith.negf %1145 : vector<2x8xf32>
    %1147 = math.exp %1146 : vector<2x8xf32>
    %cst_366 = arith.constant 1.000000e+00 : f32
    %1148 = vector.broadcast %cst_366 : f32 to vector<2x8xf32>
    %1149 = arith.addf %1148, %1147 : vector<2x8xf32>
    %1150 = arith.divf %1148, %1149 : vector<2x8xf32>
    %1151 = vector.extract_strided_slice %1139 {offsets = [0, 8], sizes = [2, 8], strides = [1, 1]} : vector<2x24xf32> to vector<2x8xf32>
    %1152 = vector.extract_strided_slice %1142 {offsets = [0, 8], sizes = [2, 8], strides = [1, 1]} : vector<2x24xf32> to vector<2x8xf32>
    %1153 = arith.addf %1151, %1152 : vector<2x8xf32>
    %1154 = arith.negf %1153 : vector<2x8xf32>
    %1155 = math.exp %1154 : vector<2x8xf32>
    %cst_367 = arith.constant 1.000000e+00 : f32
    %1156 = vector.broadcast %cst_367 : f32 to vector<2x8xf32>
    %1157 = arith.addf %1156, %1155 : vector<2x8xf32>
    %1158 = arith.divf %1156, %1157 : vector<2x8xf32>
    %1159 = vector.extract_strided_slice %1139 {offsets = [0, 16], sizes = [2, 8], strides = [1, 1]} : vector<2x24xf32> to vector<2x8xf32>
    %1160 = vector.extract_strided_slice %1142 {offsets = [0, 16], sizes = [2, 8], strides = [1, 1]} : vector<2x24xf32> to vector<2x8xf32>
    %1161 = arith.mulf %1150, %1160 : vector<2x8xf32>
    %1162 = arith.addf %1159, %1161 : vector<2x8xf32>
    %1163 = math.tanh %1162 : vector<2x8xf32>
    %cst_368 = arith.constant 1.000000e+00 : f32
    %1164 = vector.broadcast %cst_368 : f32 to vector<2x8xf32>
    %1165 = arith.subf %1164, %1158 : vector<2x8xf32>
    %1166 = arith.mulf %1165, %1163 : vector<2x8xf32>
    %1167 = arith.mulf %1158, %1103 : vector<2x8xf32>
    %1168 = arith.addf %1166, %1167 : vector<2x8xf32>
    %c4_i32_369 = arith.constant 4 : i32
    %c7_i32_370 = arith.constant 7 : i32
    %1169 = arith.subi %c7_i32_370, %c4_i32_369 : i32
    %1170 = arith.index_cast %c4_i32_369 : i32 to index
    %c0_371 = arith.constant 0 : index
    %c0_372 = arith.constant 0 : index
    %1171 = vector.load %arg17[%1170, %c0_371, %c0_372] : memref<8x2x24xf32, #tpu.memory_space<vmem>>, vector<1x2x24xf32>
    %1172 = vector.shape_cast %1171 : vector<1x2x24xf32> to vector<2x24xf32>
    %cst_373 = arith.constant dense<0.000000e+00> : vector<2x24xf32>
    %1173 = tpu.matmul %1136, %905, %cst_373 {dimension_numbers = #tpu.dot_dimension_numbers<[1], [0], [0], [1], [0, 0, 1, 1], [], []>} : vector<2x8xf32>, vector<8x24xf32>, vector<2x24xf32> -> vector<2x24xf32>
    %1174 = vector.broadcast %906 : vector<1x24xf32> to vector<2x24xf32>
    %1175 = arith.addf %1173, %1174 : vector<2x24xf32>
    %1176 = vector.extract_strided_slice %1172 {offsets = [0, 0], sizes = [2, 8], strides = [1, 1]} : vector<2x24xf32> to vector<2x8xf32>
    %1177 = vector.extract_strided_slice %1175 {offsets = [0, 0], sizes = [2, 8], strides = [1, 1]} : vector<2x24xf32> to vector<2x8xf32>
    %1178 = arith.addf %1176, %1177 : vector<2x8xf32>
    %1179 = arith.negf %1178 : vector<2x8xf32>
    %1180 = math.exp %1179 : vector<2x8xf32>
    %cst_374 = arith.constant 1.000000e+00 : f32
    %1181 = vector.broadcast %cst_374 : f32 to vector<2x8xf32>
    %1182 = arith.addf %1181, %1180 : vector<2x8xf32>
    %1183 = arith.divf %1181, %1182 : vector<2x8xf32>
    %1184 = vector.extract_strided_slice %1172 {offsets = [0, 8], sizes = [2, 8], strides = [1, 1]} : vector<2x24xf32> to vector<2x8xf32>
    %1185 = vector.extract_strided_slice %1175 {offsets = [0, 8], sizes = [2, 8], strides = [1, 1]} : vector<2x24xf32> to vector<2x8xf32>
    %1186 = arith.addf %1184, %1185 : vector<2x8xf32>
    %1187 = arith.negf %1186 : vector<2x8xf32>
    %1188 = math.exp %1187 : vector<2x8xf32>
    %cst_375 = arith.constant 1.000000e+00 : f32
    %1189 = vector.broadcast %cst_375 : f32 to vector<2x8xf32>
    %1190 = arith.addf %1189, %1188 : vector<2x8xf32>
    %1191 = arith.divf %1189, %1190 : vector<2x8xf32>
    %1192 = vector.extract_strided_slice %1172 {offsets = [0, 16], sizes = [2, 8], strides = [1, 1]} : vector<2x24xf32> to vector<2x8xf32>
    %1193 = vector.extract_strided_slice %1175 {offsets = [0, 16], sizes = [2, 8], strides = [1, 1]} : vector<2x24xf32> to vector<2x8xf32>
    %1194 = arith.mulf %1183, %1193 : vector<2x8xf32>
    %1195 = arith.addf %1192, %1194 : vector<2x8xf32>
    %1196 = math.tanh %1195 : vector<2x8xf32>
    %cst_376 = arith.constant 1.000000e+00 : f32
    %1197 = vector.broadcast %cst_376 : f32 to vector<2x8xf32>
    %1198 = arith.subf %1197, %1191 : vector<2x8xf32>
    %1199 = arith.mulf %1198, %1196 : vector<2x8xf32>
    %1200 = arith.mulf %1191, %1136 : vector<2x8xf32>
    %1201 = arith.addf %1199, %1200 : vector<2x8xf32>
    %1202 = arith.index_cast %1169 : i32 to index
    %c0_377 = arith.constant 0 : index
    %c0_378 = arith.constant 0 : index
    %1203 = vector.load %arg18[%1202, %c0_377, %c0_378] : memref<8x2x24xf32, #tpu.memory_space<vmem>>, vector<1x2x24xf32>
    %1204 = vector.shape_cast %1203 : vector<1x2x24xf32> to vector<2x24xf32>
    %cst_379 = arith.constant dense<0.000000e+00> : vector<2x24xf32>
    %1205 = tpu.matmul %1168, %907, %cst_379 {dimension_numbers = #tpu.dot_dimension_numbers<[1], [0], [0], [1], [0, 0, 1, 1], [], []>} : vector<2x8xf32>, vector<8x24xf32>, vector<2x24xf32> -> vector<2x24xf32>
    %1206 = vector.broadcast %908 : vector<1x24xf32> to vector<2x24xf32>
    %1207 = arith.addf %1205, %1206 : vector<2x24xf32>
    %1208 = vector.extract_strided_slice %1204 {offsets = [0, 0], sizes = [2, 8], strides = [1, 1]} : vector<2x24xf32> to vector<2x8xf32>
    %1209 = vector.extract_strided_slice %1207 {offsets = [0, 0], sizes = [2, 8], strides = [1, 1]} : vector<2x24xf32> to vector<2x8xf32>
    %1210 = arith.addf %1208, %1209 : vector<2x8xf32>
    %1211 = arith.negf %1210 : vector<2x8xf32>
    %1212 = math.exp %1211 : vector<2x8xf32>
    %cst_380 = arith.constant 1.000000e+00 : f32
    %1213 = vector.broadcast %cst_380 : f32 to vector<2x8xf32>
    %1214 = arith.addf %1213, %1212 : vector<2x8xf32>
    %1215 = arith.divf %1213, %1214 : vector<2x8xf32>
    %1216 = vector.extract_strided_slice %1204 {offsets = [0, 8], sizes = [2, 8], strides = [1, 1]} : vector<2x24xf32> to vector<2x8xf32>
    %1217 = vector.extract_strided_slice %1207 {offsets = [0, 8], sizes = [2, 8], strides = [1, 1]} : vector<2x24xf32> to vector<2x8xf32>
    %1218 = arith.addf %1216, %1217 : vector<2x8xf32>
    %1219 = arith.negf %1218 : vector<2x8xf32>
    %1220 = math.exp %1219 : vector<2x8xf32>
    %cst_381 = arith.constant 1.000000e+00 : f32
    %1221 = vector.broadcast %cst_381 : f32 to vector<2x8xf32>
    %1222 = arith.addf %1221, %1220 : vector<2x8xf32>
    %1223 = arith.divf %1221, %1222 : vector<2x8xf32>
    %1224 = vector.extract_strided_slice %1204 {offsets = [0, 16], sizes = [2, 8], strides = [1, 1]} : vector<2x24xf32> to vector<2x8xf32>
    %1225 = vector.extract_strided_slice %1207 {offsets = [0, 16], sizes = [2, 8], strides = [1, 1]} : vector<2x24xf32> to vector<2x8xf32>
    %1226 = arith.mulf %1215, %1225 : vector<2x8xf32>
    %1227 = arith.addf %1224, %1226 : vector<2x8xf32>
    %1228 = math.tanh %1227 : vector<2x8xf32>
    %cst_382 = arith.constant 1.000000e+00 : f32
    %1229 = vector.broadcast %cst_382 : f32 to vector<2x8xf32>
    %1230 = arith.subf %1229, %1223 : vector<2x8xf32>
    %1231 = arith.mulf %1230, %1228 : vector<2x8xf32>
    %1232 = arith.mulf %1223, %1168 : vector<2x8xf32>
    %1233 = arith.addf %1231, %1232 : vector<2x8xf32>
    %c5_i32_383 = arith.constant 5 : i32
    %c7_i32_384 = arith.constant 7 : i32
    %1234 = arith.subi %c7_i32_384, %c5_i32_383 : i32
    %1235 = arith.index_cast %c5_i32_383 : i32 to index
    %c0_385 = arith.constant 0 : index
    %c0_386 = arith.constant 0 : index
    %1236 = vector.load %arg17[%1235, %c0_385, %c0_386] : memref<8x2x24xf32, #tpu.memory_space<vmem>>, vector<1x2x24xf32>
    %1237 = vector.shape_cast %1236 : vector<1x2x24xf32> to vector<2x24xf32>
    %cst_387 = arith.constant dense<0.000000e+00> : vector<2x24xf32>
    %1238 = tpu.matmul %1201, %905, %cst_387 {dimension_numbers = #tpu.dot_dimension_numbers<[1], [0], [0], [1], [0, 0, 1, 1], [], []>} : vector<2x8xf32>, vector<8x24xf32>, vector<2x24xf32> -> vector<2x24xf32>
    %1239 = vector.broadcast %906 : vector<1x24xf32> to vector<2x24xf32>
    %1240 = arith.addf %1238, %1239 : vector<2x24xf32>
    %1241 = vector.extract_strided_slice %1237 {offsets = [0, 0], sizes = [2, 8], strides = [1, 1]} : vector<2x24xf32> to vector<2x8xf32>
    %1242 = vector.extract_strided_slice %1240 {offsets = [0, 0], sizes = [2, 8], strides = [1, 1]} : vector<2x24xf32> to vector<2x8xf32>
    %1243 = arith.addf %1241, %1242 : vector<2x8xf32>
    %1244 = arith.negf %1243 : vector<2x8xf32>
    %1245 = math.exp %1244 : vector<2x8xf32>
    %cst_388 = arith.constant 1.000000e+00 : f32
    %1246 = vector.broadcast %cst_388 : f32 to vector<2x8xf32>
    %1247 = arith.addf %1246, %1245 : vector<2x8xf32>
    %1248 = arith.divf %1246, %1247 : vector<2x8xf32>
    %1249 = vector.extract_strided_slice %1237 {offsets = [0, 8], sizes = [2, 8], strides = [1, 1]} : vector<2x24xf32> to vector<2x8xf32>
    %1250 = vector.extract_strided_slice %1240 {offsets = [0, 8], sizes = [2, 8], strides = [1, 1]} : vector<2x24xf32> to vector<2x8xf32>
    %1251 = arith.addf %1249, %1250 : vector<2x8xf32>
    %1252 = arith.negf %1251 : vector<2x8xf32>
    %1253 = math.exp %1252 : vector<2x8xf32>
    %cst_389 = arith.constant 1.000000e+00 : f32
    %1254 = vector.broadcast %cst_389 : f32 to vector<2x8xf32>
    %1255 = arith.addf %1254, %1253 : vector<2x8xf32>
    %1256 = arith.divf %1254, %1255 : vector<2x8xf32>
    %1257 = vector.extract_strided_slice %1237 {offsets = [0, 16], sizes = [2, 8], strides = [1, 1]} : vector<2x24xf32> to vector<2x8xf32>
    %1258 = vector.extract_strided_slice %1240 {offsets = [0, 16], sizes = [2, 8], strides = [1, 1]} : vector<2x24xf32> to vector<2x8xf32>
    %1259 = arith.mulf %1248, %1258 : vector<2x8xf32>
    %1260 = arith.addf %1257, %1259 : vector<2x8xf32>
    %1261 = math.tanh %1260 : vector<2x8xf32>
    %cst_390 = arith.constant 1.000000e+00 : f32
    %1262 = vector.broadcast %cst_390 : f32 to vector<2x8xf32>
    %1263 = arith.subf %1262, %1256 : vector<2x8xf32>
    %1264 = arith.mulf %1263, %1261 : vector<2x8xf32>
    %1265 = arith.mulf %1256, %1201 : vector<2x8xf32>
    %1266 = arith.addf %1264, %1265 : vector<2x8xf32>
    %1267 = arith.index_cast %1234 : i32 to index
    %c0_391 = arith.constant 0 : index
    %c0_392 = arith.constant 0 : index
    %1268 = vector.load %arg18[%1267, %c0_391, %c0_392] : memref<8x2x24xf32, #tpu.memory_space<vmem>>, vector<1x2x24xf32>
    %1269 = vector.shape_cast %1268 : vector<1x2x24xf32> to vector<2x24xf32>
    %cst_393 = arith.constant dense<0.000000e+00> : vector<2x24xf32>
    %1270 = tpu.matmul %1233, %907, %cst_393 {dimension_numbers = #tpu.dot_dimension_numbers<[1], [0], [0], [1], [0, 0, 1, 1], [], []>} : vector<2x8xf32>, vector<8x24xf32>, vector<2x24xf32> -> vector<2x24xf32>
    %1271 = vector.broadcast %908 : vector<1x24xf32> to vector<2x24xf32>
    %1272 = arith.addf %1270, %1271 : vector<2x24xf32>
    %1273 = vector.extract_strided_slice %1269 {offsets = [0, 0], sizes = [2, 8], strides = [1, 1]} : vector<2x24xf32> to vector<2x8xf32>
    %1274 = vector.extract_strided_slice %1272 {offsets = [0, 0], sizes = [2, 8], strides = [1, 1]} : vector<2x24xf32> to vector<2x8xf32>
    %1275 = arith.addf %1273, %1274 : vector<2x8xf32>
    %1276 = arith.negf %1275 : vector<2x8xf32>
    %1277 = math.exp %1276 : vector<2x8xf32>
    %cst_394 = arith.constant 1.000000e+00 : f32
    %1278 = vector.broadcast %cst_394 : f32 to vector<2x8xf32>
    %1279 = arith.addf %1278, %1277 : vector<2x8xf32>
    %1280 = arith.divf %1278, %1279 : vector<2x8xf32>
    %1281 = vector.extract_strided_slice %1269 {offsets = [0, 8], sizes = [2, 8], strides = [1, 1]} : vector<2x24xf32> to vector<2x8xf32>
    %1282 = vector.extract_strided_slice %1272 {offsets = [0, 8], sizes = [2, 8], strides = [1, 1]} : vector<2x24xf32> to vector<2x8xf32>
    %1283 = arith.addf %1281, %1282 : vector<2x8xf32>
    %1284 = arith.negf %1283 : vector<2x8xf32>
    %1285 = math.exp %1284 : vector<2x8xf32>
    %cst_395 = arith.constant 1.000000e+00 : f32
    %1286 = vector.broadcast %cst_395 : f32 to vector<2x8xf32>
    %1287 = arith.addf %1286, %1285 : vector<2x8xf32>
    %1288 = arith.divf %1286, %1287 : vector<2x8xf32>
    %1289 = vector.extract_strided_slice %1269 {offsets = [0, 16], sizes = [2, 8], strides = [1, 1]} : vector<2x24xf32> to vector<2x8xf32>
    %1290 = vector.extract_strided_slice %1272 {offsets = [0, 16], sizes = [2, 8], strides = [1, 1]} : vector<2x24xf32> to vector<2x8xf32>
    %1291 = arith.mulf %1280, %1290 : vector<2x8xf32>
    %1292 = arith.addf %1289, %1291 : vector<2x8xf32>
    %1293 = math.tanh %1292 : vector<2x8xf32>
    %cst_396 = arith.constant 1.000000e+00 : f32
    %1294 = vector.broadcast %cst_396 : f32 to vector<2x8xf32>
    %1295 = arith.subf %1294, %1288 : vector<2x8xf32>
    %1296 = arith.mulf %1295, %1293 : vector<2x8xf32>
    %1297 = arith.mulf %1288, %1233 : vector<2x8xf32>
    %1298 = arith.addf %1296, %1297 : vector<2x8xf32>
    %c6_i32_397 = arith.constant 6 : i32
    %c7_i32_398 = arith.constant 7 : i32
    %1299 = arith.subi %c7_i32_398, %c6_i32_397 : i32
    %1300 = arith.index_cast %c6_i32_397 : i32 to index
    %c0_399 = arith.constant 0 : index
    %c0_400 = arith.constant 0 : index
    %1301 = vector.load %arg17[%1300, %c0_399, %c0_400] : memref<8x2x24xf32, #tpu.memory_space<vmem>>, vector<1x2x24xf32>
    %1302 = vector.shape_cast %1301 : vector<1x2x24xf32> to vector<2x24xf32>
    %cst_401 = arith.constant dense<0.000000e+00> : vector<2x24xf32>
    %1303 = tpu.matmul %1266, %905, %cst_401 {dimension_numbers = #tpu.dot_dimension_numbers<[1], [0], [0], [1], [0, 0, 1, 1], [], []>} : vector<2x8xf32>, vector<8x24xf32>, vector<2x24xf32> -> vector<2x24xf32>
    %1304 = vector.broadcast %906 : vector<1x24xf32> to vector<2x24xf32>
    %1305 = arith.addf %1303, %1304 : vector<2x24xf32>
    %1306 = vector.extract_strided_slice %1302 {offsets = [0, 0], sizes = [2, 8], strides = [1, 1]} : vector<2x24xf32> to vector<2x8xf32>
    %1307 = vector.extract_strided_slice %1305 {offsets = [0, 0], sizes = [2, 8], strides = [1, 1]} : vector<2x24xf32> to vector<2x8xf32>
    %1308 = arith.addf %1306, %1307 : vector<2x8xf32>
    %1309 = arith.negf %1308 : vector<2x8xf32>
    %1310 = math.exp %1309 : vector<2x8xf32>
    %cst_402 = arith.constant 1.000000e+00 : f32
    %1311 = vector.broadcast %cst_402 : f32 to vector<2x8xf32>
    %1312 = arith.addf %1311, %1310 : vector<2x8xf32>
    %1313 = arith.divf %1311, %1312 : vector<2x8xf32>
    %1314 = vector.extract_strided_slice %1302 {offsets = [0, 8], sizes = [2, 8], strides = [1, 1]} : vector<2x24xf32> to vector<2x8xf32>
    %1315 = vector.extract_strided_slice %1305 {offsets = [0, 8], sizes = [2, 8], strides = [1, 1]} : vector<2x24xf32> to vector<2x8xf32>
    %1316 = arith.addf %1314, %1315 : vector<2x8xf32>
    %1317 = arith.negf %1316 : vector<2x8xf32>
    %1318 = math.exp %1317 : vector<2x8xf32>
    %cst_403 = arith.constant 1.000000e+00 : f32
    %1319 = vector.broadcast %cst_403 : f32 to vector<2x8xf32>
    %1320 = arith.addf %1319, %1318 : vector<2x8xf32>
    %1321 = arith.divf %1319, %1320 : vector<2x8xf32>
    %1322 = vector.extract_strided_slice %1302 {offsets = [0, 16], sizes = [2, 8], strides = [1, 1]} : vector<2x24xf32> to vector<2x8xf32>
    %1323 = vector.extract_strided_slice %1305 {offsets = [0, 16], sizes = [2, 8], strides = [1, 1]} : vector<2x24xf32> to vector<2x8xf32>
    %1324 = arith.mulf %1313, %1323 : vector<2x8xf32>
    %1325 = arith.addf %1322, %1324 : vector<2x8xf32>
    %1326 = math.tanh %1325 : vector<2x8xf32>
    %cst_404 = arith.constant 1.000000e+00 : f32
    %1327 = vector.broadcast %cst_404 : f32 to vector<2x8xf32>
    %1328 = arith.subf %1327, %1321 : vector<2x8xf32>
    %1329 = arith.mulf %1328, %1326 : vector<2x8xf32>
    %1330 = arith.mulf %1321, %1266 : vector<2x8xf32>
    %1331 = arith.addf %1329, %1330 : vector<2x8xf32>
    %1332 = arith.index_cast %1299 : i32 to index
    %c0_405 = arith.constant 0 : index
    %c0_406 = arith.constant 0 : index
    %1333 = vector.load %arg18[%1332, %c0_405, %c0_406] : memref<8x2x24xf32, #tpu.memory_space<vmem>>, vector<1x2x24xf32>
    %1334 = vector.shape_cast %1333 : vector<1x2x24xf32> to vector<2x24xf32>
    %cst_407 = arith.constant dense<0.000000e+00> : vector<2x24xf32>
    %1335 = tpu.matmul %1298, %907, %cst_407 {dimension_numbers = #tpu.dot_dimension_numbers<[1], [0], [0], [1], [0, 0, 1, 1], [], []>} : vector<2x8xf32>, vector<8x24xf32>, vector<2x24xf32> -> vector<2x24xf32>
    %1336 = vector.broadcast %908 : vector<1x24xf32> to vector<2x24xf32>
    %1337 = arith.addf %1335, %1336 : vector<2x24xf32>
    %1338 = vector.extract_strided_slice %1334 {offsets = [0, 0], sizes = [2, 8], strides = [1, 1]} : vector<2x24xf32> to vector<2x8xf32>
    %1339 = vector.extract_strided_slice %1337 {offsets = [0, 0], sizes = [2, 8], strides = [1, 1]} : vector<2x24xf32> to vector<2x8xf32>
    %1340 = arith.addf %1338, %1339 : vector<2x8xf32>
    %1341 = arith.negf %1340 : vector<2x8xf32>
    %1342 = math.exp %1341 : vector<2x8xf32>
    %cst_408 = arith.constant 1.000000e+00 : f32
    %1343 = vector.broadcast %cst_408 : f32 to vector<2x8xf32>
    %1344 = arith.addf %1343, %1342 : vector<2x8xf32>
    %1345 = arith.divf %1343, %1344 : vector<2x8xf32>
    %1346 = vector.extract_strided_slice %1334 {offsets = [0, 8], sizes = [2, 8], strides = [1, 1]} : vector<2x24xf32> to vector<2x8xf32>
    %1347 = vector.extract_strided_slice %1337 {offsets = [0, 8], sizes = [2, 8], strides = [1, 1]} : vector<2x24xf32> to vector<2x8xf32>
    %1348 = arith.addf %1346, %1347 : vector<2x8xf32>
    %1349 = arith.negf %1348 : vector<2x8xf32>
    %1350 = math.exp %1349 : vector<2x8xf32>
    %cst_409 = arith.constant 1.000000e+00 : f32
    %1351 = vector.broadcast %cst_409 : f32 to vector<2x8xf32>
    %1352 = arith.addf %1351, %1350 : vector<2x8xf32>
    %1353 = arith.divf %1351, %1352 : vector<2x8xf32>
    %1354 = vector.extract_strided_slice %1334 {offsets = [0, 16], sizes = [2, 8], strides = [1, 1]} : vector<2x24xf32> to vector<2x8xf32>
    %1355 = vector.extract_strided_slice %1337 {offsets = [0, 16], sizes = [2, 8], strides = [1, 1]} : vector<2x24xf32> to vector<2x8xf32>
    %1356 = arith.mulf %1345, %1355 : vector<2x8xf32>
    %1357 = arith.addf %1354, %1356 : vector<2x8xf32>
    %1358 = math.tanh %1357 : vector<2x8xf32>
    %cst_410 = arith.constant 1.000000e+00 : f32
    %1359 = vector.broadcast %cst_410 : f32 to vector<2x8xf32>
    %1360 = arith.subf %1359, %1353 : vector<2x8xf32>
    %1361 = arith.mulf %1360, %1358 : vector<2x8xf32>
    %1362 = arith.mulf %1353, %1298 : vector<2x8xf32>
    %1363 = arith.addf %1361, %1362 : vector<2x8xf32>
    %c7_i32_411 = arith.constant 7 : i32
    %c7_i32_412 = arith.constant 7 : i32
    %1364 = arith.subi %c7_i32_412, %c7_i32_411 : i32
    %1365 = arith.index_cast %c7_i32_411 : i32 to index
    %c0_413 = arith.constant 0 : index
    %c0_414 = arith.constant 0 : index
    %1366 = vector.load %arg17[%1365, %c0_413, %c0_414] : memref<8x2x24xf32, #tpu.memory_space<vmem>>, vector<1x2x24xf32>
    %1367 = vector.shape_cast %1366 : vector<1x2x24xf32> to vector<2x24xf32>
    %cst_415 = arith.constant dense<0.000000e+00> : vector<2x24xf32>
    %1368 = tpu.matmul %1331, %905, %cst_415 {dimension_numbers = #tpu.dot_dimension_numbers<[1], [0], [0], [1], [0, 0, 1, 1], [], []>} : vector<2x8xf32>, vector<8x24xf32>, vector<2x24xf32> -> vector<2x24xf32>
    %1369 = vector.broadcast %906 : vector<1x24xf32> to vector<2x24xf32>
    %1370 = arith.addf %1368, %1369 : vector<2x24xf32>
    %1371 = vector.extract_strided_slice %1367 {offsets = [0, 0], sizes = [2, 8], strides = [1, 1]} : vector<2x24xf32> to vector<2x8xf32>
    %1372 = vector.extract_strided_slice %1370 {offsets = [0, 0], sizes = [2, 8], strides = [1, 1]} : vector<2x24xf32> to vector<2x8xf32>
    %1373 = arith.addf %1371, %1372 : vector<2x8xf32>
    %1374 = arith.negf %1373 : vector<2x8xf32>
    %1375 = math.exp %1374 : vector<2x8xf32>
    %cst_416 = arith.constant 1.000000e+00 : f32
    %1376 = vector.broadcast %cst_416 : f32 to vector<2x8xf32>
    %1377 = arith.addf %1376, %1375 : vector<2x8xf32>
    %1378 = arith.divf %1376, %1377 : vector<2x8xf32>
    %1379 = vector.extract_strided_slice %1367 {offsets = [0, 8], sizes = [2, 8], strides = [1, 1]} : vector<2x24xf32> to vector<2x8xf32>
    %1380 = vector.extract_strided_slice %1370 {offsets = [0, 8], sizes = [2, 8], strides = [1, 1]} : vector<2x24xf32> to vector<2x8xf32>
    %1381 = arith.addf %1379, %1380 : vector<2x8xf32>
    %1382 = arith.negf %1381 : vector<2x8xf32>
    %1383 = math.exp %1382 : vector<2x8xf32>
    %cst_417 = arith.constant 1.000000e+00 : f32
    %1384 = vector.broadcast %cst_417 : f32 to vector<2x8xf32>
    %1385 = arith.addf %1384, %1383 : vector<2x8xf32>
    %1386 = arith.divf %1384, %1385 : vector<2x8xf32>
    %1387 = vector.extract_strided_slice %1367 {offsets = [0, 16], sizes = [2, 8], strides = [1, 1]} : vector<2x24xf32> to vector<2x8xf32>
    %1388 = vector.extract_strided_slice %1370 {offsets = [0, 16], sizes = [2, 8], strides = [1, 1]} : vector<2x24xf32> to vector<2x8xf32>
    %1389 = arith.mulf %1378, %1388 : vector<2x8xf32>
    %1390 = arith.addf %1387, %1389 : vector<2x8xf32>
    %1391 = math.tanh %1390 : vector<2x8xf32>
    %cst_418 = arith.constant 1.000000e+00 : f32
    %1392 = vector.broadcast %cst_418 : f32 to vector<2x8xf32>
    %1393 = arith.subf %1392, %1386 : vector<2x8xf32>
    %1394 = arith.mulf %1393, %1391 : vector<2x8xf32>
    %1395 = arith.mulf %1386, %1331 : vector<2x8xf32>
    %1396 = arith.addf %1394, %1395 : vector<2x8xf32>
    %1397 = arith.index_cast %1364 : i32 to index
    %c0_419 = arith.constant 0 : index
    %c0_420 = arith.constant 0 : index
    %1398 = vector.load %arg18[%1397, %c0_419, %c0_420] : memref<8x2x24xf32, #tpu.memory_space<vmem>>, vector<1x2x24xf32>
    %1399 = vector.shape_cast %1398 : vector<1x2x24xf32> to vector<2x24xf32>
    %cst_421 = arith.constant dense<0.000000e+00> : vector<2x24xf32>
    %1400 = tpu.matmul %1363, %907, %cst_421 {dimension_numbers = #tpu.dot_dimension_numbers<[1], [0], [0], [1], [0, 0, 1, 1], [], []>} : vector<2x8xf32>, vector<8x24xf32>, vector<2x24xf32> -> vector<2x24xf32>
    %1401 = vector.broadcast %908 : vector<1x24xf32> to vector<2x24xf32>
    %1402 = arith.addf %1400, %1401 : vector<2x24xf32>
    %1403 = vector.extract_strided_slice %1399 {offsets = [0, 0], sizes = [2, 8], strides = [1, 1]} : vector<2x24xf32> to vector<2x8xf32>
    %1404 = vector.extract_strided_slice %1402 {offsets = [0, 0], sizes = [2, 8], strides = [1, 1]} : vector<2x24xf32> to vector<2x8xf32>
    %1405 = arith.addf %1403, %1404 : vector<2x8xf32>
    %1406 = arith.negf %1405 : vector<2x8xf32>
    %1407 = math.exp %1406 : vector<2x8xf32>
    %cst_422 = arith.constant 1.000000e+00 : f32
    %1408 = vector.broadcast %cst_422 : f32 to vector<2x8xf32>
    %1409 = arith.addf %1408, %1407 : vector<2x8xf32>
    %1410 = arith.divf %1408, %1409 : vector<2x8xf32>
    %1411 = vector.extract_strided_slice %1399 {offsets = [0, 8], sizes = [2, 8], strides = [1, 1]} : vector<2x24xf32> to vector<2x8xf32>
    %1412 = vector.extract_strided_slice %1402 {offsets = [0, 8], sizes = [2, 8], strides = [1, 1]} : vector<2x24xf32> to vector<2x8xf32>
    %1413 = arith.addf %1411, %1412 : vector<2x8xf32>
    %1414 = arith.negf %1413 : vector<2x8xf32>
    %1415 = math.exp %1414 : vector<2x8xf32>
    %cst_423 = arith.constant 1.000000e+00 : f32
    %1416 = vector.broadcast %cst_423 : f32 to vector<2x8xf32>
    %1417 = arith.addf %1416, %1415 : vector<2x8xf32>
    %1418 = arith.divf %1416, %1417 : vector<2x8xf32>
    %1419 = vector.extract_strided_slice %1399 {offsets = [0, 16], sizes = [2, 8], strides = [1, 1]} : vector<2x24xf32> to vector<2x8xf32>
    %1420 = vector.extract_strided_slice %1402 {offsets = [0, 16], sizes = [2, 8], strides = [1, 1]} : vector<2x24xf32> to vector<2x8xf32>
    %1421 = arith.mulf %1410, %1420 : vector<2x8xf32>
    %1422 = arith.addf %1419, %1421 : vector<2x8xf32>
    %1423 = math.tanh %1422 : vector<2x8xf32>
    %cst_424 = arith.constant 1.000000e+00 : f32
    %1424 = vector.broadcast %cst_424 : f32 to vector<2x8xf32>
    %1425 = arith.subf %1424, %1418 : vector<2x8xf32>
    %1426 = arith.mulf %1425, %1423 : vector<2x8xf32>
    %1427 = arith.mulf %1418, %1363 : vector<2x8xf32>
    %1428 = arith.addf %1426, %1427 : vector<2x8xf32>
    %c8_i32_425 = arith.constant 8 : i32
    %c0_426 = arith.constant 0 : index
    %c0_427 = arith.constant 0 : index
    %1429 = vector.load %arg14[%c0_426, %c0_427] : memref<2x32xf32, #tpu.memory_space<vmem>>, vector<2x8xf32>
    tpu.vector_store %arg14[%c0_426, %c0_427], %678 {strides = array<i32>} : memref<2x32xf32, #tpu.memory_space<vmem>>, vector<2x8xf32>,
    %c0_428 = arith.constant 0 : index
    %c8 = arith.constant 8 : index
    %1430 = vector.load %arg14[%c0_428, %c8] : memref<2x32xf32, #tpu.memory_space<vmem>>, vector<2x8xf32>
    tpu.vector_store %arg14[%c0_428, %c8], %710 {strides = array<i32>} : memref<2x32xf32, #tpu.memory_space<vmem>>, vector<2x8xf32>,
    %c0_429 = arith.constant 0 : index
    %c16 = arith.constant 16 : index
    %1431 = vector.load %arg14[%c0_429, %c16] : memref<2x32xf32, #tpu.memory_space<vmem>>, vector<2x8xf32>
    tpu.vector_store %arg14[%c0_429, %c16], %1396 {strides = array<i32>} : memref<2x32xf32, #tpu.memory_space<vmem>>, vector<2x8xf32>,
    %c0_430 = arith.constant 0 : index
    %c24 = arith.constant 24 : index
    %1432 = vector.load %arg14[%c0_430, %c24] : memref<2x32xf32, #tpu.memory_space<vmem>>, vector<2x8xf32>
    tpu.vector_store %arg14[%c0_430, %c24], %1428 {strides = array<i32>} : memref<2x32xf32, #tpu.memory_space<vmem>>, vector<2x8xf32>,
    return
  }
  func.func @transform_0(%arg0: i32) -> (i32, i32, i32) {
    %c0_i32 = arith.constant 0 : i32
    %c0_i32_0 = arith.constant 0 : i32
    %c0_i32_1 = arith.constant 0 : i32
    return %c0_i32, %arg0, %c0_i32_0 : i32, i32, i32
  }
  func.func @transform_1(%arg0: i32) -> (i32, i32) {
    %c0_i32 = arith.constant 0 : i32
    %c0_i32_0 = arith.constant 0 : i32
    %c0_i32_1 = arith.constant 0 : i32
    return %c0_i32, %c0_i32_0 : i32, i32
  }
  func.func @transform_2(%arg0: i32) -> (i32, i32) {
    %c0_i32 = arith.constant 0 : i32
    %c0_i32_0 = arith.constant 0 : i32
    %c0_i32_1 = arith.constant 0 : i32
    return %c0_i32, %c0_i32_0 : i32, i32
  }
  func.func @transform_3(%arg0: i32) -> (i32, i32) {
    %c0_i32 = arith.constant 0 : i32
    %c0_i32_0 = arith.constant 0 : i32
    %c0_i32_1 = arith.constant 0 : i32
    return %c0_i32, %c0_i32_0 : i32, i32
  }
  func.func @transform_4(%arg0: i32) -> (i32, i32) {
    %c0_i32 = arith.constant 0 : i32
    %c0_i32_0 = arith.constant 0 : i32
    %c0_i32_1 = arith.constant 0 : i32
    return %c0_i32, %c0_i32_0 : i32, i32
  }
  func.func @transform_5(%arg0: i32) -> (i32, i32) {
    %c0_i32 = arith.constant 0 : i32
    %c0_i32_0 = arith.constant 0 : i32
    %c0_i32_1 = arith.constant 0 : i32
    return %c0_i32, %c0_i32_0 : i32, i32
  }
  func.func @transform_6(%arg0: i32) -> (i32, i32) {
    %c0_i32 = arith.constant 0 : i32
    %c0_i32_0 = arith.constant 0 : i32
    %c0_i32_1 = arith.constant 0 : i32
    return %c0_i32, %c0_i32_0 : i32, i32
  }
  func.func @transform_7(%arg0: i32) -> (i32, i32) {
    %c0_i32 = arith.constant 0 : i32
    %c0_i32_0 = arith.constant 0 : i32
    %c0_i32_1 = arith.constant 0 : i32
    return %c0_i32, %c0_i32_0 : i32, i32
  }
  func.func @transform_8(%arg0: i32) -> (i32, i32) {
    %c0_i32 = arith.constant 0 : i32
    %c0_i32_0 = arith.constant 0 : i32
    %c0_i32_1 = arith.constant 0 : i32
    return %c0_i32, %c0_i32_0 : i32, i32
  }
  func.func @transform_9(%arg0: i32) -> (i32, i32) {
    %c0_i32 = arith.constant 0 : i32
    %c0_i32_0 = arith.constant 0 : i32
    %c0_i32_1 = arith.constant 0 : i32
    return %c0_i32, %c0_i32_0 : i32, i32
  }
  func.func @transform_10(%arg0: i32) -> (i32, i32) {
    %c0_i32 = arith.constant 0 : i32
    %c0_i32_0 = arith.constant 0 : i32
    %c0_i32_1 = arith.constant 0 : i32
    return %c0_i32, %c0_i32_0 : i32, i32
  }
  func.func @transform_11(%arg0: i32) -> (i32, i32) {
    %c0_i32 = arith.constant 0 : i32
    %c0_i32_0 = arith.constant 0 : i32
    %c0_i32_1 = arith.constant 0 : i32
    return %c0_i32, %c0_i32_0 : i32, i32
  }
  func.func @transform_12(%arg0: i32) -> (i32, i32) {
    %c0_i32 = arith.constant 0 : i32
    %c0_i32_0 = arith.constant 0 : i32
    %c0_i32_1 = arith.constant 0 : i32
    return %c0_i32, %c0_i32_0 : i32, i32
  }
  func.func @transform_13(%arg0: i32) -> (i32, i32) {
    %c0_i32 = arith.constant 0 : i32
    %c0_i32_0 = arith.constant 0 : i32
    return %arg0, %c0_i32 : i32, i32
  }
}

</mosaic_0001>

<bundles_post_ra>
// kernel: tpu_custom_call.1
= control target key start
LH: loop header
LB: loop body
LE: loop exit
PB: predicated region body
PF: predicated region fallthrough
CT: control target
= control target key end

     0   :  { %18 = vsyncpa [#allocation9], 0  ;;  %s7199_s0 = inlined_call_operand.hbm [shape: f32[8,2,16], index: 0, kind: input, shape index: {}]   ;;  %s7200_s1 = inlined_call_operand.hbm [shape: f32[16,48], index: 1, kind: input, shape index: {}]   ;;  %s7201_s2 = inlined_call_operand.hbm [shape: f32[1,48], index: 2, kind: input, shape index: {}]   ;;  %s7202_s3 = inlined_call_operand.hbm [shape: f32[8,24], index: 3, kind: input, shape index: {}]   ;;  %s7203_s4 = inlined_call_operand.hbm [shape: f32[1,24], index: 4, kind: input, shape index: {}]   ;;  %s7204_s5 = inlined_call_operand.vmem [shape: f32[8,24], index: 5, kind: input, shape index: {}]   ;;  %s7205_s6 = inlined_call_operand.hbm [shape: f32[1,24], index: 6, kind: input, shape index: {}]   ;;  %s7206_s7 = inlined_call_operand.hbm [shape: f32[16,48], index: 7, kind: input, shape index: {}]   ;;  %s7207_s8 = inlined_call_operand.hbm [shape: f32[1,48], index: 8, kind: input, shape index: {}]   ;;  %s7208_s9 = inlined_call_operand.vmem [shape: f32[8,24], index: 9, kind: input, shape index: {}]   ;;  %s7209_s10 = inlined_call_operand.vmem [shape: f32[1,24], index: 10, kind: input, shape index: {}]   ;;  %s7210_s11 = inlined_call_operand.hbm [shape: f32[8,24], index: 11, kind: input, shape index: {}]   ;;  %s7211_s12 = inlined_call_operand.vmem [shape: f32[1,24], index: 12, kind: input, shape index: {}]   ;;  %s7212_s13 = inlined_call_operand.hbm [shape: f32[2,32], index: 13, kind: output, shape index: {}]  }
   0x1   :  { %19 = vsyncpa [#allocation12], 0 }
   0x2   :  { %20 = vsyncpa [#allocation15], 0 }
   0x3   :  { %21 = vsyncpa [#allocation18], 0 }
   0x4   :  { %22 = vsyncpa [#allocation21], 0 }
   0x5   :  { %23 = vsyncpa [#allocation10], 0  ;;  %s6389_s25 = smov [#allocation11]  }
   0x6   :  { %s41_s26 = sshll.u32 %s6389_s25, 4  ;;  %s42_s26 = int_to_ptr.vmem [resolvable:$true] %s41_s26 }
   0x7   :  { %s6185_s27 = scalar_lea.vmem %s42_s26, 256  ;;  %p6190_p1 = scmp.lt.s32.totalorder %s42_s26, %s42_s26 }
   0x8   :  { %p6186_p0 = scmp.ne.s32.totalorder %s42_s26, %s6185_s27  ;;  %p6191_p2 = scmp.lt.s32.totalorder %s6185_s27, %s6185_s27 }
   0xa   :  { %p6192_p3 = por %p6191_p2, %p6190_p1 }
   0xc   :  { %p6193_p4 = pnand %p6192_p3, %p6186_p0 }
   0xe   :  { %6196 = shalt.err (!%p6193_p4)
}
   0xf   :  { %s6390_s28 = smov 128   ;;  %s6391_s29 = smov 8  }
  0x10   :  { %47 = dma.hbm_to_vmem [thread:$0]  %s7200_s1, 256, %s42_s26, [#allocation12], %s6390_s28, %s6390_s28, %s6391_s29  }
  0x11   :  { %s6392_s15 = smov [#allocation14]   ;;  %s6393_s17 = smov [#allocation17]  }
  0x12   :  { %s64_s16 = sshll.u32 %s6392_s15, 4  ;;  %s86_s18 = sshll.u32 %s6393_s17, 4  ;;  %s65_s16 = int_to_ptr.vmem [resolvable:$true] %s64_s16  ;;  %s87_s18 = int_to_ptr.vmem [resolvable:$true] %s86_s18 }
  0x13   :  { %s6205_s19 = scalar_lea.vmem %s65_s16, 128  ;;  %p6210_p6 = scmp.lt.s32.totalorder %s65_s16, %s65_s16 }
  0x14   :  { %p6206_p5 = scmp.ne.s32.totalorder %s65_s16, %s6205_s19  ;;  %p6211_p7 = scmp.lt.s32.totalorder %s6205_s19, %s6205_s19 }
  0x16   :  { %p6212_p8 = por %p6211_p7, %p6210_p6 }
  0x18   :  { %p6213_p9 = pnand %p6212_p8, %p6206_p5 }
  0x1a   :  { %6216 = shalt.err (!%p6213_p9)
}
  0x1b   :  { %67 = dma.hbm_to_vmem [thread:$0]  %s7202_s3, 128, %s65_s16, [#allocation15]  }
  0x1c   :  { %s6225_s22 = scalar_lea.vmem %s87_s18, 16  ;;  %s6229_s1 = scalar_lea.vmem %s87_s18, 32 }
  0x1d   :  { %p6226_p10 = scmp.ne.s32.totalorder %s87_s18, %s6225_s22  ;;  %p6230_p11 = scmp.lt.s32.totalorder %s87_s18, %s87_s18 }
  0x1e   :  { %p6231_p12 = scmp.lt.s32.totalorder %s6229_s1, %s6225_s22 }
  0x20   :  { %p6232_p13 = por %p6231_p12, %p6230_p11 }
  0x22   :  { %p6233_p0 = pnand %p6232_p13, %p6226_p10 }
  0x24   :  { %6236 = shalt.err (!%p6233_p0)
}
  0x25   :  { %89 = dma.hbm_to_vmem [thread:$0]  %s7205_s6, 16, %s87_s18, [#allocation18]  }
  0x26   :  { %s6394_s25 = smov [#allocation20]   ;;  %s6395_s27 = smov [#allocation8]  }
  0x27   :  { %s108_s26 = sshll.u32 %s6394_s25, 4  ;;  %s29_s30 = sshll.u32 %s6395_s27, 4  ;;  %s109_s26 = int_to_ptr.vmem [resolvable:$true] %s108_s26  ;;  %s30_s30 = int_to_ptr.vmem [resolvable:$true] %s29_s30 }
  0x28   :  { %s6245_s14 = scalar_lea.vmem %s109_s26, 16  ;;  %s6249_s3 = scalar_lea.vmem %s109_s26, 32 }
  0x29   :  { %p6246_p1 = scmp.ne.s32.totalorder %s109_s26, %s6245_s14  ;;  %p6250_p2 = scmp.lt.s32.totalorder %s109_s26, %s109_s26 }
  0x2a   :  { %p6251_p3 = scmp.lt.s32.totalorder %s6249_s3, %s6245_s14 }
  0x2c   :  { %p6252_p4 = por %p6251_p3, %p6250_p2 }
  0x2e   :  { %p6253_p5 = pnand %p6252_p4, %p6246_p1 }
  0x30   :  { %6256 = shalt.err (!%p6253_p5)
}
  0x31   :  { %111 = dma.hbm_to_vmem [thread:$0]  %s7207_s8, 16, %s109_s26, [#allocation21]  }
  0x32   :  { %s6265_s17 = scalar_lea.vmem %s30_s30, 256  ;;  %p6270_p7 = scmp.lt.s32.totalorder %s30_s30, %s30_s30 }
  0x33   :  { %p6266_p6 = scmp.ne.s32.totalorder %s30_s30, %s6265_s17  ;;  %p6271_p8 = scmp.lt.s32.totalorder %s6265_s17, %s6265_s17 }
  0x35   :  { %p6272_p9 = por %p6271_p8, %p6270_p7 }
  0x37   :  { %p6273_p10 = pnand %p6272_p9, %p6266_p6 }
  0x39   :  { %6276 = shalt.err (!%p6273_p10)
}
  0x3a   :  { %s6396_s6 = smov 32   ;;  %s6397_s18 = smov 2  }
  0x3b   :  { %35 = dma.hbm_to_vmem [thread:$0]  %s7199_s0, 256, %s30_s30, [#allocation9], %s6396_s6, %s6396_s6, %s6397_s18  }
  0x3c   :  { %s6398_s21 = smov [#allocation13]   ;;  %s6399_s1 = smov [#allocation16]  }
  0x3d   :  { %s54_s22 = sshll.u32 %s6398_s21, 4  ;;  %s74_s23 = sshll.u32 %s6399_s1, 4  ;;  %s55_s22 = int_to_ptr.vmem [resolvable:$true] %s54_s22  ;;  %s75_s23 = int_to_ptr.vmem [resolvable:$true] %s74_s23 }
  0x3e   :  { %s6285_s8 = scalar_lea.vmem %s55_s22, 16  ;;  %s6289_s24 = scalar_lea.vmem %s55_s22, 32 }
  0x3f   :  { %p6286_p11 = scmp.ne.s32.totalorder %s55_s22, %s6285_s8  ;;  %p6290_p12 = scmp.lt.s32.totalorder %s55_s22, %s55_s22 }
  0x40   :  { %p6291_p13 = scmp.lt.s32.totalorder %s6289_s24, %s6285_s8 }
  0x42   :  { %p6292_p0 = por %p6291_p13, %p6290_p12 }
  0x44   :  { %p6293_p1 = pnand %p6292_p0, %p6286_p11 }
  0x46   :  { %6296 = shalt.err (!%p6293_p1)
}
  0x47   :  { %57 = dma.hbm_to_vmem [thread:$0]  %s7201_s2, 16, %s55_s22, [#allocation12]  }
  0x48   :  { %s6305_s27 = scalar_lea.vmem %s75_s23, 16  ;;  %s6309_s0 = scalar_lea.vmem %s75_s23, 32 }
  0x49   :  { %p6306_p2 = scmp.ne.s32.totalorder %s75_s23, %s6305_s27  ;;  %p6310_p3 = scmp.lt.s32.totalorder %s75_s23, %s75_s23 }
  0x4a   :  { %p6311_p4 = scmp.lt.s32.totalorder %s6309_s0, %s6305_s27 }
  0x4c   :  { %p6312_p5 = por %p6311_p4, %p6310_p3 }
  0x4e   :  { %p6313_p6 = pnand %p6312_p5, %p6306_p2 }
  0x50   :  { %6316 = shalt.err (!%p6313_p6)
}
  0x51   :  { %77 = dma.hbm_to_vmem [thread:$0]  %s7203_s4, 16, %s75_s23, [#allocation15]  }
  0x52   :  { %s6400_s3 = smov [#allocation19]   ;;  %s6401_s16 = smov [#allocation22]  }
  0x53   :  { %s95_s15 = sshll.u32 %s6400_s3, 4  ;;  %s122_s17 = sshll.u32 %s6401_s16, 4  ;;  %s96_s15 = int_to_ptr.vmem [resolvable:$true] %s95_s15  ;;  %s123_s17 = int_to_ptr.vmem [resolvable:$true] %s122_s17 }
  0x54   :  { %s6325_s6 = scalar_lea.vmem %s96_s15, 256  ;;  %p6330_p8 = scmp.lt.s32.totalorder %s96_s15, %s96_s15 }
  0x55   :  { %p6326_p7 = scmp.ne.s32.totalorder %s96_s15, %s6325_s6  ;;  %p6331_p9 = scmp.lt.s32.totalorder %s6325_s6, %s6325_s6 }
  0x57   :  { %p6332_p10 = por %p6331_p9, %p6330_p8 }
  0x59   :  { %p6333_p11 = pnand %p6332_p10, %p6326_p7 }
  0x5b   :  { %6336 = shalt.err (!%p6333_p11)
}
  0x5c   :  { %101 = dma.hbm_to_vmem [thread:$0]  %s7206_s7, 256, %s96_s15, [#allocation18], %s6390_s28, %s6390_s28, %s6391_s29  }
  0x5d   :  { %s6345_s4 = scalar_lea.vmem %s123_s17, 128  ;;  %p6350_p13 = scmp.lt.s32.totalorder %s123_s17, %s123_s17 }
  0x5e   :  { %p6346_p12 = scmp.ne.s32.totalorder %s123_s17, %s6345_s4  ;;  %p6351_p0 = scmp.lt.s32.totalorder %s6345_s4, %s6345_s4 }
  0x60   :  { %p6352_p1 = por %p6351_p0, %p6350_p13 }
  0x62   :  { %p6353_p2 = pnand %p6352_p1, %p6346_p12 }
  0x64   :  { %6356 = shalt.err (!%p6353_p2)
}
  0x65   :  { %125 = dma.hbm_to_vmem [thread:$0]  %s7210_s11, 128, %s123_s17, [#allocation21]  }
  0x66   :  { %6377 = dma.done.wait [#allocation9], 256  }
  0x67   :  { %6378 = vsyncadd [#allocation9], 4294967040 }
  0x68   :  { %6379 = dma.done.wait [#allocation12], 272  }
  0x69   :  { %6380 = vsyncadd [#allocation12], 4294967024 }
  0x6a   :  { %6381 = dma.done.wait [#allocation15], 144  }
  0x6b   :  { %6382 = vsyncadd [#allocation15], 4294967152 }
  0x6c   :  { %6383 = dma.done.wait [#allocation18], 272  }
  0x6d   :  { %6384 = vsyncadd [#allocation18], 4294967024 }
  0x6e   :  { %6385 = dma.done.wait [#allocation21], 144  }
  0x6f   :  { %6386 = vsyncadd [#allocation21], 4294967152  ;;  %v6402_v0 = vmov 0.0   ;;  %vm6403_vm0 = vmmov 0   ;;  %v156_v1 = vld [vmem:[#allocation11 + $0x8] sm:$0xff]  ;;  %v155_v2 = vld [vmem:[#allocation11] sm:$0xff] }
  0x70   :  { %5667 = vmatprep.subr.mxu0 %v6402_v0  ;;  %5674 = vmatprep.subr.mxu1 %v6402_v0  ;;  %v158_v3 = vld [vmem:[#allocation8] sm:$0x3]  ;;  %vm165_vm1 = vcmask 130048   ;;  %v247_v4 = vld [vmem:[#allocation8 + $0x2] sm:$0x3]  ;;  %vm239_vm2 = vcmask 189440  }
  0x71   :  { %5671 = vmatprep.mubr.msk.f32.mxu0 %vm6403_vm0, %v6402_v0  ;;  %5678 = vmatprep.mubr.msk.f32.mxu1 %vm6403_vm0, %v6402_v0  ;;  %v330_v5 = vld [vmem:[#allocation8 + $0x4] sm:$0x3]  ;;  %v413_v6 = vld [vmem:[#allocation8 + $0x6] sm:$0x3]  ;;  %v496_v7 = vld [vmem:[#allocation8 + $0x8] sm:$0x3] }
  0x72   :  { %5668 = vmatpush3.msra.mxu0 %v156_v1  ;;  %5675 = vmatpush3.msra.mxu1 %v156_v1  ;;  %v579_v8 = vld [vmem:[#allocation8 + $0xa] sm:$0x3]  ;;  %v662_v9 = vld [vmem:[#allocation8 + $0xc] sm:$0x3]  ;;  %v745_v10 = vld [vmem:[#allocation8 + $0xe] sm:$0x3] }
  0x73   :  { %5669 = vmatprep.subr.mxu0 %v6402_v0  ;;  %5676 = vmatprep.subr.mxu1 %v6402_v0  ;;  %v6550_v11 = vld [vmem:[#allocation14] sm:$0xff]  ;;  %v5457_v13 = vld [vmem:[#allocation13] ss:$0 sm:$0xff]  ;;  %v6605_v38 = vld [vmem:[#allocation16] ss:$0 sm:$0xff]  ;;  %s6405_s28 = smov 112  }
  0x74   :  { %5670 = vmatpush3.msra.mxu0 %v155_v2  ;;  %5677 = vmatpush3.msra.mxu1 %v155_v2  ;;  %v6557_v12 = vld [vmem:[%s7204_s5] sm:$0xff]  ;;  %v6607_v39 = vld [vmem:[#allocation17] ss:$0 sm:$0xff]  ;;  %s6404_s5 = smov 104   ;;  %s6406_s21 = smov 16   ;;  %vm1045_vm3 = vcmask 58368  }
  0x75   :  { %5672 = vmatmul.mubr.msk.f32.vlgmr.msra.gmra.mxu0 %vm165_vm1, %v158_v3  ;;  %5679 = vmatmul.mubr.msk.f32.vlgmr.msra.gmra.mxu1 %vm165_vm1, %v247_v4  ;;  %s6407_s22 = smov 120   ;;  %vm838_vm4 = vcmask 64512   ;;  %vm5424_vm5 = vcmask 123968   ;;  %vm5430_vm6 = vcmask 189568   ;;  %vm5436_vm7 = vcmask 255168  }
  0x76   :  { %5681 = vmatprep.subr.mxu0 %v6402_v0  ;;  %5688 = vmatprep.subr.mxu1 %v6402_v0 }
  0x77   :  { %5682 = vmatpush3.msra.mxu0 %v156_v1  ;;  %5689 = vmatpush3.msra.mxu1 %v156_v1 }
  0x78   :  { %5683 = vmatprep.subr.mxu0 %v6402_v0  ;;  %5690 = vmatprep.subr.mxu1 %v6402_v0 }
  0x79   :  { %5684 = vmatpush3.msra.mxu0 %v155_v2  ;;  %5685 = vmatprep.mubr.msk.f32.mxu0 %vm6403_vm0, %v6402_v0 }
  0x7a   :  { %5691 = vmatpush3.msra.mxu1 %v155_v2  ;;  %5692 = vmatprep.mubr.msk.f32.mxu1 %vm6403_vm0, %v6402_v0 }
  0x7b   :  { %5686 = vmatmul.mubr.msk.f32.vlgmr.msra.gmra.mxu0 %vm165_vm1, %v330_v5  ;;  %5693 = vmatmul.mubr.msk.f32.vlgmr.msra.gmra.mxu1 %vm165_vm1, %v413_v6 }
  0x7c   :  { %5695 = vmatprep.subr.mxu0 %v6402_v0  ;;  %5702 = vmatprep.subr.mxu1 %v6402_v0 }
  0x7d   :  { %5696 = vmatpush3.msra.mxu0 %v156_v1  ;;  %5703 = vmatpush3.msra.mxu1 %v156_v1 }
  0x7e   :  { %5697 = vmatprep.subr.mxu0 %v6402_v0  ;;  %5704 = vmatprep.subr.mxu1 %v6402_v0 }
  0x7f   :  { %5698 = vmatpush3.msra.mxu0 %v155_v2  ;;  %5699 = vmatprep.mubr.msk.f32.mxu0 %vm6403_vm0, %v6402_v0 }
  0x80   :  { %5705 = vmatpush3.msra.mxu1 %v155_v2  ;;  %5706 = vmatprep.mubr.msk.f32.mxu1 %vm6403_vm0, %v6402_v0 }
  0x81   :  { %5700 = vmatmul.mubr.msk.f32.vlgmr.msra.gmra.mxu0 %vm165_vm1, %v496_v7  ;;  %5707 = vmatmul.mubr.msk.f32.vlgmr.msra.gmra.mxu1 %vm165_vm1, %v579_v8 }
  0x82   :  { %5709 = vmatprep.subr.mxu0 %v6402_v0  ;;  %5716 = vmatprep.subr.mxu1 %v6402_v0 }
  0x83   :  { %5710 = vmatpush3.msra.mxu0 %v156_v1  ;;  %5717 = vmatpush3.msra.mxu1 %v156_v1 }
  0x84   :  { %5711 = vmatprep.subr.mxu0 %v6402_v0  ;;  %5718 = vmatprep.subr.mxu1 %v6402_v0 }
  0x85   :  { %5712 = vmatpush3.msra.mxu0 %v155_v2  ;;  %5713 = vmatprep.mubr.msk.f32.mxu0 %vm6403_vm0, %v6402_v0 }
  0x86   :  { %5719 = vmatpush3.msra.mxu1 %v155_v2  ;;  %5720 = vmatprep.mubr.msk.f32.mxu1 %vm6403_vm0, %v6402_v0 }
  0x87   :  { %5714 = vmatmul.mubr.msk.f32.vlgmr.msra.gmra.mxu0 %vm165_vm1, %v662_v9  ;;  %5721 = vmatmul.mubr.msk.f32.vlgmr.msra.gmra.mxu1 %vm165_vm1, %v745_v10 }
  0x88   :  { %5723 = vmatprep.subr.mxu0 %v6402_v0  ;;  %5725 = vmatprep.mubr.msk.f32.mxu0 %vm6403_vm0, %v6402_v0 }
  0x89   :  { %5724 = vmatpush3.msra.mxu0 %v6550_v11  ;;  %5728 = vmatprep.subr.mxu1 %v6402_v0 }
  0x8a   :  { %5729 = vmatpush3.msra.mxu1 %v6557_v12  ;;  %5730 = vmatprep.mubr.msk.f32.mxu1 %vm6403_vm0, %v6402_v0 }
  0x8b   :  { %5726 = vmatmul.mubr.f32.vlgmr.msra.gmra.mxu0 %v6402_v0  ;;  %5731 = vmatmul.mubr.f32.vlgmr.msra.gmra.mxu1 %v6402_v0 }
  0x8c   :  { %5733 = vmatprep.subr.mxu0 %v6402_v0  ;;  %5735 = vmatprep.mubr.msk.f32.mxu0 %vm6403_vm0, %v6402_v0 }
  0x8d   :  { %5734 = vmatpush3.msra.mxu0 %v6550_v11  ;;  %5738 = vmatprep.subr.mxu1 %v6402_v0 }
  0x8e   :  { %5739 = vmatpush3.msra.mxu1 %v6557_v12  ;;  %5740 = vmatprep.mubr.msk.f32.mxu1 %vm6403_vm0, %v6402_v0 }
  0x8f   :  { %5743 = vmatprep.subr.mxu0 %v6402_v0  ;;  %5748 = vmatprep.subr.mxu1 %v6402_v0 }
 0x135   :  { %v235_v14 = vpop.f32.mrf.mxu0  ;;  %v317_v15 = vpop.f32.mrf.mxu1 }
 0x136   :  { %v6579_v16 = vadd.f32 %v5457_v13, %v235_v14  ;;  %v6581_v17 = vadd.f32 %v5457_v13, %v317_v15 }
 0x137   :  { %v5673_v18 = vpop.f32.mrf.mxu0  ;;  %v5680_v19 = vpop.f32.mrf.mxu1 }
 0x138   :  { %240 = vst.msk [vmem:[#allocation6] sm:$0x3] %vm239_vm2, %v6579_v16  ;;  %322 = vst.msk [vmem:[#allocation6 + $0x2] sm:$0x3] %vm239_vm2, %v6581_v17 }
 0x13b   :  { %v400_v20 = vpop.f32.mrf.mxu0  ;;  %v483_v21 = vpop.f32.mrf.mxu1 }
 0x13c   :  { %v6587_v22 = vadd.f32 %v5457_v13, %v400_v20  ;;  %v6589_v23 = vadd.f32 %v5457_v13, %v483_v21 }
 0x13d   :  { %v5687_v24 = vpop.f32.mrf.mxu0  ;;  %v5694_v25 = vpop.f32.mrf.mxu1 }
 0x13e   :  { %405 = vst.msk [vmem:[#allocation6 + $0x4] sm:$0x3] %vm239_vm2, %v6587_v22  ;;  %488 = vst.msk [vmem:[#allocation6 + $0x6] sm:$0x3] %vm239_vm2, %v6589_v23 }
 0x13f   :  { %v831_v46 = vld [vmem:[#allocation6] sm:$0x3] }
 0x141   :  { %v566_v26 = vpop.f32.mrf.mxu0  ;;  %v649_v27 = vpop.f32.mrf.mxu1 }
 0x142   :  { %v6595_v28 = vadd.f32 %v5457_v13, %v566_v26  ;;  %v6597_v29 = vadd.f32 %v5457_v13, %v649_v27 }
 0x143   :  { %v5701_v30 = vpop.f32.mrf.mxu0  ;;  %v5708_v31 = vpop.f32.mrf.mxu1 }
 0x144   :  { %571 = vst.msk [vmem:[#allocation6 + $0x8] sm:$0x3] %vm239_vm2, %v6595_v28  ;;  %654 = vst.msk [vmem:[#allocation6 + $0xa] sm:$0x3] %vm239_vm2, %v6597_v29 }
 0x147   :  { %v732_v32 = vpop.f32.mrf.mxu0  ;;  %v815_v33 = vpop.f32.mrf.mxu1 }
 0x148   :  { %v6603_v34 = vadd.f32 %v5457_v13, %v732_v32  ;;  %v816_v35 = vadd.f32 %v5457_v13, %v815_v33  ;;  %v1053_v33 = vld [vmem:[#allocation6 + $0x2] sm:$0x3] }
 0x149   :  { %v5715_v36 = vpop.f32.mrf.mxu0  ;;  %v5722_v37 = vpop.f32.mrf.mxu1 }
 0x14a   :  { %737 = vst.msk [vmem:[#allocation6 + $0xc] sm:$0x3] %vm239_vm2, %v6603_v34  ;;  %820 = vst.msk [vmem:[#allocation6 + $0xe] sm:$0x3] %vm239_vm2, %v816_v35  ;;  %822 = vrot.lane.b32.xlu0 %v816_v35, %s6404_s5 }
 0x14b   :  { %v908_v40 = vpop.f32.mrf.mxu0  ;;  %v1011_v41 = vpop.f32.mrf.mxu1 }
 0x14c   :  { %v909_v42 = vadd.f32 %v6605_v38, %v908_v40  ;;  %v1012_v43 = vadd.f32 %v6607_v39, %v1011_v41 }
 0x14d   :  { %v5732_v44 = vpop.f32.mrf.mxu1  ;;  %v5727_v45 = vpop.f32.mrf.mxu0 }
 0x14e   :  { %920 = vrot.lane.b32.xlu1 %v909_v42, %s6405_s28  ;;  %1023 = vrot.lane.b32.xlu0 %v1012_v43, %s6405_s28  ;;  %v912_v47 = vadd.f32 %v909_v42, %v831_v46 }
 0x150   :  { %v5467_v48 = vmul.f32 -1.442695, %v912_v47 }
 0x152   :  { %5983 = vpow2.f32 %v5467_v48 }
 0x15f   :  { %v5984_v49 = vpop.eup %5983 }
 0x160   :  { %v916_v50 = vadd.f32 1.0, %v5984_v49 }
 0x162   :  { %5985 = vrcp.f32 %v916_v50 }
 0x16f   :  { %v5986_v52 = vpop.eup %5985 }
 0x170   :  { %v930_v6 = vsub.f32 1.0, %v5986_v52  ;;  %v936_v8 = vmul.f32 0.0, %v5986_v52 }
 0x1bc   :  { %v823_v51 = vpop.permute.xlu0 %822 }
 0x1bd   :  { %826 = vst.msk [vmem:[#allocation7 + $0xe] sm:$0x3] %vm239_vm2, %v823_v51 }
 0x1c0   :  { %v921_v53 = vpop.permute.xlu1 %920  ;;  %v1024_v60 = vpop.permute.xlu0 %1023 }
 0x1c1   :  { %v923_v54 = vmul.f32 %v5986_v52, %v921_v53 }
 0x1c3   :  { %925 = vrot.lane.b32.xlu0 %v923_v54, %s6406_s21 }
 0x1c4   :  { %v938_v55 = vld [vmem:[#allocation7 + $0xe] sm:$0x3] }
 0x1c5   :  { %v1015_v56 = vadd.f32 %v1012_v43, %v938_v55 }
 0x1c7   :  { %v5469_v57 = vmul.f32 -1.442695, %v1015_v56 }
 0x1c9   :  { %5987 = vpow2.f32 %v5469_v57 }
 0x1d6   :  { %v5988_v58 = vpop.eup %5987 }
 0x1d7   :  { %v1019_v59 = vadd.f32 1.0, %v5988_v58 }
 0x1d9   :  { %5989 = vrcp.f32 %v1019_v59 }
 0x1e6   :  { %v5990_v61 = vpop.eup %5989 }
 0x1e7   :  { %v1026_v62 = vmul.f32 %v5990_v61, %v1024_v60  ;;  %v1033_v13 = vsub.f32 1.0, %v5990_v61  ;;  %v1039_v15 = vmul.f32 0.0, %v5990_v61 }
 0x1e9   :  { %1028 = vrot.lane.b32.xlu1 %v1026_v62, %s6406_s21 }
 0x235   :  { %v926_v63 = vpop.permute.xlu0 %925 }
 0x236   :  { %v928_v1 = vadd.f32 %v926_v63, %v831_v46 }
 0x238   :  { %5991 = vtanh.f32 %v928_v1 }
 0x245   :  { %v5992_v2 = vpop.eup %5991 }
 0x246   :  { %932 = vrot.lane.b32.xlu0 %v5992_v2, %s6407_s22 }
 0x25b   :  { %v1029_v3 = vpop.permute.xlu1 %1028 }
 0x25c   :  { %v1031_v4 = vadd.f32 %v1029_v3, %v938_v55 }
 0x25e   :  { %5993 = vtanh.f32 %v1031_v4 }
 0x26b   :  { %v5994_v5 = vpop.eup %5993 }
 0x26c   :  { %1035 = vrot.lane.b32.xlu1 %v5994_v5, %s6407_s22 }
 0x2b8   :  { %v933_v7 = vpop.permute.xlu0 %932 }
 0x2b9   :  { %v935_v9 = vmul.f32 %v933_v7, %v930_v6 }
 0x2bb   :  { %v6622_v10 = vadd.f32 %v936_v8, %v935_v9 }
 0x2bd   :  { %1042 = vrot.lane.b32.xlu0 %v6622_v10, %s6407_s22 }
 0x2de   :  { %v1036_v14 = vpop.permute.xlu1 %1035 }
 0x2df   :  { %v1038_v18 = vmul.f32 %v1036_v14, %v1033_v13  ;;  %v1263_v14 = vld [vmem:[#allocation6 + $0x4] sm:$0x3] }
 0x2e1   :  { %v6626_v19 = vadd.f32 %v1039_v15, %v1038_v18 }
 0x2e3   :  { %1048 = vrot.lane.b32.xlu1 %v6626_v19, %s6407_s22 }
 0x2e7   :  { %739 = vrot.lane.b32.xlu1 %v6603_v34, %s6404_s5 }
 0x32f   :  { %v1043_v20 = vpop.permute.xlu0 %1042 }
 0x330   :  { %1046 = vst.msk [vmem:[#allocation2] sm:$0x3] %vm1045_vm3, %v1043_v20  ;;  %5736 = vmatmul.mubr.msk.f32.vlgmr.msra.gmra.mxu0 %vm838_vm4, %v1043_v20 }
 0x331   :  { %5744 = vmatpush3.msra.mxu0 %v6550_v11  ;;  %5745 = vmatprep.mubr.msk.f32.mxu0 %vm6403_vm0, %v6402_v0 }
 0x332   :  { %5753 = vmatprep.subr.mxu0 %v6402_v0 }
 0x355   :  { %v1049_v21 = vpop.permute.xlu1 %1048 }
 0x356   :  { %1052 = vst.msk [vmem:[#allocation3 + $0xe] sm:$0x3] %vm1045_vm3, %v1049_v21  ;;  %5741 = vmatmul.mubr.msk.f32.vlgmr.msra.gmra.mxu1 %vm838_vm4, %v1049_v21 }
 0x357   :  { %5749 = vmatpush3.msra.mxu1 %v6557_v12  ;;  %5750 = vmatprep.mubr.msk.f32.mxu1 %vm6403_vm0, %v6402_v0 }
 0x358   :  { %5758 = vmatprep.subr.mxu1 %v6402_v0 }
 0x359   :  { %v740_v24 = vpop.permute.xlu1 %739 }
 0x35a   :  { %743 = vst.msk [vmem:[#allocation7 + $0xc] sm:$0x3] %vm239_vm2, %v740_v24 }
 0x361   :  { %v1152_v40 = vld [vmem:[#allocation7 + $0xc] sm:$0x3] }
 0x3f0   :  { %v1122_v25 = vpop.f32.mrf.mxu0 }
 0x3f1   :  { %v1123_v26 = vadd.f32 %v6605_v38, %v1122_v25 }
 0x3f2   :  { %v5737_v27 = vpop.f32.mrf.mxu0 }
 0x3f3   :  { %1134 = vrot.lane.b32.xlu1 %v1123_v26, %s6405_s28  ;;  %v1126_v34 = vadd.f32 %v1123_v26, %v1053_v33 }
 0x3f5   :  { %v5471_v35 = vmul.f32 -1.442695, %v1126_v34 }
 0x3f7   :  { %5995 = vpow2.f32 %v5471_v35 }
 0x404   :  { %v5996_v36 = vpop.eup %5995 }
 0x405   :  { %v1130_v37 = vadd.f32 1.0, %v5996_v36 }
 0x407   :  { %5997 = vrcp.f32 %v1130_v37 }
 0x414   :  { %v5998_v42 = vpop.eup %5997 }
 0x415   :  { %v1144_v57 = vsub.f32 1.0, %v5998_v42  ;;  %v1150_v59 = vmul.f32 %v5998_v42, %v6622_v10 }
 0x416   :  { %v1221_v30 = vpop.f32.mrf.mxu1 }
 0x417   :  { %v1222_v31 = vadd.f32 %v6607_v39, %v1221_v30 }
 0x418   :  { %v5742_v32 = vpop.f32.mrf.mxu1 }
 0x419   :  { %1233 = vrot.lane.b32.xlu0 %v1222_v31, %s6405_s28  ;;  %v1225_v41 = vadd.f32 %v1222_v31, %v1152_v40 }
 0x41b   :  { %v5473_v44 = vmul.f32 -1.442695, %v1225_v41 }
 0x41d   :  { %5999 = vpow2.f32 %v5473_v44 }
 0x42a   :  { %v6000_v46 = vpop.eup %5999 }
 0x42b   :  { %v1229_v47 = vadd.f32 1.0, %v6000_v46 }
 0x42d   :  { %6001 = vrcp.f32 %v1229_v47 }
 0x43a   :  { %v6002_v48 = vpop.eup %6001 }
 0x43b   :  { %v1243_v62 = vsub.f32 1.0, %v6002_v48  ;;  %v1249_v1 = vmul.f32 %v6002_v48, %v6626_v19 }
 0x465   :  { %v1135_v43 = vpop.permute.xlu1 %1134 }
 0x466   :  { %v1137_v45 = vmul.f32 %v5998_v42, %v1135_v43 }
 0x468   :  { %1139 = vrot.lane.b32.xlu1 %v1137_v45, %s6406_s21 }
 0x48b   :  { %v1234_v49 = vpop.permute.xlu0 %1233 }
 0x48c   :  { %v1236_v50 = vmul.f32 %v6002_v48, %v1234_v49 }
 0x48e   :  { %1238 = vrot.lane.b32.xlu0 %v1236_v50, %s6406_s21 }
 0x4da   :  { %v1140_v51 = vpop.permute.xlu1 %1139 }
 0x4db   :  { %v1142_v52 = vadd.f32 %v1140_v51, %v1053_v33 }
 0x4dd   :  { %6003 = vtanh.f32 %v1142_v52 }
 0x4ea   :  { %v6004_v53 = vpop.eup %6003 }
 0x4eb   :  { %1146 = vrot.lane.b32.xlu1 %v6004_v53, %s6407_s22 }
 0x500   :  { %v1239_v54 = vpop.permute.xlu0 %1238 }
 0x501   :  { %v1241_v55 = vadd.f32 %v1239_v54, %v1152_v40 }
 0x503   :  { %6005 = vtanh.f32 %v1241_v55 }
 0x510   :  { %v6006_v56 = vpop.eup %6005 }
 0x511   :  { %1245 = vrot.lane.b32.xlu0 %v6006_v56, %s6407_s22 }
 0x55d   :  { %v1147_v58 = vpop.permute.xlu1 %1146 }
 0x55e   :  { %v1149_v60 = vmul.f32 %v1147_v58, %v1144_v57 }
 0x560   :  { %v6654_v61 = vadd.f32 %v1150_v59, %v1149_v60 }
 0x562   :  { %1252 = vrot.lane.b32.xlu1 %v6654_v61, %s6407_s22 }
 0x583   :  { %v1246_v63 = vpop.permute.xlu0 %1245 }
 0x584   :  { %v1248_v2 = vmul.f32 %v1246_v63, %v1243_v62  ;;  %v1473_v62 = vld [vmem:[#allocation6 + $0x6] sm:$0x3] }
 0x586   :  { %v6659_v3 = vadd.f32 %v1249_v1, %v1248_v2 }
 0x588   :  { %1258 = vrot.lane.b32.xlu0 %v6659_v3, %s6407_s22 }
 0x58c   :  { %656 = vrot.lane.b32.xlu0 %v6597_v29, %s6404_s5 }
 0x5d4   :  { %v1253_v4 = vpop.permute.xlu1 %1252 }
 0x5d5   :  { %1256 = vst.msk [vmem:[#allocation2 + $0x2] sm:$0x3] %vm1045_vm3, %v1253_v4  ;;  %5746 = vmatmul.mubr.msk.f32.vlgmr.msra.gmra.mxu0 %vm838_vm4, %v1253_v4 }
 0x5d6   :  { %5754 = vmatpush3.msra.mxu0 %v6550_v11  ;;  %5755 = vmatprep.mubr.msk.f32.mxu0 %vm6403_vm0, %v6402_v0 }
 0x5d7   :  { %5763 = vmatprep.subr.mxu0 %v6402_v0 }
 0x5fa   :  { %v1259_v5 = vpop.permute.xlu0 %1258 }
 0x5fb   :  { %1262 = vst.msk [vmem:[#allocation3 + $0xc] sm:$0x3] %vm1045_vm3, %v1259_v5  ;;  %5751 = vmatmul.mubr.msk.f32.vlgmr.msra.gmra.mxu1 %vm838_vm4, %v1259_v5 }
 0x5fc   :  { %5759 = vmatpush3.msra.mxu1 %v6557_v12  ;;  %5760 = vmatprep.mubr.msk.f32.mxu1 %vm6403_vm0, %v6402_v0 }
 0x5fd   :  { %5768 = vmatprep.subr.mxu1 %v6402_v0 }
 0x5fe   :  { %v657_v29 = vpop.permute.xlu0 %656 }
 0x5ff   :  { %660 = vst.msk [vmem:[#allocation7 + $0xa] sm:$0x3] %vm239_vm2, %v657_v29 }
 0x606   :  { %v1362_v21 = vld [vmem:[#allocation7 + $0xa] sm:$0x3] }
 0x695   :  { %v1332_v6 = vpop.f32.mrf.mxu0 }
 0x696   :  { %v1333_v7 = vadd.f32 %v6605_v38, %v1332_v6 }
 0x697   :  { %v5747_v8 = vpop.f32.mrf.mxu0 }
 0x698   :  { %1344 = vrot.lane.b32.xlu0 %v1333_v7, %s6405_s28  ;;  %v1336_v15 = vadd.f32 %v1333_v7, %v1263_v14 }
 0x69a   :  { %v5475_v18 = vmul.f32 -1.442695, %v1336_v15 }
 0x69c   :  { %6007 = vpow2.f32 %v5475_v18 }
 0x6a9   :  { %v6008_v19 = vpop.eup %6007 }
 0x6aa   :  { %v1340_v20 = vadd.f32 1.0, %v6008_v19 }
 0x6ac   :  { %6009 = vrcp.f32 %v1340_v20 }
 0x6b9   :  { %v6010_v25 = vpop.eup %6009 }
 0x6ba   :  { %v1354_v44 = vsub.f32 1.0, %v6010_v25  ;;  %v1360_v46 = vmul.f32 %v6010_v25, %v6654_v61 }
 0x6bb   :  { %v1431_v9 = vpop.f32.mrf.mxu1 }
 0x6bc   :  { %v1432_v10 = vadd.f32 %v6607_v39, %v1431_v9 }
 0x6bd   :  { %v5752_v13 = vpop.f32.mrf.mxu1 }
 0x6be   :  { %1443 = vrot.lane.b32.xlu1 %v1432_v10, %s6405_s28  ;;  %v1435_v24 = vadd.f32 %v1432_v10, %v1362_v21 }
 0x6c0   :  { %v5477_v27 = vmul.f32 -1.442695, %v1435_v24 }
 0x6c2   :  { %6011 = vpow2.f32 %v5477_v27 }
 0x6cf   :  { %v6012_v31 = vpop.eup %6011 }
 0x6d0   :  { %v1439_v32 = vadd.f32 1.0, %v6012_v31 }
 0x6d2   :  { %6013 = vrcp.f32 %v1439_v32 }
 0x6df   :  { %v6014_v33 = vpop.eup %6013 }
 0x6e0   :  { %v1453_v49 = vsub.f32 1.0, %v6014_v33  ;;  %v1459_v51 = vmul.f32 %v6014_v33, %v6659_v3 }
 0x70a   :  { %v1345_v26 = vpop.permute.xlu0 %1344 }
 0x70b   :  { %v1347_v30 = vmul.f32 %v6010_v25, %v1345_v26 }
 0x70d   :  { %1349 = vrot.lane.b32.xlu0 %v1347_v30, %s6406_s21 }
 0x730   :  { %v1444_v34 = vpop.permute.xlu1 %1443 }
 0x731   :  { %v1446_v35 = vmul.f32 %v6014_v33, %v1444_v34 }
 0x733   :  { %1448 = vrot.lane.b32.xlu1 %v1446_v35, %s6406_s21 }
 0x77f   :  { %v1350_v36 = vpop.permute.xlu0 %1349 }
 0x780   :  { %v1352_v37 = vadd.f32 %v1350_v36, %v1263_v14 }
 0x782   :  { %6015 = vtanh.f32 %v1352_v37 }
 0x78f   :  { %v6016_v40 = vpop.eup %6015 }
 0x790   :  { %1356 = vrot.lane.b32.xlu0 %v6016_v40, %s6407_s22 }
 0x7a5   :  { %v1449_v41 = vpop.permute.xlu1 %1448 }
 0x7a6   :  { %v1451_v42 = vadd.f32 %v1449_v41, %v1362_v21 }
 0x7a8   :  { %6017 = vtanh.f32 %v1451_v42 }
 0x7b5   :  { %v6018_v43 = vpop.eup %6017 }
 0x7b6   :  { %1455 = vrot.lane.b32.xlu1 %v6018_v43, %s6407_s22 }
 0x802   :  { %v1357_v45 = vpop.permute.xlu0 %1356 }
 0x803   :  { %v1359_v47 = vmul.f32 %v1357_v45, %v1354_v44 }
 0x805   :  { %v6687_v48 = vadd.f32 %v1360_v46, %v1359_v47 }
 0x807   :  { %1462 = vrot.lane.b32.xlu0 %v6687_v48, %s6407_s22 }
 0x828   :  { %v1456_v50 = vpop.permute.xlu1 %1455 }
 0x829   :  { %v1458_v52 = vmul.f32 %v1456_v50, %v1453_v49 }
 0x82b   :  { %v6692_v53 = vadd.f32 %v1459_v51, %v1458_v52 }
 0x82d   :  { %1468 = vrot.lane.b32.xlu1 %v6692_v53, %s6407_s22 }
 0x831   :  { %573 = vrot.lane.b32.xlu1 %v6595_v28, %s6404_s5 }
 0x879   :  { %v1463_v54 = vpop.permute.xlu0 %1462 }
 0x87a   :  { %1466 = vst.msk [vmem:[#allocation2 + $0x4] sm:$0x3] %vm1045_vm3, %v1463_v54  ;;  %5756 = vmatmul.mubr.msk.f32.vlgmr.msra.gmra.mxu0 %vm838_vm4, %v1463_v54 }
 0x87b   :  { %5764 = vmatpush3.msra.mxu0 %v6550_v11  ;;  %5765 = vmatprep.mubr.msk.f32.mxu0 %vm6403_vm0, %v6402_v0 }
 0x87c   :  { %5773 = vmatprep.subr.mxu0 %v6402_v0 }
 0x89f   :  { %v1469_v55 = vpop.permute.xlu1 %1468 }
 0x8a0   :  { %1472 = vst.msk [vmem:[#allocation3 + $0xa] sm:$0x3] %vm1045_vm3, %v1469_v55  ;;  %5761 = vmatmul.mubr.msk.f32.vlgmr.msra.gmra.mxu1 %vm838_vm4, %v1469_v55 }
 0x8a1   :  { %5769 = vmatpush3.msra.mxu1 %v6557_v12  ;;  %5770 = vmatprep.mubr.msk.f32.mxu1 %vm6403_vm0, %v6402_v0 }
 0x8a2   :  { %5778 = vmatprep.subr.mxu1 %v6402_v0 }
 0x8a3   :  { %v574_v28 = vpop.permute.xlu1 %573 }
 0x8a4   :  { %577 = vst.msk [vmem:[#allocation7 + $0x8] sm:$0x3] %vm239_vm2, %v574_v28 }
 0x8ab   :  { %v1572_v4 = vld [vmem:[#allocation7 + $0x8] sm:$0x3] }
 0x93a   :  { %v1542_v56 = vpop.f32.mrf.mxu0 }
 0x93b   :  { %v1543_v57 = vadd.f32 %v6605_v38, %v1542_v56 }
 0x93c   :  { %v5757_v58 = vpop.f32.mrf.mxu0 }
 0x93d   :  { %1554 = vrot.lane.b32.xlu1 %v1543_v57, %s6405_s28  ;;  %v1546_v63 = vadd.f32 %v1543_v57, %v1473_v62 }
 0x93f   :  { %v5479_v1 = vmul.f32 -1.442695, %v1546_v63 }
 0x941   :  { %6019 = vpow2.f32 %v5479_v1 }
 0x94e   :  { %v6020_v2 = vpop.eup %6019 }
 0x94f   :  { %v1550_v3 = vadd.f32 1.0, %v6020_v2 }
 0x951   :  { %6021 = vrcp.f32 %v1550_v3 }
 0x95e   :  { %v6022_v29 = vpop.eup %6021 }
 0x95f   :  { %v1564_v26 = vsub.f32 1.0, %v6022_v29  ;;  %v1570_v30 = vmul.f32 %v6022_v29, %v6687_v48  ;;  %v1683_v48 = vld [vmem:[#allocation6 + $0x8] sm:$0x3] }
 0x960   :  { %v1641_v59 = vpop.f32.mrf.mxu1 }
 0x961   :  { %v1642_v60 = vadd.f32 %v6607_v39, %v1641_v59 }
 0x962   :  { %v5762_v61 = vpop.f32.mrf.mxu1 }
 0x963   :  { %1653 = vrot.lane.b32.xlu0 %v1642_v60, %s6405_s28  ;;  %v1645_v5 = vadd.f32 %v1642_v60, %v1572_v4 }
 0x965   :  { %v5481_v7 = vmul.f32 -1.442695, %v1645_v5 }
 0x967   :  { %6023 = vpow2.f32 %v5481_v7 }
 0x974   :  { %v6024_v9 = vpop.eup %6023 }
 0x975   :  { %v1649_v10 = vadd.f32 1.0, %v6024_v9 }
 0x977   :  { %6025 = vrcp.f32 %v1649_v10 }
 0x984   :  { %v6026_v13 = vpop.eup %6025 }
 0x985   :  { %v1663_v33 = vsub.f32 1.0, %v6026_v13  ;;  %v1669_v35 = vmul.f32 %v6026_v13, %v6692_v53 }
 0x9af   :  { %v1555_v6 = vpop.permute.xlu1 %1554 }
 0x9b0   :  { %v1557_v8 = vmul.f32 %v6022_v29, %v1555_v6 }
 0x9b2   :  { %1559 = vrot.lane.b32.xlu1 %v1557_v8, %s6406_s21 }
 0x9d5   :  { %v1654_v14 = vpop.permute.xlu0 %1653 }
 0x9d6   :  { %v1656_v15 = vmul.f32 %v6026_v13, %v1654_v14 }
 0x9d8   :  { %1658 = vrot.lane.b32.xlu0 %v1656_v15, %s6406_s21 }
 0xa24   :  { %v1560_v18 = vpop.permute.xlu1 %1559 }
 0xa25   :  { %v1562_v19 = vadd.f32 %v1560_v18, %v1473_v62 }
 0xa27   :  { %6027 = vtanh.f32 %v1562_v19 }
 0xa34   :  { %v6028_v20 = vpop.eup %6027 }
 0xa35   :  { %1566 = vrot.lane.b32.xlu1 %v6028_v20, %s6407_s22 }
 0xa4a   :  { %v1659_v21 = vpop.permute.xlu0 %1658 }
 0xa4b   :  { %v1661_v24 = vadd.f32 %v1659_v21, %v1572_v4 }
 0xa4d   :  { %6029 = vtanh.f32 %v1661_v24 }
 0xa5a   :  { %v6030_v25 = vpop.eup %6029 }
 0xa5b   :  { %1665 = vrot.lane.b32.xlu0 %v6030_v25, %s6407_s22 }
 0xaa7   :  { %v1567_v27 = vpop.permute.xlu1 %1566 }
 0xaa8   :  { %v1569_v31 = vmul.f32 %v1567_v27, %v1564_v26 }
 0xaaa   :  { %v6720_v32 = vadd.f32 %v1570_v30, %v1569_v31  ;;  %v1893_v31 = vld [vmem:[#allocation6 + $0xa] sm:$0x3] }
 0xaac   :  { %1672 = vrot.lane.b32.xlu1 %v6720_v32, %s6407_s22 }
 0xacd   :  { %v1666_v34 = vpop.permute.xlu0 %1665 }
 0xace   :  { %v1668_v36 = vmul.f32 %v1666_v34, %v1663_v33 }
 0xad0   :  { %v6725_v37 = vadd.f32 %v1669_v35, %v1668_v36 }
 0xad2   :  { %1678 = vrot.lane.b32.xlu0 %v6725_v37, %s6407_s22 }
 0xad6   :  { %490 = vrot.lane.b32.xlu0 %v6589_v23, %s6404_s5 }
 0xb1e   :  { %v1673_v40 = vpop.permute.xlu1 %1672 }
 0xb1f   :  { %1676 = vst.msk [vmem:[#allocation2 + $0x6] sm:$0x3] %vm1045_vm3, %v1673_v40  ;;  %5766 = vmatmul.mubr.msk.f32.vlgmr.msra.gmra.mxu0 %vm838_vm4, %v1673_v40 }
 0xb20   :  { %5774 = vmatpush3.msra.mxu0 %v6550_v11  ;;  %5775 = vmatprep.mubr.msk.f32.mxu0 %vm6403_vm0, %v6402_v0 }
 0xb21   :  { %5783 = vmatprep.subr.mxu0 %v6402_v0 }
 0xb44   :  { %v1679_v41 = vpop.permute.xlu0 %1678 }
 0xb45   :  { %1682 = vst.msk [vmem:[#allocation3 + $0x8] sm:$0x3] %vm1045_vm3, %v1679_v41  ;;  %5771 = vmatmul.mubr.msk.f32.vlgmr.msra.gmra.mxu1 %vm838_vm4, %v1679_v41 }
 0xb46   :  { %5779 = vmatpush3.msra.mxu1 %v6557_v12  ;;  %5780 = vmatprep.mubr.msk.f32.mxu1 %vm6403_vm0, %v6402_v0 }
 0xb47   :  { %5788 = vmatprep.subr.mxu1 %v6402_v0 }
 0xb48   :  { %v491_v23 = vpop.permute.xlu0 %490 }
 0xb49   :  { %494 = vst.msk [vmem:[#allocation7 + $0x6] sm:$0x3] %vm239_vm2, %v491_v23 }
 0xb50   :  { %v1782_v53 = vld [vmem:[#allocation7 + $0x6] sm:$0x3] }
 0xbdf   :  { %v1752_v42 = vpop.f32.mrf.mxu0 }
 0xbe0   :  { %v1753_v43 = vadd.f32 %v6605_v38, %v1752_v42 }
 0xbe1   :  { %v5767_v44 = vpop.f32.mrf.mxu0 }
 0xbe2   :  { %1764 = vrot.lane.b32.xlu0 %v1753_v43, %s6405_s28  ;;  %v1756_v49 = vadd.f32 %v1753_v43, %v1683_v48 }
 0xbe4   :  { %v5483_v50 = vmul.f32 -1.442695, %v1756_v49 }
 0xbe6   :  { %6031 = vpow2.f32 %v5483_v50 }
 0xbf3   :  { %v6032_v51 = vpop.eup %6031 }
 0xbf4   :  { %v1760_v52 = vadd.f32 1.0, %v6032_v51 }
 0xbf6   :  { %6033 = vrcp.f32 %v1760_v52 }
 0xc03   :  { %v6034_v55 = vpop.eup %6033 }
 0xc04   :  { %v1774_v29 = vsub.f32 1.0, %v6034_v55  ;;  %v1780_v7 = vmul.f32 %v6034_v55, %v6720_v32 }
 0xc05   :  { %v1851_v45 = vpop.f32.mrf.mxu1 }
 0xc06   :  { %v1852_v46 = vadd.f32 %v6607_v39, %v1851_v45 }
 0xc07   :  { %v5772_v47 = vpop.f32.mrf.mxu1 }
 0xc08   :  { %1863 = vrot.lane.b32.xlu1 %v1852_v46, %s6405_s28  ;;  %v1855_v54 = vadd.f32 %v1852_v46, %v1782_v53 }
 0xc0a   :  { %v5485_v56 = vmul.f32 -1.442695, %v1855_v54 }
 0xc0c   :  { %6035 = vpow2.f32 %v5485_v56 }
 0xc19   :  { %v6036_v58 = vpop.eup %6035 }
 0xc1a   :  { %v1859_v59 = vadd.f32 1.0, %v6036_v58 }
 0xc1c   :  { %6037 = vrcp.f32 %v1859_v59 }
 0xc29   :  { %v6038_v60 = vpop.eup %6037 }
 0xc2a   :  { %v1873_v10 = vsub.f32 1.0, %v6038_v60  ;;  %v1879_v14 = vmul.f32 %v6038_v60, %v6725_v37 }
 0xc54   :  { %v1765_v28 = vpop.permute.xlu0 %1764 }
 0xc55   :  { %v1767_v57 = vmul.f32 %v6034_v55, %v1765_v28 }
 0xc57   :  { %1769 = vrot.lane.b32.xlu0 %v1767_v57, %s6406_s21 }
 0xc7a   :  { %v1864_v61 = vpop.permute.xlu1 %1863 }
 0xc7b   :  { %v1866_v62 = vmul.f32 %v6038_v60, %v1864_v61 }
 0xc7d   :  { %1868 = vrot.lane.b32.xlu1 %v1866_v62, %s6406_s21 }
 0xcc9   :  { %v1770_v63 = vpop.permute.xlu0 %1769 }
 0xcca   :  { %v1772_v1 = vadd.f32 %v1770_v63, %v1683_v48 }
 0xccc   :  { %6039 = vtanh.f32 %v1772_v1 }
 0xcd9   :  { %v6040_v2 = vpop.eup %6039 }
 0xcda   :  { %1776 = vrot.lane.b32.xlu0 %v6040_v2, %s6407_s22 }
 0xcef   :  { %v1869_v3 = vpop.permute.xlu1 %1868 }
 0xcf0   :  { %v1871_v4 = vadd.f32 %v1869_v3, %v1782_v53 }
 0xcf2   :  { %6041 = vtanh.f32 %v1871_v4 }
 0xcff   :  { %v6042_v5 = vpop.eup %6041 }
 0xd00   :  { %1875 = vrot.lane.b32.xlu1 %v6042_v5, %s6407_s22 }
 0xd4c   :  { %v1777_v6 = vpop.permute.xlu0 %1776 }
 0xd4d   :  { %v1779_v8 = vmul.f32 %v1777_v6, %v1774_v29 }
 0xd4f   :  { %v6753_v9 = vadd.f32 %v1780_v7, %v1779_v8 }
 0xd51   :  { %1882 = vrot.lane.b32.xlu0 %v6753_v9, %s6407_s22 }
 0xd72   :  { %v1876_v13 = vpop.permute.xlu1 %1875 }
 0xd73   :  { %v1878_v15 = vmul.f32 %v1876_v13, %v1873_v10 }
 0xd75   :  { %v6758_v18 = vadd.f32 %v1879_v14, %v1878_v15 }
 0xd77   :  { %1888 = vrot.lane.b32.xlu1 %v6758_v18, %s6407_s22 }
 0xd7b   :  { %407 = vrot.lane.b32.xlu1 %v6587_v22, %s6404_s5 }
 0xdc3   :  { %v1883_v19 = vpop.permute.xlu0 %1882 }
 0xdc4   :  { %1886 = vst.msk [vmem:[#allocation2 + $0x8] sm:$0x3] %vm1045_vm3, %v1883_v19  ;;  %5776 = vmatmul.mubr.msk.f32.vlgmr.msra.gmra.mxu0 %vm838_vm4, %v1883_v19 }
 0xdc5   :  { %5784 = vmatpush3.msra.mxu0 %v6550_v11  ;;  %5785 = vmatprep.mubr.msk.f32.mxu0 %vm6403_vm0, %v6402_v0 }
 0xdc6   :  { %5793 = vmatprep.subr.mxu0 %v6402_v0 }
 0xde9   :  { %v1889_v20 = vpop.permute.xlu1 %1888 }
 0xdea   :  { %1892 = vst.msk [vmem:[#allocation3 + $0x6] sm:$0x3] %vm1045_vm3, %v1889_v20  ;;  %5781 = vmatmul.mubr.msk.f32.vlgmr.msra.gmra.mxu1 %vm838_vm4, %v1889_v20 }
 0xdeb   :  { %5789 = vmatpush3.msra.mxu1 %v6557_v12  ;;  %5790 = vmatprep.mubr.msk.f32.mxu1 %vm6403_vm0, %v6402_v0 }
 0xdec   :  { %5798 = vmatprep.subr.mxu1 %v6402_v0 }
 0xded   :  { %v408_v22 = vpop.permute.xlu1 %407 }
 0xdee   :  { %411 = vst.msk [vmem:[#allocation7 + $0x4] sm:$0x3] %vm239_vm2, %v408_v22 }
 0xdf5   :  { %v1992_v36 = vld [vmem:[#allocation7 + $0x4] sm:$0x3] }
 0xe84   :  { %v1962_v21 = vpop.f32.mrf.mxu0 }
 0xe85   :  { %v1963_v24 = vadd.f32 %v6605_v38, %v1962_v21 }
 0xe86   :  { %v5777_v25 = vpop.f32.mrf.mxu0 }
 0xe87   :  { %1974 = vrot.lane.b32.xlu1 %v1963_v24, %s6405_s28  ;;  %v1966_v32 = vadd.f32 %v1963_v24, %v1893_v31 }
 0xe89   :  { %v5487_v33 = vmul.f32 -1.442695, %v1966_v32 }
 0xe8b   :  { %6043 = vpow2.f32 %v5487_v33 }
 0xe98   :  { %v6044_v34 = vpop.eup %6043 }
 0xe99   :  { %v1970_v35 = vadd.f32 1.0, %v6044_v34 }
 0xe9b   :  { %6045 = vrcp.f32 %v1970_v35 }
 0xea8   :  { %v6046_v40 = vpop.eup %6045 }
 0xea9   :  { %v1984_v54 = vsub.f32 1.0, %v6046_v40  ;;  %v1990_v28 = vmul.f32 %v6046_v40, %v6753_v9 }
 0xeaa   :  { %v2061_v26 = vpop.f32.mrf.mxu1 }
 0xeab   :  { %v2062_v27 = vadd.f32 %v6607_v39, %v2061_v26 }
 0xeac   :  { %v5782_v30 = vpop.f32.mrf.mxu1 }
 0xead   :  { %2073 = vrot.lane.b32.xlu0 %v2062_v27, %s6405_s28  ;;  %v2065_v37 = vadd.f32 %v2062_v27, %v1992_v36 }
 0xeaf   :  { %v5489_v23 = vmul.f32 -1.442695, %v2065_v37 }
 0xeb1   :  { %6047 = vpow2.f32 %v5489_v23 }
 0xebe   :  { %v6048_v43 = vpop.eup %6047 }
 0xebf   :  { %v2069_v44 = vadd.f32 1.0, %v6048_v43 }
 0xec1   :  { %6049 = vrcp.f32 %v2069_v44  ;;  %v2522_v44 = vld [vmem:[#allocation19] sm:$0xff] }
 0xece   :  { %v6050_v45 = vpop.eup %6049 }
 0xecf   :  { %v2083_v58 = vsub.f32 1.0, %v6050_v45  ;;  %v2089_v60 = vmul.f32 %v6050_v45, %v6758_v18 }
 0xef9   :  { %v1975_v41 = vpop.permute.xlu1 %1974 }
 0xefa   :  { %v1977_v42 = vmul.f32 %v6046_v40, %v1975_v41 }
 0xefc   :  { %1979 = vrot.lane.b32.xlu1 %v1977_v42, %s6406_s21 }
 0xf1f   :  { %v2074_v46 = vpop.permute.xlu0 %2073 }
 0xf20   :  { %v2076_v47 = vmul.f32 %v6050_v45, %v2074_v46  ;;  %v2525_v46 = vld [vmem:[#allocation2] sm:$0x3] }
 0xf22   :  { %2078 = vrot.lane.b32.xlu0 %v2076_v47, %s6406_s21  ;;  %v2686_v47 = vld [vmem:[#allocation2 + $0x2] sm:$0x3] }
 0xf6e   :  { %v1980_v48 = vpop.permute.xlu1 %1979 }
 0xf6f   :  { %v1982_v49 = vadd.f32 %v1980_v48, %v1893_v31  ;;  %v2843_v48 = vld [vmem:[#allocation2 + $0x4] sm:$0x3] }
 0xf71   :  { %6051 = vtanh.f32 %v1982_v49  ;;  %v3000_v49 = vld [vmem:[#allocation2 + $0x6] sm:$0x3] }
 0xf7e   :  { %v6052_v50 = vpop.eup %6051 }
 0xf7f   :  { %1986 = vrot.lane.b32.xlu1 %v6052_v50, %s6407_s22  ;;  %v3157_v50 = vld [vmem:[#allocation2 + $0x8] sm:$0x3] }
 0xf94   :  { %v2079_v51 = vpop.permute.xlu0 %2078 }
 0xf95   :  { %v2081_v52 = vadd.f32 %v2079_v51, %v1992_v36 }
 0xf97   :  { %6053 = vtanh.f32 %v2081_v52 }
 0xfa4   :  { %v6054_v53 = vpop.eup %6053 }
 0xfa5   :  { %2085 = vrot.lane.b32.xlu0 %v6054_v53, %s6407_s22 }
 0xff1   :  { %v1987_v55 = vpop.permute.xlu1 %1986 }
 0xff2   :  { %v1989_v56 = vmul.f32 %v1987_v55, %v1984_v54  ;;  %v6175_v54 = vld [vmem:[#allocation16] ss:$0 sm:$0xff] }
 0xff4   :  { %v6786_v57 = vadd.f32 %v1990_v28, %v1989_v56 }
 0xff6   :  { %2092 = vrot.lane.b32.xlu1 %v6786_v57, %s6407_s22 }
0x1017   :  { %v2086_v59 = vpop.permute.xlu0 %2085 }
0x1018   :  { %v2088_v61 = vmul.f32 %v2086_v59, %v2083_v58 }
0x101a   :  { %v6791_v62 = vadd.f32 %v2089_v60, %v2088_v61 }
0x101c   :  { %2098 = vrot.lane.b32.xlu0 %v6791_v62, %s6407_s22 }
0x1020   :  { %324 = vrot.lane.b32.xlu0 %v6581_v17, %s6404_s5 }
0x1068   :  { %v2093_v63 = vpop.permute.xlu1 %2092 }
0x1069   :  { %2096 = vst.msk [vmem:[#allocation2 + $0xa] sm:$0x3] %vm1045_vm3, %v2093_v63  ;;  %5786 = vmatmul.mubr.msk.f32.vlgmr.msra.gmra.mxu0 %vm838_vm4, %v2093_v63 }
0x106a   :  { %5794 = vmatpush3.msra.mxu0 %v6550_v11  ;;  %5795 = vmatprep.mubr.msk.f32.mxu0 %vm6403_vm0, %v6402_v0 }
0x106b   :  { %5803 = vmatprep.subr.mxu0 %v6402_v0 }
0x1070   :  { %v3314_v51 = vld [vmem:[#allocation2 + $0xa] sm:$0x3] }
0x108e   :  { %v2099_v1 = vpop.permute.xlu0 %2098 }
0x108f   :  { %2102 = vst.msk [vmem:[#allocation3 + $0x4] sm:$0x3] %vm1045_vm3, %v2099_v1  ;;  %5791 = vmatmul.mubr.msk.f32.vlgmr.msra.gmra.mxu1 %vm838_vm4, %v2099_v1 }
0x1090   :  { %5799 = vmatpush3.msra.mxu1 %v6557_v12  ;;  %5800 = vmatprep.mubr.msk.f32.mxu1 %vm6403_vm0, %v6402_v0  ;;  %v2103_v12 = vld [vmem:[#allocation6 + $0xc] sm:$0x3] }
0x1091   :  { %5808 = vmatprep.subr.mxu1 %v6402_v0 }
0x1092   :  { %v325_v17 = vpop.permute.xlu0 %324 }
0x1093   :  { %328 = vst.msk [vmem:[#allocation7 + $0x2] sm:$0x3] %vm239_vm2, %v325_v17 }
0x109a   :  { %v2202_v10 = vld [vmem:[#allocation7 + $0x2] sm:$0x3] }
0x1129   :  { %v2172_v11 = vpop.f32.mrf.mxu0 }
0x112a   :  { %v2173_v2 = vadd.f32 %v6605_v38, %v2172_v11 }
0x112b   :  { %v5787_v3 = vpop.f32.mrf.mxu0 }
0x112c   :  { %2184 = vrot.lane.b32.xlu0 %v2173_v2, %s6405_s28  ;;  %v2176_v6 = vadd.f32 %v2173_v2, %v2103_v12 }
0x112e   :  { %v5491_v7 = vmul.f32 -1.442695, %v2176_v6 }
0x1130   :  { %6055 = vpow2.f32 %v5491_v7  ;;  %v2313_v7 = vld [vmem:[#allocation6 + $0xe] sm:$0x3] }
0x113d   :  { %v6056_v8 = vpop.eup %6055 }
0x113e   :  { %v2180_v9 = vadd.f32 1.0, %v6056_v8 }
0x1140   :  { %6057 = vrcp.f32 %v2180_v9 }
0x114d   :  { %v6058_v14 = vpop.eup %6057 }
0x114e   :  { %v2194_v32 = vsub.f32 1.0, %v6058_v14  ;;  %v2200_v34 = vmul.f32 %v6058_v14, %v6786_v57  ;;  %v6176_v57 = vld [vmem:[#allocation17] ss:$0 sm:$0xff] }
0x114f   :  { %v2271_v4 = vpop.f32.mrf.mxu1 }
0x1150   :  { %v2272_v5 = vadd.f32 %v6607_v39, %v2271_v4 }
0x1151   :  { %v5792_v29 = vpop.f32.mrf.mxu1 }
0x1152   :  { %2283 = vrot.lane.b32.xlu1 %v2272_v5, %s6405_s28  ;;  %v2275_v13 = vadd.f32 %v2272_v5, %v2202_v10 }
0x1154   :  { %v5493_v15 = vmul.f32 -1.442695, %v2275_v13 }
0x1156   :  { %6059 = vpow2.f32 %v5493_v15 }
0x1163   :  { %v6060_v39 = vpop.eup %6059 }
0x1164   :  { %v2279_v19 = vadd.f32 1.0, %v6060_v39 }
0x1166   :  { %6061 = vrcp.f32 %v2279_v19 }
0x1173   :  { %v6062_v20 = vpop.eup %6061 }
0x1174   :  { %v2293_v37 = vsub.f32 1.0, %v6062_v20  ;;  %v2299_v41 = vmul.f32 %v6062_v20, %v6791_v62 }
0x119e   :  { %v2185_v38 = vpop.permute.xlu0 %2184 }
0x119f   :  { %v2187_v18 = vmul.f32 %v6058_v14, %v2185_v38 }
0x11a1   :  { %2189 = vrot.lane.b32.xlu0 %v2187_v18, %s6406_s21 }
0x11c4   :  { %v2284_v22 = vpop.permute.xlu1 %2283 }
0x11c5   :  { %v2286_v21 = vmul.f32 %v6062_v20, %v2284_v22 }
0x11c7   :  { %2288 = vrot.lane.b32.xlu1 %v2286_v21, %s6406_s21 }
0x1213   :  { %v2190_v24 = vpop.permute.xlu0 %2189 }
0x1214   :  { %v2192_v25 = vadd.f32 %v2190_v24, %v2103_v12 }
0x1216   :  { %6063 = vtanh.f32 %v2192_v25 }
0x1223   :  { %v6064_v26 = vpop.eup %6063 }
0x1224   :  { %2196 = vrot.lane.b32.xlu0 %v6064_v26, %s6407_s22 }
0x1239   :  { %v2289_v27 = vpop.permute.xlu1 %2288 }
0x123a   :  { %v2291_v30 = vadd.f32 %v2289_v27, %v2202_v10 }
0x123c   :  { %6065 = vtanh.f32 %v2291_v30 }
0x1249   :  { %v6066_v31 = vpop.eup %6065 }
0x124a   :  { %2295 = vrot.lane.b32.xlu1 %v6066_v31, %s6407_s22 }
0x1296   :  { %v2197_v33 = vpop.permute.xlu0 %2196 }
0x1297   :  { %v2199_v35 = vmul.f32 %v2197_v33, %v2194_v32 }
0x1299   :  { %v6819_v36 = vadd.f32 %v2200_v34, %v2199_v35 }
0x129b   :  { %2302 = vrot.lane.b32.xlu0 %v6819_v36, %s6407_s22 }
0x12bc   :  { %v2296_v40 = vpop.permute.xlu1 %2295 }
0x12bd   :  { %v2298_v23 = vmul.f32 %v2296_v40, %v2293_v37 }
0x12bf   :  { %v6824_v42 = vadd.f32 %v2299_v41, %v2298_v23  ;;  %v2523_v23 = vld [vmem:[#allocation19 + $0x8] sm:$0xff] }
0x12c1   :  { %2308 = vrot.lane.b32.xlu1 %v6824_v42, %s6407_s22 }
0x12c5   :  { %242 = vrot.lane.b32.xlu1 %v6579_v16, %s6404_s5 }
0x130d   :  { %v2303_v43 = vpop.permute.xlu0 %2302 }
0x130e   :  { %2306 = vst.msk [vmem:[#allocation2 + $0xc] sm:$0x3] %vm1045_vm3, %v2303_v43  ;;  %5796 = vmatmul.mubr.msk.f32.vlgmr.msra.gmra.mxu0 %vm838_vm4, %v2303_v43 }
0x130f   :  { %5805 = vmatprep.mubr.msk.f32.mxu0 %vm6403_vm0, %v6402_v0  ;;  %5804 = vmatpush3.msra.mxu0 %v2523_v23 }
0x1310   :  { %5813 = vmatprep.subr.mxu0 %v6402_v0 }
0x1315   :  { %v3471_v52 = vld [vmem:[#allocation2 + $0xc] sm:$0x3] }
0x1333   :  { %v2309_v45 = vpop.permute.xlu1 %2308 }
0x1334   :  { %2312 = vst.msk [vmem:[#allocation3 + $0x2] sm:$0x3] %vm1045_vm3, %v2309_v45  ;;  %5801 = vmatmul.mubr.msk.f32.vlgmr.msra.gmra.mxu1 %vm838_vm4, %v2309_v45 }
0x1335   :  { %5809 = vmatpush3.msra.mxu1 %v2522_v44  ;;  %5810 = vmatprep.mubr.msk.f32.mxu1 %vm6403_vm0, %v6402_v0 }
0x1336   :  { %5818 = vmatprep.subr.mxu1 %v6402_v0 }
0x1337   :  { %v243_v16 = vpop.permute.xlu1 %242 }
0x1338   :  { %245 = vst.msk [vmem:[#allocation7] sm:$0x3] %vm239_vm2, %v243_v16  ;;  %5811 = vmatmul.mubr.msk.f32.vlgmr.msra.gmra.mxu1 %vm838_vm4, %v2525_v46 }
0x1339   :  { %5819 = vmatpush3.msra.mxu1 %v2522_v44  ;;  %5820 = vmatprep.mubr.msk.f32.mxu1 %vm6403_vm0, %v6402_v0 }
0x133a   :  { %5828 = vmatprep.subr.mxu1 %v6402_v0 }
0x133c   :  { %5821 = vmatmul.mubr.msk.f32.vlgmr.msra.gmra.mxu1 %vm838_vm4, %v2686_v47 }
0x133d   :  { %5829 = vmatpush3.msra.mxu1 %v2522_v44  ;;  %5830 = vmatprep.mubr.msk.f32.mxu1 %vm6403_vm0, %v6402_v0 }
0x133e   :  { %5838 = vmatprep.subr.mxu1 %v6402_v0 }
0x133f   :  { %v2412_v14 = vld [vmem:[#allocation7] sm:$0x3] }
0x1340   :  { %5831 = vmatmul.mubr.msk.f32.vlgmr.msra.gmra.mxu1 %vm838_vm4, %v2843_v48 }
0x1341   :  { %5839 = vmatpush3.msra.mxu1 %v2522_v44  ;;  %5840 = vmatprep.mubr.msk.f32.mxu1 %vm6403_vm0, %v6402_v0 }
0x1342   :  { %5848 = vmatprep.subr.mxu1 %v6402_v0 }
0x1344   :  { %5841 = vmatmul.mubr.msk.f32.vlgmr.msra.gmra.mxu1 %vm838_vm4, %v3000_v49 }
0x1345   :  { %5849 = vmatpush3.msra.mxu1 %v2522_v44  ;;  %5850 = vmatprep.mubr.msk.f32.mxu1 %vm6403_vm0, %v6402_v0 }
0x1346   :  { %5858 = vmatprep.subr.mxu1 %v6402_v0 }
0x1348   :  { %5851 = vmatmul.mubr.msk.f32.vlgmr.msra.gmra.mxu1 %vm838_vm4, %v3157_v50  ;;  %v2687_v50 = vld [vmem:[#allocation3 + $0x2] sm:$0x3] }
0x1349   :  { %5859 = vmatpush3.msra.mxu1 %v2522_v44  ;;  %5860 = vmatprep.mubr.msk.f32.mxu1 %vm6403_vm0, %v6402_v0 }
0x134a   :  { %5868 = vmatprep.subr.mxu1 %v6402_v0 }
0x134c   :  { %5861 = vmatmul.mubr.msk.f32.vlgmr.msra.gmra.mxu1 %vm838_vm4, %v3314_v51  ;;  %v2844_v51 = vld [vmem:[#allocation3 + $0x4] sm:$0x3] }
0x134d   :  { %5869 = vmatpush3.msra.mxu1 %v2522_v44  ;;  %5870 = vmatprep.mubr.msk.f32.mxu1 %vm6403_vm0, %v6402_v0 }
0x134e   :  { %5878 = vmatprep.subr.mxu1 %v6402_v0 }
0x1350   :  { %5871 = vmatmul.mubr.msk.f32.vlgmr.msra.gmra.mxu1 %vm838_vm4, %v3471_v52  ;;  %v3001_v52 = vld [vmem:[#allocation3 + $0x6] sm:$0x3] }
0x1351   :  { %5879 = vmatpush3.msra.mxu1 %v2522_v44  ;;  %5880 = vmatprep.mubr.msk.f32.mxu1 %vm6403_vm0, %v6402_v0 }
0x1352   :  { %5888 = vmatprep.subr.mxu1 %v6402_v0 }
0x13ce   :  { %v2382_v53 = vpop.f32.mrf.mxu0 }
0x13cf   :  { %v2383_v55 = vadd.f32 %v6175_v54, %v2382_v53  ;;  %v3158_v53 = vld [vmem:[#allocation3 + $0x8] sm:$0x3]  ;;  %v3315_v54 = vld [vmem:[#allocation3 + $0xa] sm:$0x3] }
0x13d0   :  { %v5797_v28 = vpop.f32.mrf.mxu0 }
0x13d1   :  { %2394 = vrot.lane.b32.xlu1 %v2383_v55, %s6405_s28  ;;  %v2386_v8 = vadd.f32 %v2383_v55, %v2313_v7  ;;  %v3472_v55 = vld [vmem:[#allocation3 + $0xc] sm:$0x3]  ;;  %v6939_v28 = vld [vmem:[%s7208_s9] sm:$0xff] }
0x13d3   :  { %v5495_v9 = vmul.f32 -1.442695, %v2386_v8 }
0x13d5   :  { %6067 = vpow2.f32 %v5495_v9 }
0x13e2   :  { %v6068_v10 = vpop.eup %6067 }
0x13e3   :  { %v2390_v13 = vadd.f32 1.0, %v6068_v10 }
0x13e5   :  { %6069 = vrcp.f32 %v2390_v13 }
0x13f2   :  { %v6070_v15 = vpop.eup %6069 }
0x13f3   :  { %v2404_v34 = vsub.f32 1.0, %v6070_v15  ;;  %v2410_v37 = vmul.f32 %v6070_v15, %v6819_v36  ;;  %v6895_v36 = vld [vmem:[#allocation22] sm:$0xff] }
0x13f4   :  { %v2481_v56 = vpop.f32.mrf.mxu1 }
0x13f5   :  { %v2482_v58 = vadd.f32 %v6176_v57, %v2481_v56  ;;  %v3629_v56 = vld [vmem:[#allocation3 + $0xe] sm:$0x3] }
0x13f6   :  { %v5802_v59 = vpop.f32.mrf.mxu1 }
0x13f7   :  { %2493 = vrot.lane.b32.xlu0 %v2482_v58, %s6405_s28  ;;  %v2485_v38 = vadd.f32 %v2482_v58, %v2412_v14 }
0x13f8   :  { %v6870_v60 = vpop.f32.mrf.mxu1 }
0x13f9   :  { %v5497_v39 = vmul.f32 -1.442695, %v2485_v38 }
0x13fa   :  { %v5812_v61 = vpop.f32.mrf.mxu1 }
0x13fb   :  { %6071 = vpow2.f32 %v5497_v39 }
0x13fc   :  { %v6872_v62 = vpop.f32.mrf.mxu1 }
0x13fe   :  { %v5822_v63 = vpop.f32.mrf.mxu1 }
0x13ff   :  { %v5500_v63 = vld [vmem:[#allocation20] ss:$0 sm:$0xff] }
0x1400   :  { %v6874_v1 = vpop.f32.mrf.mxu1 }
0x1402   :  { %v5832_v17 = vpop.f32.mrf.mxu1 }
0x1404   :  { %v6876_v11 = vpop.f32.mrf.mxu1 }
0x1406   :  { %v5842_v2 = vpop.f32.mrf.mxu1 }
0x1408   :  { %v6878_v3 = vpop.f32.mrf.mxu1  ;;  %v6072_v20 = vpop.eup %6071 }
0x1409   :  { %v2489_v22 = vadd.f32 1.0, %v6072_v20 }
0x140a   :  { %v5852_v4 = vpop.f32.mrf.mxu1 }
0x140b   :  { %6073 = vrcp.f32 %v2489_v22 }
0x140c   :  { %v6880_v5 = vpop.f32.mrf.mxu1 }
0x140e   :  { %v5862_v29 = vpop.f32.mrf.mxu1 }
0x1410   :  { %v6882_v12 = vpop.f32.mrf.mxu1 }
0x1412   :  { %v5872_v6 = vpop.f32.mrf.mxu1 }
0x1418   :  { %v6074_v21 = vpop.eup %6073 }
0x1419   :  { %v2503_v43 = vsub.f32 1.0, %v6074_v21  ;;  %v2509_v45 = vmul.f32 %v6074_v21, %v6824_v42 }
0x1443   :  { %v2395_v18 = vpop.permute.xlu1 %2394 }
0x1444   :  { %v2397_v19 = vmul.f32 %v6070_v15, %v2395_v18 }
0x1446   :  { %2399 = vrot.lane.b32.xlu1 %v2397_v19, %s6406_s21 }
0x1469   :  { %v2494_v24 = vpop.permute.xlu0 %2493 }
0x146a   :  { %v2496_v25 = vmul.f32 %v6074_v21, %v2494_v24 }
0x146c   :  { %2498 = vrot.lane.b32.xlu0 %v2496_v25, %s6406_s21 }
0x14b8   :  { %v2400_v26 = vpop.permute.xlu1 %2399 }
0x14b9   :  { %v2402_v27 = vadd.f32 %v2400_v26, %v2313_v7 }
0x14bb   :  { %6075 = vtanh.f32 %v2402_v27 }
0x14c8   :  { %v6076_v30 = vpop.eup %6075 }
0x14c9   :  { %2406 = vrot.lane.b32.xlu1 %v6076_v30, %s6407_s22 }
0x14de   :  { %v2499_v31 = vpop.permute.xlu0 %2498 }
0x14df   :  { %v2501_v32 = vadd.f32 %v2499_v31, %v2412_v14 }
0x14e1   :  { %6077 = vtanh.f32 %v2501_v32 }
0x14ee   :  { %v6078_v33 = vpop.eup %6077 }
0x14ef   :  { %2505 = vrot.lane.b32.xlu0 %v6078_v33, %s6407_s22  ;;  %v6991_v33 = vld [vmem:[%s7211_s12] ss:$0 sm:$0xff] }
0x153b   :  { %v2407_v35 = vpop.permute.xlu1 %2406 }
0x153c   :  { %v2409_v40 = vmul.f32 %v2407_v35, %v2404_v34 }
0x153e   :  { %v2411_v41 = vadd.f32 %v2410_v37, %v2409_v40 }
0x1540   :  { %2512 = vrot.lane.b32.xlu1 %v2411_v41, %s6407_s22 }
0x1561   :  { %v2506_v44 = vpop.permute.xlu0 %2505 }
0x1562   :  { %v2508_v16 = vmul.f32 %v2506_v44, %v2503_v43 }
0x1564   :  { %v2510_v46 = vadd.f32 %v2509_v45, %v2508_v16 }
0x1566   :  { %2518 = vrot.lane.b32.xlu0 %v2510_v46, %s6407_s22 }
0x15b2   :  { %v2513_v47 = vpop.permute.xlu1 %2512 }
0x15b3   :  { %2516 = vst.msk [vmem:[#allocation2 + $0xe] sm:$0x3] %vm1045_vm3, %v2513_v47  ;;  %5423 = vst.msk [vmem:[#allocation23] sm:$0x3] %vm1045_vm3, %v2513_v47 }
0x15b4   :  { %5425 = vst.msk [vmem:[#allocation23] sm:$0x3] %vm5424_vm5, %v2510_v46 }
0x15ba   :  { %v3628_v48 = vld [vmem:[#allocation2 + $0xe] sm:$0x3] }
0x15bb   :  { %5881 = vmatmul.mubr.msk.f32.vlgmr.msra.gmra.mxu1 %vm838_vm4, %v3628_v48 }
0x15bc   :  { %5889 = vmatpush3.msra.mxu1 %v6895_v36  ;;  %5890 = vmatprep.mubr.msk.f32.mxu1 %vm6403_vm0, %v6402_v0 }
0x15bd   :  { %5898 = vmatprep.subr.mxu1 %v6402_v0 }
0x15bf   :  { %5891 = vmatmul.mubr.f32.vlgmr.msra.gmra.mxu1 %v6402_v0 }
0x15c0   :  { %5899 = vmatpush3.msra.mxu1 %v6895_v36  ;;  %5900 = vmatprep.mubr.msk.f32.mxu1 %vm6403_vm0, %v6402_v0 }
0x15c1   :  { %5908 = vmatprep.subr.mxu1 %v6402_v0 }
0x15d8   :  { %v2519_v42 = vpop.permute.xlu0 %2518 }
0x15d9   :  { %2521 = vst.msk [vmem:[#allocation3] sm:$0x3] %vm1045_vm3, %v2519_v42 }
0x15e0   :  { %v2526_v49 = vld [vmem:[#allocation3] sm:$0x3] }
0x15e1   :  { %5806 = vmatmul.mubr.msk.f32.vlgmr.msra.gmra.mxu0 %vm838_vm4, %v2526_v49 }
0x15e2   :  { %5814 = vmatpush3.msra.mxu0 %v2523_v23  ;;  %5815 = vmatprep.mubr.msk.f32.mxu0 %vm6403_vm0, %v6402_v0 }
0x15e3   :  { %5823 = vmatprep.subr.mxu0 %v6402_v0 }
0x15e5   :  { %5816 = vmatmul.mubr.msk.f32.vlgmr.msra.gmra.mxu0 %vm838_vm4, %v2687_v50 }
0x15e6   :  { %5824 = vmatpush3.msra.mxu0 %v2523_v23  ;;  %5825 = vmatprep.mubr.msk.f32.mxu0 %vm6403_vm0, %v6402_v0 }
0x15e7   :  { %5833 = vmatprep.subr.mxu0 %v6402_v0 }
0x15e9   :  { %5826 = vmatmul.mubr.msk.f32.vlgmr.msra.gmra.mxu0 %vm838_vm4, %v2844_v51 }
0x15ea   :  { %5834 = vmatpush3.msra.mxu0 %v2523_v23  ;;  %5835 = vmatprep.mubr.msk.f32.mxu0 %vm6403_vm0, %v6402_v0 }
0x15eb   :  { %5843 = vmatprep.subr.mxu0 %v6402_v0 }
0x15ed   :  { %5836 = vmatmul.mubr.msk.f32.vlgmr.msra.gmra.mxu0 %vm838_vm4, %v3001_v52 }
0x15ee   :  { %5844 = vmatpush3.msra.mxu0 %v2523_v23  ;;  %5845 = vmatprep.mubr.msk.f32.mxu0 %vm6403_vm0, %v6402_v0 }
0x15ef   :  { %5853 = vmatprep.subr.mxu0 %v6402_v0 }
0x15f1   :  { %5846 = vmatmul.mubr.msk.f32.vlgmr.msra.gmra.mxu0 %vm838_vm4, %v3158_v53 }
0x15f2   :  { %5854 = vmatpush3.msra.mxu0 %v2523_v23  ;;  %5855 = vmatprep.mubr.msk.f32.mxu0 %vm6403_vm0, %v6402_v0 }
0x15f3   :  { %5863 = vmatprep.subr.mxu0 %v6402_v0 }
0x15f5   :  { %5856 = vmatmul.mubr.msk.f32.vlgmr.msra.gmra.mxu0 %vm838_vm4, %v3315_v54 }
0x15f6   :  { %5864 = vmatpush3.msra.mxu0 %v2523_v23  ;;  %5865 = vmatprep.mubr.msk.f32.mxu0 %vm6403_vm0, %v6402_v0 }
0x15f7   :  { %5873 = vmatprep.subr.mxu0 %v6402_v0 }
0x15f9   :  { %5866 = vmatmul.mubr.msk.f32.vlgmr.msra.gmra.mxu0 %vm838_vm4, %v3472_v55 }
0x15fa   :  { %5874 = vmatpush3.msra.mxu0 %v2523_v23  ;;  %5875 = vmatprep.mubr.msk.f32.mxu0 %vm6403_vm0, %v6402_v0 }
0x15fb   :  { %5883 = vmatprep.subr.mxu0 %v6402_v0 }
0x15fd   :  { %5876 = vmatmul.mubr.msk.f32.vlgmr.msra.gmra.mxu0 %vm838_vm4, %v3629_v56 }
0x15fe   :  { %5884 = vmatpush3.msra.mxu0 %v6939_v28  ;;  %5885 = vmatprep.mubr.msk.f32.mxu0 %vm6403_vm0, %v6402_v0 }
0x15ff   :  { %5893 = vmatprep.subr.mxu0 %v6402_v0 }
0x1601   :  { %5886 = vmatmul.mubr.f32.vlgmr.msra.gmra.mxu0 %v6402_v0 }
0x1602   :  { %5894 = vmatpush3.msra.mxu0 %v6939_v28  ;;  %5895 = vmatprep.mubr.msk.f32.mxu0 %vm6403_vm0, %v6402_v0 }
0x1603   :  { %5903 = vmatprep.subr.mxu0 %v6402_v0 }
0x167b   :  { %v3772_v57 = vpop.f32.mrf.mxu1 }
0x167d   :  { %v5882_v58 = vpop.f32.mrf.mxu1 }
0x167f   :  { %v3965_v59 = vpop.f32.mrf.mxu1 }
0x1680   :  { %v3966_v37 = vadd.f32 %v6991_v33, %v3965_v59 }
0x1681   :  { %v5892_v61 = vpop.f32.mrf.mxu1 }
0x16a1   :  { %v2596_v17 = vpop.f32.mrf.mxu0 }
0x16a2   :  { %v2670_v2 = vadd.f32 %v6870_v60, %v2596_v17 }
0x16a3   :  { %v5807_v4 = vpop.f32.mrf.mxu0 }
0x16a4   :  { %v6952_v29 = vadd.f32 %v5500_v63, %v2670_v2 }
0x16a5   :  { %v2757_v6 = vpop.f32.mrf.mxu0 }
0x16a6   :  { %2680 = vst.msk [vmem:[#allocation4] sm:$0x3] %vm239_vm2, %v6952_v29  ;;  %v2831_v7 = vadd.f32 %v6872_v62, %v2757_v6 }
0x16a7   :  { %v5817_v8 = vpop.f32.mrf.mxu0 }
0x16a8   :  { %v6957_v9 = vadd.f32 %v5500_v63, %v2831_v7 }
0x16a9   :  { %v2914_v10 = vpop.f32.mrf.mxu0 }
0x16aa   :  { %2836 = vst.msk [vmem:[#allocation4 + $0x2] sm:$0x3] %vm239_vm2, %v6957_v9  ;;  %v2988_v13 = vadd.f32 %v6874_v1, %v2914_v10 }
0x16ab   :  { %v5827_v14 = vpop.f32.mrf.mxu0 }
0x16ac   :  { %v6962_v60 = vadd.f32 %v5500_v63, %v2988_v13 }
0x16ad   :  { %v3071_v38 = vpop.f32.mrf.mxu0  ;;  %v3789_v41 = vld [vmem:[#allocation4] sm:$0x3] }
0x16ae   :  { %2993 = vst.msk [vmem:[#allocation4 + $0x4] sm:$0x3] %vm239_vm2, %v6962_v60  ;;  %v3145_v15 = vadd.f32 %v6876_v11, %v3071_v38 }
0x16af   :  { %v5837_v18 = vpop.f32.mrf.mxu0 }
0x16b0   :  { %v6967_v62 = vadd.f32 %v5500_v63, %v3145_v15 }
0x16b1   :  { %v3228_v39 = vpop.f32.mrf.mxu0 }
0x16b2   :  { %3150 = vst.msk [vmem:[#allocation4 + $0x6] sm:$0x3] %vm239_vm2, %v6967_v62  ;;  %v3302_v19 = vadd.f32 %v6878_v3, %v3228_v39 }
0x16b3   :  { %v5847_v20 = vpop.f32.mrf.mxu0 }
0x16b4   :  { %v6972_v1 = vadd.f32 %v5500_v63, %v3302_v19 }
0x16b5   :  { %v3385_v22 = vpop.f32.mrf.mxu0 }
0x16b6   :  { %3307 = vst.msk [vmem:[#allocation4 + $0x8] sm:$0x3] %vm239_vm2, %v6972_v1  ;;  %v3459_v21 = vadd.f32 %v6880_v5, %v3385_v22  ;;  %v6986_v5 = vld [vmem:[%s7209_s10] ss:$0 sm:$0xff]  ;;  %s6408_s10 = smov [#allocation23]  }
0x16b7   :  { %v5857_v24 = vpop.f32.mrf.mxu0  ;;  %s5444_s12 = sshll.u32 %s6408_s10, 4  ;;  %s5445_s12 = int_to_ptr.vmem [resolvable:$true] %s5444_s12 }
0x16b8   :  { %v6977_v11 = vadd.f32 %v5500_v63, %v3459_v21  ;;  %s6357_s26 = scalar_lea.vmem %s5445_s12, 32  ;;  %p6362_p4 = scmp.lt.s32.totalorder %s5445_s12, %s5445_s12 }
0x16b9   :  { %v3542_v25 = vpop.f32.mrf.mxu0  ;;  %p6358_p3 = scmp.ne.s32.totalorder %s5445_s12, %s6357_s26  ;;  %p6363_p5 = scmp.lt.s32.totalorder %s6357_s26, %s6357_s26 }
0x16ba   :  { %3464 = vst.msk [vmem:[#allocation4 + $0xa] sm:$0x3] %vm239_vm2, %v6977_v11  ;;  %v3616_v26 = vadd.f32 %v6882_v12, %v3542_v25 }
0x16bb   :  { %v5867_v27 = vpop.f32.mrf.mxu0  ;;  %p6364_p6 = por %p6363_p5, %p6362_p4 }
0x16bc   :  { %v3619_v3 = vadd.f32 %v5500_v63, %v3616_v26  ;;  %v3995_v26 = vld [vmem:[#allocation4 + $0x2] sm:$0x3] }
0x16bd   :  { %v3699_v30 = vpop.f32.mrf.mxu0  ;;  %p6365_p7 = pnand %p6364_p6, %p6358_p3 }
0x16be   :  { %3621 = vst.msk [vmem:[#allocation4 + $0xc] sm:$0x3] %vm239_vm2, %v3619_v3  ;;  %v3773_v31 = vadd.f32 %v3772_v57, %v3699_v30 }
0x16bf   :  { %v5877_v32 = vpop.f32.mrf.mxu0 }
0x16c0   :  { %v3776_v34 = vadd.f32 %v5500_v63, %v3773_v31 }
0x16c1   :  { %v3862_v35 = vpop.f32.mrf.mxu0 }
0x16c2   :  { %3778 = vst.msk [vmem:[#allocation4 + $0xe] sm:$0x3] %vm239_vm2, %v3776_v34  ;;  %v3863_v12 = vadd.f32 %v6986_v5, %v3862_v35  ;;  %3780 = vrot.lane.b32.xlu0 %v3776_v34, %s6404_s5 }
0x16c3   :  { %v5887_v40 = vpop.f32.mrf.mxu0 }
0x16c4   :  { %3874 = vrot.lane.b32.xlu1 %v3863_v12, %s6405_s28  ;;  %v3866_v23 = vadd.f32 %v3863_v12, %v3789_v41 }
0x16c6   :  { %3977 = vrot.lane.b32.xlu0 %v3966_v37, %s6405_s28  ;;  %v5516_v43 = vmul.f32 -1.442695, %v3866_v23 }
0x16c8   :  { %6079 = vpow2.f32 %v5516_v43 }
0x16d5   :  { %v6080_v44 = vpop.eup %6079 }
0x16d6   :  { %v3870_v45 = vadd.f32 1.0, %v6080_v44 }
0x16d8   :  { %6081 = vrcp.f32 %v3870_v45 }
0x16e5   :  { %v6082_v46 = vpop.eup %6081 }
0x16e6   :  { %v3884_v17 = vsub.f32 1.0, %v6082_v46  ;;  %v3890_v4 = vmul.f32 0.0, %v6082_v46 }
0x1734   :  { %v3781_v16 = vpop.permute.xlu0 %3780 }
0x1735   :  { %3784 = vst.msk [vmem:[#allocation5 + $0xe] sm:$0x3] %vm239_vm2, %v3781_v16 }
0x1736   :  { %v3875_v47 = vpop.permute.xlu1 %3874 }
0x1737   :  { %v3877_v48 = vmul.f32 %v6082_v46, %v3875_v47 }
0x1738   :  { %v3978_v53 = vpop.permute.xlu0 %3977 }
0x1739   :  { %3879 = vrot.lane.b32.xlu1 %v3877_v48, %s6406_s21 }
0x173c   :  { %v3892_v42 = vld [vmem:[#allocation5 + $0xe] sm:$0x3] }
0x173d   :  { %v3969_v49 = vadd.f32 %v3966_v37, %v3892_v42 }
0x173f   :  { %v5518_v50 = vmul.f32 -1.442695, %v3969_v49 }
0x1741   :  { %6083 = vpow2.f32 %v5518_v50 }
0x174e   :  { %v6084_v51 = vpop.eup %6083 }
0x174f   :  { %v3973_v52 = vadd.f32 1.0, %v6084_v51 }
0x1751   :  { %6085 = vrcp.f32 %v3973_v52 }
0x175e   :  { %v6086_v54 = vpop.eup %6085 }
0x175f   :  { %v3980_v55 = vmul.f32 %v6086_v54, %v3978_v53  ;;  %v3987_v8 = vsub.f32 1.0, %v6086_v54  ;;  %v3993_v13 = vmul.f32 0.0, %v6086_v54 }
0x1761   :  { %3982 = vrot.lane.b32.xlu0 %v3980_v55, %s6406_s21 }
0x17ab   :  { %v3880_v56 = vpop.permute.xlu1 %3879 }
0x17ac   :  { %v3882_v57 = vadd.f32 %v3880_v56, %v3789_v41 }
0x17ae   :  { %6087 = vtanh.f32 %v3882_v57 }
0x17bb   :  { %v6088_v58 = vpop.eup %6087 }
0x17bc   :  { %3886 = vrot.lane.b32.xlu1 %v6088_v58, %s6407_s22 }
0x17d3   :  { %v3983_v59 = vpop.permute.xlu0 %3982 }
0x17d4   :  { %v3985_v61 = vadd.f32 %v3983_v59, %v3892_v42 }
0x17d6   :  { %6089 = vtanh.f32 %v3985_v61 }
0x17e3   :  { %v6090_v63 = vpop.eup %6089 }
0x17e4   :  { %3989 = vrot.lane.b32.xlu0 %v6090_v63, %s6407_s22 }
0x182e   :  { %v3887_v2 = vpop.permute.xlu1 %3886 }
0x182f   :  { %v3889_v6 = vmul.f32 %v3887_v2, %v3884_v17 }
0x1831   :  { %v7004_v7 = vadd.f32 %v3890_v4, %v3889_v6 }
0x1833   :  { %3997 = vrot.lane.b32.xlu1 %v7004_v7, %s6407_s22 }
0x1837   :  { %3623 = vrot.lane.b32.xlu1 %v3619_v3, %s6404_s5 }
0x1856   :  { %v3990_v10 = vpop.permute.xlu0 %3989 }
0x1857   :  { %v3992_v14 = vmul.f32 %v3990_v10, %v3987_v8  ;;  %v4199_v10 = vld [vmem:[#allocation4 + $0x4] sm:$0x3] }
0x1859   :  { %v7009_v38 = vadd.f32 %v3993_v13, %v3992_v14 }
0x185b   :  { %4099 = vrot.lane.b32.xlu0 %v7009_v38, %s6407_s22 }
0x18a5   :  { %v3998_v15 = vpop.permute.xlu1 %3997 }
0x18a6   :  { %5896 = vmatmul.mubr.msk.f32.vlgmr.msra.gmra.mxu0 %vm838_vm4, %v3998_v15 }
0x18a7   :  { %5904 = vmatpush3.msra.mxu0 %v6939_v28  ;;  %5905 = vmatprep.mubr.msk.f32.mxu0 %vm6403_vm0, %v6402_v0 }
0x18a8   :  { %5913 = vmatprep.subr.mxu0 %v6402_v0 }
0x18a9   :  { %v3624_v18 = vpop.permute.xlu1 %3623 }
0x18aa   :  { %3627 = vst.msk [vmem:[#allocation5 + $0xc] sm:$0x3] %vm239_vm2, %v3624_v18 }
0x18b1   :  { %v4097_v32 = vld [vmem:[#allocation5 + $0xc] sm:$0x3] }
0x18cd   :  { %v4100_v39 = vpop.permute.xlu0 %4099 }
0x18ce   :  { %5901 = vmatmul.mubr.msk.f32.vlgmr.msra.gmra.mxu1 %vm838_vm4, %v4100_v39 }
0x18cf   :  { %5909 = vmatpush3.msra.mxu1 %v6895_v36  ;;  %5910 = vmatprep.mubr.msk.f32.mxu1 %vm6403_vm0, %v6402_v0 }
0x18d0   :  { %5918 = vmatprep.subr.mxu1 %v6402_v0 }
0x1966   :  { %v4067_v19 = vpop.f32.mrf.mxu0 }
0x1967   :  { %v4068_v20 = vadd.f32 %v6986_v5, %v4067_v19 }
0x1968   :  { %v5897_v22 = vpop.f32.mrf.mxu0 }
0x1969   :  { %4079 = vrot.lane.b32.xlu0 %v4068_v20, %s6405_s28  ;;  %v4071_v27 = vadd.f32 %v4068_v20, %v3995_v26 }
0x196b   :  { %v5520_v3 = vmul.f32 -1.442695, %v4071_v27 }
0x196d   :  { %6091 = vpow2.f32 %v5520_v3 }
0x197a   :  { %v6092_v30 = vpop.eup %6091 }
0x197b   :  { %v4075_v31 = vadd.f32 1.0, %v6092_v30 }
0x197d   :  { %6093 = vrcp.f32 %v4075_v31 }
0x198a   :  { %v6094_v35 = vpop.eup %6093 }
0x198b   :  { %v4089_v50 = vsub.f32 1.0, %v6094_v35  ;;  %v4095_v52 = vmul.f32 %v6094_v35, %v7004_v7 }
0x198e   :  { %v4169_v21 = vpop.f32.mrf.mxu1 }
0x198f   :  { %v4170_v24 = vadd.f32 %v6991_v33, %v4169_v21 }
0x1990   :  { %v5902_v25 = vpop.f32.mrf.mxu1 }
0x1991   :  { %4181 = vrot.lane.b32.xlu1 %v4170_v24, %s6405_s28  ;;  %v4173_v34 = vadd.f32 %v4170_v24, %v4097_v32 }
0x1993   :  { %v5522_v40 = vmul.f32 -1.442695, %v4173_v34 }
0x1995   :  { %6095 = vpow2.f32 %v5522_v40 }
0x19a2   :  { %v6096_v41 = vpop.eup %6095 }
0x19a3   :  { %v4177_v23 = vadd.f32 1.0, %v6096_v41 }
0x19a5   :  { %6097 = vrcp.f32 %v4177_v23 }
0x19b2   :  { %v6098_v43 = vpop.eup %6097 }
0x19b3   :  { %v4191_v55 = vsub.f32 1.0, %v6098_v43  ;;  %v4197_v57 = vmul.f32 %v6098_v43, %v7009_v38 }
0x19db   :  { %v4080_v12 = vpop.permute.xlu0 %4079 }
0x19dc   :  { %v4082_v37 = vmul.f32 %v6094_v35, %v4080_v12 }
0x19de   :  { %4084 = vrot.lane.b32.xlu0 %v4082_v37, %s6406_s21 }
0x1a03   :  { %v4182_v44 = vpop.permute.xlu1 %4181 }
0x1a04   :  { %v4184_v45 = vmul.f32 %v6098_v43, %v4182_v44 }
0x1a06   :  { %4186 = vrot.lane.b32.xlu1 %v4184_v45, %s6406_s21 }
0x1a50   :  { %v4085_v16 = vpop.permute.xlu0 %4084 }
0x1a51   :  { %v4087_v46 = vadd.f32 %v4085_v16, %v3995_v26 }
0x1a53   :  { %6099 = vtanh.f32 %v4087_v46 }
0x1a60   :  { %v6100_v47 = vpop.eup %6099 }
0x1a61   :  { %4091 = vrot.lane.b32.xlu0 %v6100_v47, %s6407_s22 }
0x1a78   :  { %v4187_v48 = vpop.permute.xlu1 %4186 }
0x1a79   :  { %v4189_v42 = vadd.f32 %v4187_v48, %v4097_v32 }
0x1a7b   :  { %6101 = vtanh.f32 %v4189_v42 }
0x1a88   :  { %v6102_v49 = vpop.eup %6101 }
0x1a89   :  { %4193 = vrot.lane.b32.xlu1 %v6102_v49, %s6407_s22 }
0x1ad3   :  { %v4092_v51 = vpop.permute.xlu0 %4091 }
0x1ad4   :  { %v4094_v53 = vmul.f32 %v4092_v51, %v4089_v50 }
0x1ad6   :  { %v7033_v54 = vadd.f32 %v4095_v52, %v4094_v53 }
0x1ad8   :  { %4201 = vrot.lane.b32.xlu0 %v7033_v54, %s6407_s22 }
0x1adc   :  { %3466 = vrot.lane.b32.xlu0 %v6977_v11, %s6404_s5 }
0x1afb   :  { %v4194_v56 = vpop.permute.xlu1 %4193 }
0x1afc   :  { %v4196_v58 = vmul.f32 %v4194_v56, %v4191_v55  ;;  %v4403_v55 = vld [vmem:[#allocation4 + $0x6] sm:$0x3] }
0x1afe   :  { %v7040_v59 = vadd.f32 %v4197_v57, %v4196_v58 }
0x1b00   :  { %4303 = vrot.lane.b32.xlu1 %v7040_v59, %s6407_s22 }
0x1b4a   :  { %v4202_v61 = vpop.permute.xlu0 %4201 }
0x1b4b   :  { %5906 = vmatmul.mubr.msk.f32.vlgmr.msra.gmra.mxu0 %vm838_vm4, %v4202_v61 }
0x1b4c   :  { %5914 = vmatpush3.msra.mxu0 %v6939_v28  ;;  %5915 = vmatprep.mubr.msk.f32.mxu0 %vm6403_vm0, %v6402_v0 }
0x1b4d   :  { %5923 = vmatprep.subr.mxu0 %v6402_v0 }
0x1b4e   :  { %v3467_v11 = vpop.permute.xlu0 %3466 }
0x1b4f   :  { %3470 = vst.msk [vmem:[#allocation5 + $0xa] sm:$0x3] %vm239_vm2, %v3467_v11 }
0x1b56   :  { %v4301_v18 = vld [vmem:[#allocation5 + $0xa] sm:$0x3] }
0x1b72   :  { %v4304_v63 = vpop.permute.xlu1 %4303 }
0x1b73   :  { %5911 = vmatmul.mubr.msk.f32.vlgmr.msra.gmra.mxu1 %vm838_vm4, %v4304_v63 }
0x1b74   :  { %5919 = vmatpush3.msra.mxu1 %v6895_v36  ;;  %5920 = vmatprep.mubr.msk.f32.mxu1 %vm6403_vm0, %v6402_v0 }
0x1b75   :  { %5928 = vmatprep.subr.mxu1 %v6402_v0 }
0x1c0b   :  { %v4271_v17 = vpop.f32.mrf.mxu0 }
0x1c0c   :  { %v4272_v2 = vadd.f32 %v6986_v5, %v4271_v17 }
0x1c0d   :  { %v5907_v4 = vpop.f32.mrf.mxu0 }
0x1c0e   :  { %4283 = vrot.lane.b32.xlu1 %v4272_v2, %s6405_s28  ;;  %v4275_v13 = vadd.f32 %v4272_v2, %v4199_v10 }
0x1c10   :  { %v5524_v14 = vmul.f32 -1.442695, %v4275_v13 }
0x1c12   :  { %6103 = vpow2.f32 %v5524_v14 }
0x1c1f   :  { %v6104_v38 = vpop.eup %6103 }
0x1c20   :  { %v4279_v15 = vadd.f32 1.0, %v6104_v38 }
0x1c22   :  { %6105 = vrcp.f32 %v4279_v15 }
0x1c2f   :  { %v6106_v19 = vpop.eup %6105 }
0x1c30   :  { %v4293_v37 = vsub.f32 1.0, %v6106_v19  ;;  %v4299_v41 = vmul.f32 %v6106_v19, %v7033_v54 }
0x1c33   :  { %v4373_v6 = vpop.f32.mrf.mxu1 }
0x1c34   :  { %v4374_v7 = vadd.f32 %v6991_v33, %v4373_v6 }
0x1c35   :  { %v5912_v8 = vpop.f32.mrf.mxu1 }
0x1c36   :  { %4385 = vrot.lane.b32.xlu0 %v4374_v7, %s6405_s28  ;;  %v4377_v39 = vadd.f32 %v4374_v7, %v4301_v18 }
0x1c38   :  { %v5526_v21 = vmul.f32 -1.442695, %v4377_v39 }
0x1c3a   :  { %6107 = vpow2.f32 %v5526_v21 }
0x1c47   :  { %v6108_v24 = vpop.eup %6107 }
0x1c48   :  { %v4381_v25 = vadd.f32 1.0, %v6108_v24 }
0x1c4a   :  { %6109 = vrcp.f32 %v4381_v25 }
0x1c57   :  { %v6110_v26 = vpop.eup %6109 }
0x1c58   :  { %v4395_v44 = vsub.f32 1.0, %v6110_v26  ;;  %v4401_v16 = vmul.f32 %v6110_v26, %v7040_v59 }
0x1c80   :  { %v4284_v20 = vpop.permute.xlu1 %4283 }
0x1c81   :  { %v4286_v22 = vmul.f32 %v6106_v19, %v4284_v20 }
0x1c83   :  { %4288 = vrot.lane.b32.xlu1 %v4286_v22, %s6406_s21 }
0x1ca8   :  { %v4386_v27 = vpop.permute.xlu0 %4385 }
0x1ca9   :  { %v4388_v3 = vmul.f32 %v6110_v26, %v4386_v27 }
0x1cab   :  { %4390 = vrot.lane.b32.xlu0 %v4388_v3, %s6406_s21 }
0x1cf5   :  { %v4289_v30 = vpop.permute.xlu1 %4288 }
0x1cf6   :  { %v4291_v31 = vadd.f32 %v4289_v30, %v4199_v10 }
0x1cf8   :  { %6111 = vtanh.f32 %v4291_v31 }
0x1d05   :  { %v6112_v32 = vpop.eup %6111 }
0x1d06   :  { %4295 = vrot.lane.b32.xlu1 %v6112_v32, %s6407_s22 }
0x1d1d   :  { %v4391_v34 = vpop.permute.xlu0 %4390 }
0x1d1e   :  { %v4393_v35 = vadd.f32 %v4391_v34, %v4301_v18 }
0x1d20   :  { %6113 = vtanh.f32 %v4393_v35 }
0x1d2d   :  { %v6114_v12 = vpop.eup %6113 }
0x1d2e   :  { %4397 = vrot.lane.b32.xlu0 %v6114_v12, %s6407_s22 }
0x1d78   :  { %v4296_v40 = vpop.permute.xlu1 %4295 }
0x1d79   :  { %v4298_v23 = vmul.f32 %v4296_v40, %v4293_v37 }
0x1d7b   :  { %v7064_v43 = vadd.f32 %v4299_v41, %v4298_v23 }
0x1d7d   :  { %4405 = vrot.lane.b32.xlu1 %v7064_v43, %s6407_s22 }
0x1d81   :  { %3309 = vrot.lane.b32.xlu1 %v6972_v1, %s6404_s5 }
0x1da0   :  { %v4398_v45 = vpop.permute.xlu0 %4397 }
0x1da1   :  { %v4400_v46 = vmul.f32 %v4398_v45, %v4395_v44 }
0x1da3   :  { %v7071_v47 = vadd.f32 %v4401_v16, %v4400_v46 }
0x1da5   :  { %4507 = vrot.lane.b32.xlu0 %v7071_v47, %s6407_s22 }
0x1def   :  { %v4406_v48 = vpop.permute.xlu1 %4405 }
0x1df0   :  { %5916 = vmatmul.mubr.msk.f32.vlgmr.msra.gmra.mxu0 %vm838_vm4, %v4406_v48 }
0x1df1   :  { %5924 = vmatpush3.msra.mxu0 %v6939_v28  ;;  %5925 = vmatprep.mubr.msk.f32.mxu0 %vm6403_vm0, %v6402_v0 }
0x1df2   :  { %5933 = vmatprep.subr.mxu0 %v6402_v0 }
0x1df3   :  { %v3310_v1 = vpop.permute.xlu1 %3309 }
0x1df4   :  { %3313 = vst.msk [vmem:[#allocation5 + $0x8] sm:$0x3] %vm239_vm2, %v3310_v1 }
0x1dfb   :  { %v4505_v61 = vld [vmem:[#allocation5 + $0x8] sm:$0x3] }
0x1e17   :  { %v4508_v42 = vpop.permute.xlu0 %4507 }
0x1e18   :  { %5921 = vmatmul.mubr.msk.f32.vlgmr.msra.gmra.mxu1 %vm838_vm4, %v4508_v42 }
0x1e19   :  { %5929 = vmatpush3.msra.mxu1 %v6895_v36  ;;  %5930 = vmatprep.mubr.msk.f32.mxu1 %vm6403_vm0, %v6402_v0 }
0x1e1a   :  { %5938 = vmatprep.subr.mxu1 %v6402_v0 }
0x1eb0   :  { %v4475_v49 = vpop.f32.mrf.mxu0 }
0x1eb1   :  { %v4476_v50 = vadd.f32 %v6986_v5, %v4475_v49 }
0x1eb2   :  { %v5917_v51 = vpop.f32.mrf.mxu0 }
0x1eb3   :  { %4487 = vrot.lane.b32.xlu0 %v4476_v50, %s6405_s28  ;;  %v4479_v56 = vadd.f32 %v4476_v50, %v4403_v55 }
0x1eb5   :  { %v5528_v57 = vmul.f32 -1.442695, %v4479_v56 }
0x1eb7   :  { %6115 = vpow2.f32 %v5528_v57 }
0x1ec4   :  { %v6116_v58 = vpop.eup %6115 }
0x1ec5   :  { %v4483_v59 = vadd.f32 1.0, %v6116_v58 }
0x1ec7   :  { %6117 = vrcp.f32 %v4483_v59 }
0x1ed4   :  { %v6118_v63 = vpop.eup %6117 }
0x1ed5   :  { %v4497_v20 = vsub.f32 1.0, %v6118_v63  ;;  %v4503_v21 = vmul.f32 %v6118_v63, %v7064_v43  ;;  %v4607_v43 = vld [vmem:[#allocation4 + $0x8] sm:$0x3] }
0x1ed8   :  { %v4577_v52 = vpop.f32.mrf.mxu1 }
0x1ed9   :  { %v4578_v53 = vadd.f32 %v6991_v33, %v4577_v52 }
0x1eda   :  { %v5922_v54 = vpop.f32.mrf.mxu1 }
0x1edb   :  { %4589 = vrot.lane.b32.xlu1 %v4578_v53, %s6405_s28  ;;  %v4581_v11 = vadd.f32 %v4578_v53, %v4505_v61 }
0x1edd   :  { %v5530_v4 = vmul.f32 -1.442695, %v4581_v11 }
0x1edf   :  { %6119 = vpow2.f32 %v5530_v4 }
0x1eec   :  { %v6120_v6 = vpop.eup %6119 }
0x1eed   :  { %v4585_v7 = vadd.f32 1.0, %v6120_v6 }
0x1eef   :  { %6121 = vrcp.f32 %v4585_v7 }
0x1efc   :  { %v6122_v8 = vpop.eup %6121 }
0x1efd   :  { %v4599_v26 = vsub.f32 1.0, %v6122_v8  ;;  %v4605_v3 = vmul.f32 %v6122_v8, %v7071_v47 }
0x1f25   :  { %v4488_v17 = vpop.permute.xlu0 %4487 }
0x1f26   :  { %v4490_v2 = vmul.f32 %v6118_v63, %v4488_v17 }
0x1f28   :  { %4492 = vrot.lane.b32.xlu0 %v4490_v2, %s6406_s21 }
0x1f4d   :  { %v4590_v10 = vpop.permute.xlu1 %4589 }
0x1f4e   :  { %v4592_v13 = vmul.f32 %v6122_v8, %v4590_v10 }
0x1f50   :  { %4594 = vrot.lane.b32.xlu1 %v4592_v13, %s6406_s21 }
0x1f9a   :  { %v4493_v14 = vpop.permute.xlu0 %4492 }
0x1f9b   :  { %v4495_v38 = vadd.f32 %v4493_v14, %v4403_v55 }
0x1f9d   :  { %6123 = vtanh.f32 %v4495_v38 }
0x1faa   :  { %v6124_v15 = vpop.eup %6123 }
0x1fab   :  { %4499 = vrot.lane.b32.xlu0 %v6124_v15, %s6407_s22 }
0x1fc2   :  { %v4595_v18 = vpop.permute.xlu1 %4594 }
0x1fc3   :  { %v4597_v39 = vadd.f32 %v4595_v18, %v4505_v61 }
0x1fc5   :  { %6125 = vtanh.f32 %v4597_v39 }
0x1fd2   :  { %v6126_v19 = vpop.eup %6125 }
0x1fd3   :  { %4601 = vrot.lane.b32.xlu1 %v6126_v19, %s6407_s22 }
0x201d   :  { %v4500_v22 = vpop.permute.xlu0 %4499 }
0x201e   :  { %v4502_v24 = vmul.f32 %v4500_v22, %v4497_v20 }
0x2020   :  { %v7095_v25 = vadd.f32 %v4503_v21, %v4502_v24  ;;  %v4811_v24 = vld [vmem:[#allocation4 + $0xa] sm:$0x3] }
0x2022   :  { %4609 = vrot.lane.b32.xlu0 %v7095_v25, %s6407_s22 }
0x2026   :  { %3152 = vrot.lane.b32.xlu0 %v6967_v62, %s6404_s5 }
0x2045   :  { %v4602_v27 = vpop.permute.xlu1 %4601 }
0x2046   :  { %v4604_v30 = vmul.f32 %v4602_v27, %v4599_v26 }
0x2048   :  { %v7102_v31 = vadd.f32 %v4605_v3, %v4604_v30 }
0x204a   :  { %4711 = vrot.lane.b32.xlu1 %v7102_v31, %s6407_s22 }
0x2094   :  { %v4610_v32 = vpop.permute.xlu0 %4609 }
0x2095   :  { %5926 = vmatmul.mubr.msk.f32.vlgmr.msra.gmra.mxu0 %vm838_vm4, %v4610_v32 }
0x2096   :  { %5934 = vmatpush3.msra.mxu0 %v6939_v28  ;;  %5935 = vmatprep.mubr.msk.f32.mxu0 %vm6403_vm0, %v6402_v0 }
0x2097   :  { %5943 = vmatprep.subr.mxu0 %v6402_v0 }
0x2098   :  { %v3153_v62 = vpop.permute.xlu0 %3152 }
0x2099   :  { %3156 = vst.msk [vmem:[#allocation5 + $0x6] sm:$0x3] %vm239_vm2, %v3153_v62 }
0x20a0   :  { %v4709_v47 = vld [vmem:[#allocation5 + $0x6] sm:$0x3] }
0x20bc   :  { %v4712_v34 = vpop.permute.xlu1 %4711 }
0x20bd   :  { %5931 = vmatmul.mubr.msk.f32.vlgmr.msra.gmra.mxu1 %vm838_vm4, %v4712_v34 }
0x20be   :  { %5939 = vmatpush3.msra.mxu1 %v6895_v36  ;;  %5940 = vmatprep.mubr.msk.f32.mxu1 %vm6403_vm0, %v6402_v0 }
0x20bf   :  { %5948 = vmatprep.subr.mxu1 %v6402_v0 }
0x2155   :  { %v4679_v35 = vpop.f32.mrf.mxu0 }
0x2156   :  { %v4680_v12 = vadd.f32 %v6986_v5, %v4679_v35 }
0x2157   :  { %v5927_v37 = vpop.f32.mrf.mxu0 }
0x2158   :  { %4691 = vrot.lane.b32.xlu1 %v4680_v12, %s6405_s28  ;;  %v4683_v44 = vadd.f32 %v4680_v12, %v4607_v43 }
0x215a   :  { %v5532_v45 = vmul.f32 -1.442695, %v4683_v44 }
0x215c   :  { %6127 = vpow2.f32 %v5532_v45 }
0x2169   :  { %v6128_v16 = vpop.eup %6127 }
0x216a   :  { %v4687_v46 = vadd.f32 1.0, %v6128_v16 }
0x216c   :  { %6129 = vrcp.f32 %v4687_v46 }
0x2179   :  { %v6130_v1 = vpop.eup %6129 }
0x217a   :  { %v4701_v63 = vsub.f32 1.0, %v6130_v1  ;;  %v4707_v2 = vmul.f32 %v6130_v1, %v7095_v25 }
0x217d   :  { %v4781_v40 = vpop.f32.mrf.mxu1 }
0x217e   :  { %v4782_v41 = vadd.f32 %v6991_v33, %v4781_v40 }
0x217f   :  { %v5932_v23 = vpop.f32.mrf.mxu1 }
0x2180   :  { %4793 = vrot.lane.b32.xlu0 %v4782_v41, %s6405_s28  ;;  %v4785_v48 = vadd.f32 %v4782_v41, %v4709_v47 }
0x2182   :  { %v5534_v50 = vmul.f32 -1.442695, %v4785_v48 }
0x2184   :  { %6131 = vpow2.f32 %v5534_v50 }
0x2191   :  { %v6132_v51 = vpop.eup %6131 }
0x2192   :  { %v4789_v52 = vadd.f32 1.0, %v6132_v51 }
0x2194   :  { %6133 = vrcp.f32 %v4789_v52 }
0x21a1   :  { %v6134_v53 = vpop.eup %6133 }
0x21a2   :  { %v4803_v7 = vsub.f32 1.0, %v6134_v53  ;;  %v4809_v10 = vmul.f32 %v6134_v53, %v7102_v31 }
0x21ca   :  { %v4692_v42 = vpop.permute.xlu1 %4691 }
0x21cb   :  { %v4694_v49 = vmul.f32 %v6130_v1, %v4692_v42 }
0x21cd   :  { %4696 = vrot.lane.b32.xlu1 %v4694_v49, %s6406_s21 }
0x21f2   :  { %v4794_v54 = vpop.permute.xlu0 %4793 }
0x21f3   :  { %v4796_v55 = vmul.f32 %v6134_v53, %v4794_v54 }
0x21f5   :  { %4798 = vrot.lane.b32.xlu0 %v4796_v55, %s6406_s21 }
0x223f   :  { %v4697_v56 = vpop.permute.xlu1 %4696 }
0x2240   :  { %v4699_v57 = vadd.f32 %v4697_v56, %v4607_v43 }
0x2242   :  { %6135 = vtanh.f32 %v4699_v57 }
0x224f   :  { %v6136_v58 = vpop.eup %6135 }
0x2250   :  { %4703 = vrot.lane.b32.xlu1 %v6136_v58, %s6407_s22 }
0x2267   :  { %v4799_v59 = vpop.permute.xlu0 %4798 }
0x2268   :  { %v4801_v61 = vadd.f32 %v4799_v59, %v4709_v47 }
0x226a   :  { %6137 = vtanh.f32 %v4801_v61 }
0x2277   :  { %v6138_v11 = vpop.eup %6137 }
0x2278   :  { %4805 = vrot.lane.b32.xlu0 %v6138_v11, %s6407_s22 }
0x22c2   :  { %v4704_v17 = vpop.permute.xlu1 %4703 }
0x22c3   :  { %v4706_v4 = vmul.f32 %v4704_v17, %v4701_v63  ;;  %v5015_v17 = vld [vmem:[#allocation4 + $0xc] sm:$0x3] }
0x22c5   :  { %v7126_v6 = vadd.f32 %v4707_v2, %v4706_v4 }
0x22c7   :  { %4813 = vrot.lane.b32.xlu1 %v7126_v6, %s6407_s22 }
0x22cb   :  { %2995 = vrot.lane.b32.xlu1 %v6962_v60, %s6404_s5 }
0x22ea   :  { %v4806_v8 = vpop.permute.xlu0 %4805 }
0x22eb   :  { %v4808_v13 = vmul.f32 %v4806_v8, %v4803_v7 }
0x22ed   :  { %v7133_v14 = vadd.f32 %v4809_v10, %v4808_v13 }
0x22ef   :  { %4915 = vrot.lane.b32.xlu0 %v7133_v14, %s6407_s22 }
0x2339   :  { %v4814_v38 = vpop.permute.xlu1 %4813 }
0x233a   :  { %5936 = vmatmul.mubr.msk.f32.vlgmr.msra.gmra.mxu0 %vm838_vm4, %v4814_v38 }
0x233b   :  { %5944 = vmatpush3.msra.mxu0 %v6939_v28  ;;  %5945 = vmatprep.mubr.msk.f32.mxu0 %vm6403_vm0, %v6402_v0 }
0x233c   :  { %5953 = vmatprep.subr.mxu0 %v6402_v0 }
0x233d   :  { %v2996_v60 = vpop.permute.xlu1 %2995 }
0x233e   :  { %2999 = vst.msk [vmem:[#allocation5 + $0x4] sm:$0x3] %vm239_vm2, %v2996_v60 }
0x2345   :  { %v4913_v30 = vld [vmem:[#allocation5 + $0x4] sm:$0x3] }
0x2361   :  { %v4916_v15 = vpop.permute.xlu0 %4915 }
0x2362   :  { %5941 = vmatmul.mubr.msk.f32.vlgmr.msra.gmra.mxu1 %vm838_vm4, %v4916_v15 }
0x2363   :  { %5949 = vmatpush3.msra.mxu1 %v6895_v36  ;;  %5950 = vmatprep.mubr.msk.f32.mxu1 %vm6403_vm0, %v6402_v0 }
0x2364   :  { %5958 = vmatprep.subr.mxu1 %v6402_v0 }
0x23fa   :  { %v4883_v18 = vpop.f32.mrf.mxu0 }
0x23fb   :  { %v4884_v39 = vadd.f32 %v6986_v5, %v4883_v18 }
0x23fc   :  { %v5937_v19 = vpop.f32.mrf.mxu0 }
0x23fd   :  { %4895 = vrot.lane.b32.xlu0 %v4884_v39, %s6405_s28  ;;  %v4887_v25 = vadd.f32 %v4884_v39, %v4811_v24 }
0x23ff   :  { %v5536_v26 = vmul.f32 -1.442695, %v4887_v25 }
0x2401   :  { %6139 = vpow2.f32 %v5536_v26 }
0x240e   :  { %v6140_v27 = vpop.eup %6139 }
0x240f   :  { %v4891_v3 = vadd.f32 1.0, %v6140_v27 }
0x2411   :  { %6141 = vrcp.f32 %v4891_v3 }
0x241e   :  { %v6142_v32 = vpop.eup %6141 }
0x241f   :  { %v4905_v48 = vsub.f32 1.0, %v6142_v32  ;;  %v4911_v42 = vmul.f32 %v6142_v32, %v7126_v6 }
0x2422   :  { %v4985_v20 = vpop.f32.mrf.mxu1 }
0x2423   :  { %v4986_v22 = vadd.f32 %v6991_v33, %v4985_v20 }
0x2424   :  { %v5942_v21 = vpop.f32.mrf.mxu1 }
0x2425   :  { %4997 = vrot.lane.b32.xlu1 %v4986_v22, %s6405_s28  ;;  %v4989_v31 = vadd.f32 %v4986_v22, %v4913_v30 }
0x2427   :  { %v5538_v35 = vmul.f32 -1.442695, %v4989_v31 }
0x2429   :  { %6143 = vpow2.f32 %v5538_v35 }
0x2436   :  { %v6144_v12 = vpop.eup %6143 }
0x2437   :  { %v4993_v37 = vadd.f32 1.0, %v6144_v12 }
0x2439   :  { %6145 = vrcp.f32 %v4993_v37 }
0x2446   :  { %v6146_v40 = vpop.eup %6145 }
0x2447   :  { %v5007_v51 = vsub.f32 1.0, %v6146_v40  ;;  %v5013_v53 = vmul.f32 %v6146_v40, %v7133_v14 }
0x246f   :  { %v4896_v62 = vpop.permute.xlu0 %4895 }
0x2470   :  { %v4898_v34 = vmul.f32 %v6142_v32, %v4896_v62 }
0x2472   :  { %4900 = vrot.lane.b32.xlu0 %v4898_v34, %s6406_s21 }
0x2497   :  { %v4998_v41 = vpop.permute.xlu1 %4997 }
0x2498   :  { %v5000_v23 = vmul.f32 %v6146_v40, %v4998_v41 }
0x249a   :  { %5002 = vrot.lane.b32.xlu1 %v5000_v23, %s6406_s21 }
0x24e4   :  { %v4901_v43 = vpop.permute.xlu0 %4900 }
0x24e5   :  { %v4903_v44 = vadd.f32 %v4901_v43, %v4811_v24 }
0x24e7   :  { %6147 = vtanh.f32 %v4903_v44 }
0x24f4   :  { %v6148_v45 = vpop.eup %6147 }
0x24f5   :  { %4907 = vrot.lane.b32.xlu0 %v6148_v45, %s6407_s22 }
0x250c   :  { %v5003_v16 = vpop.permute.xlu1 %5002 }
0x250d   :  { %v5005_v46 = vadd.f32 %v5003_v16, %v4913_v30 }
0x250f   :  { %6149 = vtanh.f32 %v5005_v46  ;;  %v5219_v46 = vld [vmem:[#allocation4 + $0xe] sm:$0x3] }
0x251c   :  { %v6150_v47 = vpop.eup %6149 }
0x251d   :  { %5009 = vrot.lane.b32.xlu1 %v6150_v47, %s6407_s22 }
0x2567   :  { %v4908_v1 = vpop.permute.xlu0 %4907 }
0x2568   :  { %v4910_v49 = vmul.f32 %v4908_v1, %v4905_v48 }
0x256a   :  { %v4912_v50 = vadd.f32 %v4911_v42, %v4910_v49 }
0x256c   :  { %5017 = vrot.lane.b32.xlu0 %v4912_v50, %s6407_s22 }
0x2570   :  { %2838 = vrot.lane.b32.xlu0 %v6957_v9, %s6404_s5 }
0x258f   :  { %v5010_v52 = vpop.permute.xlu1 %5009 }
0x2590   :  { %v5012_v54 = vmul.f32 %v5010_v52, %v5007_v51 }
0x2592   :  { %v5014_v55 = vadd.f32 %v5013_v53, %v5012_v54 }
0x2594   :  { %5119 = vrot.lane.b32.xlu1 %v5014_v55, %s6407_s22 }
0x25de   :  { %v5018_v56 = vpop.permute.xlu0 %5017 }
0x25df   :  { %5946 = vmatmul.mubr.msk.f32.vlgmr.msra.gmra.mxu0 %vm838_vm4, %v5018_v56 }
0x25e0   :  { %5954 = vmatpush3.msra.mxu0 %v6939_v28  ;;  %5955 = vmatprep.mubr.msk.f32.mxu0 %vm6403_vm0, %v6402_v0 }
0x25e2   :  { %v2839_v57 = vpop.permute.xlu0 %2838 }
0x25e3   :  { %2842 = vst.msk [vmem:[#allocation5 + $0x2] sm:$0x3] %vm239_vm2, %v2839_v57 }
0x2606   :  { %v5120_v9 = vpop.permute.xlu1 %5119 }
0x2607   :  { %5951 = vmatmul.mubr.msk.f32.vlgmr.msra.gmra.mxu1 %vm838_vm4, %v5120_v9 }
0x2608   :  { %5959 = vmatpush3.msra.mxu1 %v6895_v36  ;;  %5960 = vmatprep.mubr.msk.f32.mxu1 %vm6403_vm0, %v6402_v0  ;;  %v5117_v0 = vld [vmem:[#allocation5 + $0x2] sm:$0x3] }
0x269f   :  { %v5087_v58 = vpop.f32.mrf.mxu0 }
0x26a0   :  { %v5088_v59 = vadd.f32 %v6986_v5, %v5087_v58 }
0x26a1   :  { %v5947_v61 = vpop.f32.mrf.mxu0 }
0x26a2   :  { %5099 = vrot.lane.b32.xlu1 %v5088_v59, %s6405_s28  ;;  %v5091_v2 = vadd.f32 %v5088_v59, %v5015_v17 }
0x26a4   :  { %v5540_v4 = vmul.f32 -1.442695, %v5091_v2 }
0x26a6   :  { %6151 = vpow2.f32 %v5540_v4 }
0x26b3   :  { %v6152_v36 = vpop.eup %6151 }
0x26b4   :  { %v5095_v6 = vadd.f32 1.0, %v6152_v36 }
0x26b6   :  { %6153 = vrcp.f32 %v5095_v6 }
0x26c3   :  { %v6154_v8 = vpop.eup %6153 }
0x26c4   :  { %v5109_v26 = vsub.f32 1.0, %v6154_v8  ;;  %v5115_v3 = vmul.f32 %v6154_v8, %v4912_v50 }
0x26c7   :  { %v5189_v28 = vpop.f32.mrf.mxu1 }
0x26c8   :  { %v5190_v11 = vadd.f32 %v6991_v33, %v5189_v28 }
0x26c9   :  { %v5952_v63 = vpop.f32.mrf.mxu1 }
0x26ca   :  { %5201 = vrot.lane.b32.xlu0 %v5190_v11, %s6405_s28  ;;  %v5193_v7 = vadd.f32 %v5190_v11, %v5117_v0 }
0x26cc   :  { %v5542_v14 = vmul.f32 -1.442695, %v5193_v7 }
0x26ce   :  { %6155 = vpow2.f32 %v5542_v14 }
0x26db   :  { %v6156_v38 = vpop.eup %6155 }
0x26dc   :  { %v5197_v60 = vadd.f32 1.0, %v6156_v38 }
0x26de   :  { %6157 = vrcp.f32 %v5197_v60 }
0x26eb   :  { %v6158_v15 = vpop.eup %6157 }
0x26ec   :  { %v5211_v32 = vsub.f32 1.0, %v6158_v15  ;;  %v5217_v34 = vmul.f32 %v6158_v15, %v5014_v55 }
0x2714   :  { %v5100_v10 = vpop.permute.xlu1 %5099 }
0x2715   :  { %v5102_v13 = vmul.f32 %v6154_v8, %v5100_v10 }
0x2717   :  { %5104 = vrot.lane.b32.xlu1 %v5102_v13, %s6406_s21 }
0x273c   :  { %v5202_v18 = vpop.permute.xlu0 %5201 }
0x273d   :  { %v5204_v39 = vmul.f32 %v6158_v15, %v5202_v18 }
0x273f   :  { %5206 = vrot.lane.b32.xlu0 %v5204_v39, %s6406_s21 }
0x2789   :  { %v5105_v19 = vpop.permute.xlu1 %5104 }
0x278a   :  { %v5107_v20 = vadd.f32 %v5105_v19, %v5015_v17 }
0x278c   :  { %6159 = vtanh.f32 %v5107_v20 }
0x2799   :  { %v6160_v22 = vpop.eup %6159 }
0x279a   :  { %5111 = vrot.lane.b32.xlu1 %v6160_v22, %s6407_s22 }
0x27b1   :  { %v5207_v21 = vpop.permute.xlu0 %5206 }
0x27b2   :  { %v5209_v24 = vadd.f32 %v5207_v21, %v5117_v0 }
0x27b4   :  { %6161 = vtanh.f32 %v5209_v24 }
0x27c1   :  { %v6162_v25 = vpop.eup %6161 }
0x27c2   :  { %5213 = vrot.lane.b32.xlu0 %v6162_v25, %s6407_s22 }
0x280c   :  { %v5112_v27 = vpop.permute.xlu1 %5111 }
0x280d   :  { %v5114_v30 = vmul.f32 %v5112_v27, %v5109_v26 }
0x280f   :  { %v5116_v31 = vadd.f32 %v5115_v3, %v5114_v30 }
0x2811   :  { %5221 = vrot.lane.b32.xlu1 %v5116_v31, %s6407_s22 }
0x2815   :  { %2682 = vrot.lane.b32.xlu1 %v6952_v29, %s6404_s5 }
0x2834   :  { %v5214_v62 = vpop.permute.xlu0 %5213 }
0x2835   :  { %v5216_v35 = vmul.f32 %v5214_v62, %v5211_v32 }
0x2837   :  { %v5218_v12 = vadd.f32 %v5217_v34, %v5216_v35 }
0x2839   :  { %5323 = vrot.lane.b32.xlu0 %v5218_v12, %s6407_s22 }
0x2883   :  { %v5222_v37 = vpop.permute.xlu1 %5221 }
0x2884   :  { %5956 = vmatmul.mubr.msk.f32.vlgmr.msra.gmra.mxu0 %vm838_vm4, %v5222_v37 }
0x2887   :  { %v2683_v40 = vpop.permute.xlu1 %2682 }
0x2888   :  { %2685 = vst.msk [vmem:[#allocation5] sm:$0x3] %vm239_vm2, %v2683_v40 }
0x288f   :  { %v5321_v49 = vld [vmem:[#allocation5] sm:$0x3] }
0x28ab   :  { %v5324_v41 = vpop.permute.xlu0 %5323 }
0x28ac   :  { %5961 = vmatmul.mubr.msk.f32.vlgmr.msra.gmra.mxu1 %vm838_vm4, %v5324_v41 }
0x2944   :  { %v5291_v23 = vpop.f32.mrf.mxu0 }
0x2945   :  { %v5292_v43 = vadd.f32 %v6986_v5, %v5291_v23 }
0x2946   :  { %v5957_v29 = vpop.f32.mrf.mxu0 }
0x2947   :  { %5303 = vrot.lane.b32.xlu0 %v5292_v43, %s6405_s28  ;;  %v5295_v47 = vadd.f32 %v5292_v43, %v5219_v46 }
0x2949   :  { %v5544_v48 = vmul.f32 -1.442695, %v5295_v47 }
0x294b   :  { %6163 = vpow2.f32 %v5544_v48 }
0x2958   :  { %v6164_v1 = vpop.eup %6163 }
0x2959   :  { %v5299_v42 = vadd.f32 1.0, %v6164_v1 }
0x295b   :  { %6165 = vrcp.f32 %v5299_v42 }
0x2968   :  { %v6166_v51 = vpop.eup %6165 }
0x2969   :  { %v5313_v63 = vsub.f32 1.0, %v6166_v51  ;;  %v5319_v2 = vmul.f32 %v6166_v51, %v5116_v31 }
0x296c   :  { %v5393_v44 = vpop.f32.mrf.mxu1 }
0x296d   :  { %v5394_v45 = vadd.f32 %v6991_v33, %v5393_v44 }
0x296e   :  { %v5962_v16 = vpop.f32.mrf.mxu1 }
0x296f   :  { %5405 = vrot.lane.b32.xlu1 %v5394_v45, %s6405_s28  ;;  %v5397_v50 = vadd.f32 %v5394_v45, %v5321_v49 }
0x2971   :  { %v5546_v53 = vmul.f32 -1.442695, %v5397_v50 }
0x2973   :  { %6167 = vpow2.f32 %v5546_v53 }
0x2980   :  { %v6168_v33 = vpop.eup %6167 }
0x2981   :  { %v5401_v54 = vadd.f32 1.0, %v6168_v33 }
0x2983   :  { %6169 = vrcp.f32 %v5401_v54 }
0x2990   :  { %v6170_v55 = vpop.eup %6169 }
0x2991   :  { %v5415_v6 = vsub.f32 1.0, %v6170_v55  ;;  %v5421_v7 = vmul.f32 %v6170_v55, %v5218_v12 }
0x29b9   :  { %v5304_v5 = vpop.permute.xlu0 %5303 }
0x29ba   :  { %v5306_v52 = vmul.f32 %v6166_v51, %v5304_v5 }
0x29bc   :  { %5308 = vrot.lane.b32.xlu0 %v5306_v52, %s6406_s21 }
0x29e1   :  { %v5406_v56 = vpop.permute.xlu1 %5405 }
0x29e2   :  { %v5408_v57 = vmul.f32 %v6170_v55, %v5406_v56 }
0x29e4   :  { %5410 = vrot.lane.b32.xlu1 %v5408_v57, %s6406_s21 }
0x2a2e   :  { %v5309_v9 = vpop.permute.xlu0 %5308 }
0x2a2f   :  { %v5311_v58 = vadd.f32 %v5309_v9, %v5219_v46 }
0x2a31   :  { %6171 = vtanh.f32 %v5311_v58 }
0x2a3e   :  { %v6172_v59 = vpop.eup %6171 }
0x2a3f   :  { %5315 = vrot.lane.b32.xlu0 %v6172_v59, %s6407_s22 }
0x2a56   :  { %v5411_v61 = vpop.permute.xlu1 %5410 }
0x2a57   :  { %v5413_v28 = vadd.f32 %v5411_v61, %v5321_v49 }
0x2a59   :  { %6173 = vtanh.f32 %v5413_v28 }
0x2a66   :  { %v6174_v11 = vpop.eup %6173 }
0x2a67   :  { %5417 = vrot.lane.b32.xlu1 %v6174_v11, %s6407_s22 }
0x2ab1   :  { %v5316_v17 = vpop.permute.xlu0 %5315 }
0x2ab2   :  { %v5318_v4 = vmul.f32 %v5316_v17, %v5313_v63 }
0x2ab4   :  { %v5320_v36 = vadd.f32 %v5319_v2, %v5318_v4 }
0x2ab6   :  { %5427 = vrot.lane.b32.xlu0 %v5320_v36, %s6391_s29 }
0x2ad9   :  { %v5418_v0 = vpop.permute.xlu1 %5417 }
0x2ada   :  { %v5420_v8 = vmul.f32 %v5418_v0, %v5415_v6 }
0x2adc   :  { %v5422_v10 = vadd.f32 %v5421_v7, %v5420_v8 }
0x2ade   :  { %5433 = vrot.lane.b32.xlu1 %v5422_v10, %s6406_s21 }
0x2b28   :  { %v5428_v13 = vpop.permute.xlu0 %5427 }
0x2b29   :  { %5431 = vst.msk [vmem:[#allocation23] sm:$0x3] %vm5430_vm6, %v5428_v13 }
0x2b50   :  { %v5434_v14 = vpop.permute.xlu1 %5433 }
0x2b51   :  { %5437 = vst.msk [vmem:[#allocation23] sm:$0x3] %vm5436_vm7, %v5434_v14 }
0x2b52   :  { %6368 = shalt.err (!%p6365_p7)
}
0x2b53   :  { %5447 = dma.vmem_to_hbm [thread:$0]  %s5445_s12, 32, %s7212_s13, [#allocation10]  }
0x2b54   :  { %6387 = dma.done.wait [#allocation10], 32  }
0x2b55   :  { %6388 = vsyncadd [#allocation10], 4294967264 }
0x2b56   :  { %5451 = vsyncpa [#allocation9], 1 }
0x2b57   :  { %5452 = vsyncpa [#allocation12], 1 }
0x2b58   :  { %5453 = vsyncpa [#allocation15], 1 }
0x2b59   :  { %5454 = vsyncpa [#allocation18], 1 }
0x2b5a   :  { %5455 = vsyncpa [#allocation21], 1 }
0x2b5b   :  { %5456 = vsyncpa [#allocation10], 1 }

</bundles_post_ra>
